<compile_context>
chip_gen: v5e
topology: v5e:2x2
jax: 0.10.0
libtpu: 0.0.40
codegen_flags: <defaults>
</compile_context>

<pallas_src>
import math

import jax
import jax.numpy as jnp
from jax.experimental import pallas as pl
from jax.experimental.pallas import tpu as pltpu


# ----------------------------------------------------------------------------
# Fused kernel: one (batch, super-tile, inner-tile) grid step does the full
# per-voxel chain and accumulates per-(batch, super-tile) dice partial sums in
# a tiny resident output block.
# ----------------------------------------------------------------------------
def _fused_diffusion_kernel(
    scale_ref,                  # SMEM (2,)  : [sqrt(g), sqrt(1-g)]
    we_ref, be_ref,             # encoder  (CE,CD) bf16, (CE,1) f32
    w1_ref, b1_ref,             # denoise L1 (H, CE+CD+CB) bf16, (H,1) f32 (bias+time-emb)
    w2_ref, b2_ref,             # denoise L2 (CB,H) bf16, (CB,1) f32
    x_ref, d_ref, n_ref,        # (1,CB,T) backbone, (1,CD,T) density, (1,CB,T) noise  (f32)
    recon_ref,                  # out (1,CB,T) f32
    dice_ref,                   # out (1,1,3,CB,128) f32 resident per-(batch,super) accumulator
    cat_ref,                    # scratch VMEM (CE+CD+CB, T) f32  — K-concatenated layer-1 RHS
):
    sg = scale_ref[0]
    s1g = scale_ref[1]

    x = x_ref[0]          # (CB, T) f32  (backbone == dice target)
    dens = d_ref[0]       # (CD, T) f32
    nz = n_ref[0]         # (CB, T) f32

    ce = we_ref.shape[0]
    cd = dens.shape[0]
    cb = x.shape[0]

    # --- q_sample: sqrt(g)*x + sqrt(1-g)*noise  (f32 elementwise, VPU) -------
    x_noisy = sg * x + s1g * nz

    # --- encode_fn (1x1x1 conv) + sigmoid; bf16 operands into the MXU --------
    enc = jax.nn.sigmoid(
        jnp.dot(we_ref[...], dens.astype(jnp.bfloat16),
                preferred_element_type=jnp.float32)
        + be_ref[...])

    # --- build the K-concatenated layer-1 RHS in a VMEM scratch --------------
    # rows: [enc | density | x_noisy]  (matches w1 column order; no concat op)
    cat_ref[0:ce, :] = enc
    cat_ref[ce:ce + cd, :] = dens
    cat_ref[ce + cd:ce + cd + cb, :] = x_noisy

    # --- denoise layer 1: ONE MXU pass over the fused K = CE+CD+CB operand ---
    h = jnp.dot(w1_ref[...], cat_ref[...].astype(jnp.bfloat16),
                preferred_element_type=jnp.float32)
    h = jnp.maximum(h + b1_ref[...], 0.0)

    # --- denoise layer 2 -> x_recon -------------------------------------------
    recon = (jnp.dot(w2_ref[...], h.astype(jnp.bfloat16),
                     preferred_element_type=jnp.float32)
             + b2_ref[...])
    recon_ref[0] = recon.astype(recon_ref.dtype)

    # --- batch-dice partial sums, lane-reduced in kernel (XLU is idle) -------
    @pl.when(pl.program_id(2) == 0)
    def _():
        dice_ref[...] = jnp.zeros_like(dice_ref)

    dice_ref[0, 0, 0] += jnp.sum(recon * x, axis=-1, keepdims=True)   # sum(p*t)
    dice_ref[0, 0, 1] += jnp.sum(recon, axis=-1, keepdims=True)       # sum(p)
    dice_ref[0, 0, 2] += jnp.sum(x, axis=-1, keepdims=True)           # sum(t)


def _pick_tile_n(m, cap=16384):
    """Largest multiple-of-128 divisor of m that is <= cap."""
    # TODO(synk): volumes with D*H*W not a multiple of 128 would need a masked
    # tail tile; not required for the shapes exercised here.
    assert m % 128 == 0, "D*H*W must be a multiple of 128"
    best = 128
    t = 128
    while t <= min(m, cap):
        if m % t == 0:
            best = t
        t += 128
    return best


def _vmem_limit_bytes(tile_n, cb, cd, ce, hidden):
    """Scoped-VMEM request sized from buffer math (+50% margin), clamped so it
    stays well inside v7x's 64 MiB physical VMEM (and is generous elsewhere)."""
    per_lane = (
        2 * (2 * cb + cd) * 4          # double-buffered f32 input blocks
        + 2 * cb * 4                   # double-buffered f32 recon output block
        + (ce + cd + cb) * 4           # f32 concat scratch
        + (ce + hidden + 2 * cb) * 4   # f32 intermediates (enc, h, x_noisy, recon)
        + (ce + cd + cb + hidden) * 2  # bf16 casts feeding the MXU
    )
    est = int(per_lane * tile_n * 1.5) + (2 << 20)   # +2 MiB for weights/dice/etc.
    return max(32 << 20, min(est, 48 << 20))


def fused_diffusion_call(scale, params_k, xb, xd, xn, *, tile_n, n_super):
    b, cb, m = xb.shape
    cd = xd.shape[1]
    ce = params_k["we"].shape[0]
    hidden = params_k["w1"].shape[0]
    k = ce + cd + cb

    n_tiles = m // tile_n
    assert m % tile_n == 0 and n_tiles % n_super == 0
    n_inner = n_tiles // n_super
    grid = (b, n_super, n_inner)

    wspec = lambda shape: pl.BlockSpec(shape, lambda bi, si, ji: (0, 0))
    vox = lambda ch: pl.BlockSpec(
        (1, ch, tile_n), lambda bi, si, ji: (bi, 0, si * n_inner + ji))

    recon, dice_part = pl.pallas_call(
        _fused_diffusion_kernel,
        out_shape=(
            jax.ShapeDtypeStruct((b, cb, m), jnp.float32),
            jax.ShapeDtypeStruct((b, n_super, 3, cb, 128), jnp.float32),
        ),
        grid=grid,
        in_specs=[
            pl.BlockSpec(memory_space=pltpu.MemorySpace.SMEM),   # scale (2,)
            wspec((ce, cd)),      # we  (bf16)
            wspec((ce, 1)),       # be
            wspec((hidden, k)),   # w1  (bf16, unsplit)
            wspec((hidden, 1)),   # b1 (+ time emb)
            wspec((cb, hidden)),  # w2  (bf16)
            wspec((cb, 1)),       # b2
            vox(cb),              # backbone
            vox(cd),              # density
            vox(cb),              # noise
        ],
        out_specs=(
            vox(cb),                                               # x_recon
            pl.BlockSpec((1, 1, 3, cb, 128),
                         lambda bi, si, ji: (bi, si, 0, 0, 0)),    # dice accumulator
        ),
        scratch_shapes=[pltpu.VMEM((k, tile_n), jnp.float32)],
        compiler_params=pltpu.CompilerParams(
            dimension_semantics=("parallel", "parallel", "arbitrary"),
            vmem_limit_bytes=_vmem_limit_bytes(tile_n, cb, cd, ce, hidden),
        ),
    )(
        scale,
        params_k["we"], params_k["be"],
        params_k["w1"], params_k["b1"],
        params_k["w2"], params_k["b2"],
        xb, xd, xn,
    )
    return recon, dice_part


# ----------------------------------------------------------------------------
# GeneralDiffusion.p_losses (== forward) glue
# ----------------------------------------------------------------------------
def gamma_schedule(t, ns=0.0002, ds=0.00025):
    return math.cos((t + ns) / (1 + ds) * math.pi / 2) ** 2


def general_diffusion_forward(backbone, density, noise, gamma_t, params,
                              *, max_tile_n=16384, eps=1e-6):
    b, cb, d, h, w = backbone.shape
    cd = density.shape[1]
    m = d * h * w

    # Pure reshapes (no transpose, no HBM round trip): NCDHW -> (B, C, M)
    xb = backbone.reshape(b, cb, m)
    xd = density.reshape(b, cd, m)
    xn = noise.reshape(b, cb, m)

    tile_n = _pick_tile_n(m, max_tile_n)
    n_tiles = m // tile_n
    # Keep both v7x TensorCores busy even for a single-batch call.
    if b == 1 and n_tiles == 1 and tile_n % 256 == 0:
        tile_n //= 2
        n_tiles = 2
    n_super = 2 if n_tiles % 2 == 0 else 1

    # Traced scalars / tiny vectors — no recompile when gamma_t changes.
    gamma_t = jnp.asarray(gamma_t, jnp.float32)
    scale = jnp.stack([jnp.sqrt(gamma_t), jnp.sqrt(1.0 - gamma_t)]).astype(jnp.float32)

    ce = params["we"].shape[0]
    assert params["w1"].shape[1] == ce + cd + cb

    # Weights -> bf16 once (MXU-native); biases + (bias + time-embedding,
    # gamma_t identical across batch == gamma_t.repeat(b,1)) stay f32.
    params_k = {
        "we": params["we"].astype(jnp.bfloat16),
        "be": params["be"].astype(jnp.float32),
        "w1": params["w1"].astype(jnp.bfloat16),
        "b1": (params["b1"] + params["wt"] * gamma_t + params["bt"]).astype(jnp.float32),
        "w2": params["w2"].astype(jnp.bfloat16),
        "b2": params["b2"].astype(jnp.float32),
    }

    recon, dice_part = fused_diffusion_call(scale, params_k, xb, xd, xn,
                                            tile_n=tile_n, n_super=n_super)

    # Tiny final reduction: (B, n_super, 3, CB, 128) -> lane 0, sum super+channel.
    s = dice_part[:, :, :, :, 0].sum(axis=(1, 3))   # (B, 3)
    inter, psum, tsum = s[:, 0], s[:, 1], s[:, 2]
    # TODO(synk): BatchDiceLoss source not provided; standard batch dice used
    # here on the raw linear x_recon (matches the previous reference behavior).
    dice = (2.0 * inter + eps) / (psum + tsum + eps)
    loss = 1.0 - jnp.mean(dice)

    x_recon = recon.reshape(b, cb, d, h, w)
    return loss, x_recon, backbone


# ----------------------------------------------------------------------------
def init_params(key, cd, cb, ce, hidden):
    ks = jax.random.split(key, 6)
    sc = 0.1
    return {
        "we": sc * jax.random.normal(ks[0], (ce, cd), jnp.float32),
        "be": jnp.zeros((ce, 1), jnp.float32),
        "wt": sc * jax.random.normal(ks[1], (hidden, 1), jnp.float32),
        "bt": jnp.zeros((hidden, 1), jnp.float32),
        "w1": sc * jax.random.normal(ks[2], (hidden, ce + cd + cb), jnp.float32),
        "b1": jnp.zeros((hidden, 1), jnp.float32),
        "w2": sc * jax.random.normal(ks[3], (cb, hidden), jnp.float32),
        "b2": jnp.zeros((cb, 1), jnp.float32),
    }


if __name__ == "__main__":
    key = jax.random.PRNGKey(0)
    k_bb, k_dn, k_nz, k_t, k_p = jax.random.split(key, 5)

    B, CB, CD, S = 2, 4, 4, 16          # batch, backbone ch, density ch, box size
    CE, HIDDEN = 8, 32                  # encoder output ch, denoiser hidden ch

    backbone = jax.random.normal(k_bb, (B, CB, S, S, S), jnp.float32)
    density = jax.random.normal(k_dn, (B, CD, S, S, S), jnp.float32)
    noise = jax.random.normal(k_nz, (B, CB, S, S, S), jnp.float32)

    # sampled t (deterministic here) and its gamma (cos^2 schedule)
    t = float(jax.random.uniform(k_t))
    gamma_t = gamma_schedule(t)

    params = init_params(k_p, CD, CB, CE, HIDDEN)

    loss, x_recon, x_start = general_diffusion_forward(
        backbone, density, noise, gamma_t, params)
    jax.block_until_ready((loss, x_recon, x_start))

    assert x_recon.shape == (B, CB, S, S, S)
    assert x_start.shape == (B, CB, S, S, S)
    assert loss.shape == ()
    assert bool(jnp.isfinite(loss))
    print("KERNEL_OK")
</pallas_src>

<mosaic_0001>
module attributes {stable_mosaic.version = 11 : i64} {
  func.func @_fused_diffusion_kernel(%arg0: i32, %arg1: i32, %arg2: i32, %arg3: memref<2xf32, #tpu.memory_space<smem>>, %arg4: memref<8x4xbf16, #tpu.memory_space<vmem>>, %arg5: memref<8x1xf32, #tpu.memory_space<vmem>>, %arg6: memref<32x16xbf16, #tpu.memory_space<vmem>>, %arg7: memref<32x1xf32, #tpu.memory_space<vmem>>, %arg8: memref<4x32xbf16, #tpu.memory_space<vmem>>, %arg9: memref<4x1xf32, #tpu.memory_space<vmem>>, %arg10: memref<1x4x4096xf32, #tpu.memory_space<vmem>>, %arg11: memref<1x4x4096xf32, #tpu.memory_space<vmem>>, %arg12: memref<1x4x4096xf32, #tpu.memory_space<vmem>>, %arg13: memref<1x4x4096xf32, #tpu.memory_space<vmem>>, %arg14: memref<1x1x3x4x128xf32, #tpu.memory_space<vmem>>, %arg15: memref<16x4096xf32, #tpu.memory_space<vmem>>) attributes {dimension_semantics = [#tpu.dimension_semantics<parallel>, #tpu.dimension_semantics<parallel>, #tpu.dimension_semantics<arbitrary>], iteration_bounds = array<i64: 2, 1, 1>, scalar_prefetch = 0 : i64, scratch_operands = 1 : i64, tpu.core_type = #tpu.core_type<tc>, window_params = [{transform_indices = @transform_0, window_bounds = array<i64: 2>}, {pipeline_mode = #tpu.pipeline_mode<synchronous>, transform_indices = @transform_1, window_bounds = array<i64: 8, 4>}, {pipeline_mode = #tpu.pipeline_mode<synchronous>, transform_indices = @transform_2, window_bounds = array<i64: 8, 1>}, {pipeline_mode = #tpu.pipeline_mode<synchronous>, transform_indices = @transform_3, window_bounds = array<i64: 32, 16>}, {pipeline_mode = #tpu.pipeline_mode<synchronous>, transform_indices = @transform_4, window_bounds = array<i64: 32, 1>}, {pipeline_mode = #tpu.pipeline_mode<synchronous>, transform_indices = @transform_5, window_bounds = array<i64: 4, 32>}, {pipeline_mode = #tpu.pipeline_mode<synchronous>, transform_indices = @transform_6, window_bounds = array<i64: 4, 1>}, {transform_indices = @transform_7, window_bounds = array<i64: 1, 4, 4096>}, {transform_indices = @transform_8, window_bounds = array<i64: 1, 4, 4096>}, {transform_indices = @transform_9, window_bounds = array<i64: 1, 4, 4096>}, {transform_indices = @transform_10, window_bounds = array<i64: 1, 4, 4096>}, {transform_indices = @transform_11, window_bounds = array<i64: 1, 1, 3, 4, 128>}]} {
    %c0 = arith.constant 0 : index
    %0 = memref.load %arg3[%c0] : memref<2xf32, #tpu.memory_space<smem>>
    %c1 = arith.constant 1 : index
    %1 = memref.load %arg3[%c1] : memref<2xf32, #tpu.memory_space<smem>>
    %c0_0 = arith.constant 0 : index
    %c0_1 = arith.constant 0 : index
    %c0_2 = arith.constant 0 : index
    %2 = vector.load %arg10[%c0_0, %c0_1, %c0_2] : memref<1x4x4096xf32, #tpu.memory_space<vmem>>, vector<1x4x4096xf32>
    %3 = vector.shape_cast %2 : vector<1x4x4096xf32> to vector<4x4096xf32>
    %c0_3 = arith.constant 0 : index
    %c0_4 = arith.constant 0 : index
    %c0_5 = arith.constant 0 : index
    %4 = vector.load %arg11[%c0_3, %c0_4, %c0_5] : memref<1x4x4096xf32, #tpu.memory_space<vmem>>, vector<1x4x4096xf32>
    %5 = vector.shape_cast %4 : vector<1x4x4096xf32> to vector<4x4096xf32>
    %c0_6 = arith.constant 0 : index
    %c0_7 = arith.constant 0 : index
    %c0_8 = arith.constant 0 : index
    %6 = vector.load %arg12[%c0_6, %c0_7, %c0_8] : memref<1x4x4096xf32, #tpu.memory_space<vmem>>, vector<1x4x4096xf32>
    %7 = vector.shape_cast %6 : vector<1x4x4096xf32> to vector<4x4096xf32>
    %8 = vector.broadcast %0 : f32 to vector<4x4096xf32>
    %9 = arith.mulf %8, %3 : vector<4x4096xf32>
    %10 = vector.broadcast %1 : f32 to vector<4x4096xf32>
    %11 = arith.mulf %10, %7 : vector<4x4096xf32>
    %12 = arith.addf %9, %11 : vector<4x4096xf32>
    %c0_9 = arith.constant 0 : index
    %c0_10 = arith.constant 0 : index
    %13 = vector.load %arg4[%c0_9, %c0_10] : memref<8x4xbf16, #tpu.memory_space<vmem>>, vector<8x4xbf16>
    %14 = arith.truncf %5 : vector<4x4096xf32> to vector<4x4096xbf16>
    %cst = arith.constant dense<0.000000e+00> : vector<8x4096xf32>
    %15 = tpu.matmul %13, %14, %cst {dimension_numbers = #tpu.dot_dimension_numbers<[1], [0], [0], [1], [0, 0, 1, 1], [], []>} : vector<8x4xbf16>, vector<4x4096xbf16>, vector<8x4096xf32> -> vector<8x4096xf32>
    %c0_11 = arith.constant 0 : index
    %c0_12 = arith.constant 0 : index
    %16 = vector.load %arg5[%c0_11, %c0_12] : memref<8x1xf32, #tpu.memory_space<vmem>>, vector<8x1xf32>
    %17 = vector.broadcast %16 : vector<8x1xf32> to vector<8x4096xf32>
    %18 = arith.addf %15, %17 : vector<8x4096xf32>
    %19 = arith.negf %18 : vector<8x4096xf32>
    %20 = math.exp %19 : vector<8x4096xf32>
    %cst_13 = arith.constant 1.000000e+00 : f32
    %21 = vector.broadcast %cst_13 : f32 to vector<8x4096xf32>
    %22 = arith.addf %21, %20 : vector<8x4096xf32>
    %23 = arith.divf %21, %22 : vector<8x4096xf32>
    %c0_14 = arith.constant 0 : index
    %c0_15 = arith.constant 0 : index
    %24 = vector.load %arg15[%c0_14, %c0_15] : memref<16x4096xf32, #tpu.memory_space<vmem>>, vector<8x4096xf32>
    tpu.vector_store %arg15[%c0_14, %c0_15], %23 {strides = array<i32>} : memref<16x4096xf32, #tpu.memory_space<vmem>>, vector<8x4096xf32>,
    %c8 = arith.constant 8 : index
    %c0_16 = arith.constant 0 : index
    %25 = vector.load %arg15[%c8, %c0_16] : memref<16x4096xf32, #tpu.memory_space<vmem>>, vector<4x4096xf32>
    tpu.vector_store %arg15[%c8, %c0_16], %5 {strides = array<i32>} : memref<16x4096xf32, #tpu.memory_space<vmem>>, vector<4x4096xf32>,
    %c12 = arith.constant 12 : index
    %c0_17 = arith.constant 0 : index
    %26 = vector.load %arg15[%c12, %c0_17] : memref<16x4096xf32, #tpu.memory_space<vmem>>, vector<4x4096xf32>
    tpu.vector_store %arg15[%c12, %c0_17], %12 {strides = array<i32>} : memref<16x4096xf32, #tpu.memory_space<vmem>>, vector<4x4096xf32>,
    %c0_18 = arith.constant 0 : index
    %c0_19 = arith.constant 0 : index
    %27 = vector.load %arg6[%c0_18, %c0_19] : memref<32x16xbf16, #tpu.memory_space<vmem>>, vector<32x16xbf16>
    %c0_20 = arith.constant 0 : index
    %c0_21 = arith.constant 0 : index
    %28 = vector.load %arg15[%c0_20, %c0_21] : memref<16x4096xf32, #tpu.memory_space<vmem>>, vector<16x4096xf32>
    %29 = arith.truncf %28 : vector<16x4096xf32> to vector<16x4096xbf16>
    %cst_22 = arith.constant dense<0.000000e+00> : vector<32x4096xf32>
    %30 = tpu.matmul %27, %29, %cst_22 {dimension_numbers = #tpu.dot_dimension_numbers<[1], [0], [0], [1], [0, 0, 1, 1], [], []>} : vector<32x16xbf16>, vector<16x4096xbf16>, vector<32x4096xf32> -> vector<32x4096xf32>
    %c0_23 = arith.constant 0 : index
    %c0_24 = arith.constant 0 : index
    %31 = vector.load %arg7[%c0_23, %c0_24] : memref<32x1xf32, #tpu.memory_space<vmem>>, vector<32x1xf32>
    %32 = vector.broadcast %31 : vector<32x1xf32> to vector<32x4096xf32>
    %33 = arith.addf %30, %32 : vector<32x4096xf32>
    %cst_25 = arith.constant 0.000000e+00 : f32
    %34 = vector.broadcast %cst_25 : f32 to vector<32x4096xf32>
    %35 = arith.maximumf %33, %34 : vector<32x4096xf32>
    %c0_26 = arith.constant 0 : index
    %c0_27 = arith.constant 0 : index
    %36 = vector.load %arg8[%c0_26, %c0_27] : memref<4x32xbf16, #tpu.memory_space<vmem>>, vector<4x32xbf16>
    %37 = arith.truncf %35 : vector<32x4096xf32> to vector<32x4096xbf16>
    %cst_28 = arith.constant dense<0.000000e+00> : vector<4x4096xf32>
    %38 = tpu.matmul %36, %37, %cst_28 {dimension_numbers = #tpu.dot_dimension_numbers<[1], [0], [0], [1], [0, 0, 1, 1], [], []>} : vector<4x32xbf16>, vector<32x4096xbf16>, vector<4x4096xf32> -> vector<4x4096xf32>
    %c0_29 = arith.constant 0 : index
    %c0_30 = arith.constant 0 : index
    %39 = vector.load %arg9[%c0_29, %c0_30] : memref<4x1xf32, #tpu.memory_space<vmem>>, vector<4x1xf32>
    %40 = vector.broadcast %39 : vector<4x1xf32> to vector<4x4096xf32>
    %41 = arith.addf %38, %40 : vector<4x4096xf32>
    %c0_31 = arith.constant 0 : index
    %c0_32 = arith.constant 0 : index
    %c0_33 = arith.constant 0 : index
    %42 = vector.load %arg13[%c0_31, %c0_32, %c0_33] : memref<1x4x4096xf32, #tpu.memory_space<vmem>>, vector<1x4x4096xf32>
    %43 = vector.shape_cast %42 : vector<1x4x4096xf32> to vector<4x4096xf32>
    %44 = vector.shape_cast %41 : vector<4x4096xf32> to vector<1x4x4096xf32>
    tpu.vector_store %arg13[%c0_31, %c0_32, %c0_33], %44 {strides = array<i32>} : memref<1x4x4096xf32, #tpu.memory_space<vmem>>, vector<1x4x4096xf32>,
    %c0_i32 = arith.constant 0 : i32
    %45 = arith.cmpi eq, %arg2, %c0_i32 : i32
    %46 = arith.extui %45 : i1 to i32
    %c0_i32_34 = arith.constant 0 : i32
    %47 = arith.cmpi ne, %46, %c0_i32_34 : i32
    scf.if %47 {
      %cst_67 = arith.constant 0.000000e+00 : f32
      %76 = vector.broadcast %cst_67 : f32 to vector<1x1x3x4x128xf32>
      %c0_68 = arith.constant 0 : index
      %c0_69 = arith.constant 0 : index
      %c0_70 = arith.constant 0 : index
      %c0_71 = arith.constant 0 : index
      %c0_72 = arith.constant 0 : index
      %77 = vector.load %arg14[%c0_68, %c0_69, %c0_70, %c0_71, %c0_72] : memref<1x1x3x4x128xf32, #tpu.memory_space<vmem>>, vector<1x1x3x4x128xf32>
      tpu.vector_store %arg14[%c0_68, %c0_69, %c0_70, %c0_71, %c0_72], %76 {strides = array<i32>} : memref<1x1x3x4x128xf32, #tpu.memory_space<vmem>>, vector<1x1x3x4x128xf32>,
    } else {
    }
    %c0_35 = arith.constant 0 : index
    %c0_36 = arith.constant 0 : index
    %c0_37 = arith.constant 0 : index
    %c0_38 = arith.constant 0 : index
    %c0_39 = arith.constant 0 : index
    %48 = vector.load %arg14[%c0_35, %c0_36, %c0_37, %c0_38, %c0_39] : memref<1x1x3x4x128xf32, #tpu.memory_space<vmem>>, vector<1x1x1x4x128xf32>
    %49 = vector.shape_cast %48 : vector<1x1x1x4x128xf32> to vector<4x128xf32>
    %50 = arith.mulf %41, %3 : vector<4x4096xf32>
    %cst_40 = arith.constant dense<0.000000e+00> : vector<4xf32>
    %51 = vector.multi_reduction <add>, %50, %cst_40 [1] : vector<4x4096xf32> to vector<4xf32>
    %52 = vector.shape_cast %51 : vector<4xf32> to vector<4x1xf32>
    %53 = vector.broadcast %52 : vector<4x1xf32> to vector<4x128xf32>
    %54 = arith.addf %49, %53 : vector<4x128xf32>
    %c0_41 = arith.constant 0 : index
    %c0_42 = arith.constant 0 : index
    %c0_43 = arith.constant 0 : index
    %c0_44 = arith.constant 0 : index
    %c0_45 = arith.constant 0 : index
    %55 = vector.load %arg14[%c0_41, %c0_42, %c0_43, %c0_44, %c0_45] : memref<1x1x3x4x128xf32, #tpu.memory_space<vmem>>, vector<1x1x1x4x128xf32>
    %56 = vector.shape_cast %55 : vector<1x1x1x4x128xf32> to vector<4x128xf32>
    %57 = vector.shape_cast %54 : vector<4x128xf32> to vector<1x1x1x4x128xf32>
    tpu.vector_store %arg14[%c0_41, %c0_42, %c0_43, %c0_44, %c0_45], %57 {strides = array<i32>} : memref<1x1x3x4x128xf32, #tpu.memory_space<vmem>>, vector<1x1x1x4x128xf32>,
    %c0_46 = arith.constant 0 : index
    %c0_47 = arith.constant 0 : index
    %c1_48 = arith.constant 1 : index
    %c0_49 = arith.constant 0 : index
    %c0_50 = arith.constant 0 : index
    %58 = vector.load %arg14[%c0_46, %c0_47, %c1_48, %c0_49, %c0_50] : memref<1x1x3x4x128xf32, #tpu.memory_space<vmem>>, vector<1x1x1x4x128xf32>
    %59 = vector.shape_cast %58 : vector<1x1x1x4x128xf32> to vector<4x128xf32>
    %cst_51 = arith.constant dense<0.000000e+00> : vector<4xf32>
    %60 = vector.multi_reduction <add>, %41, %cst_51 [1] : vector<4x4096xf32> to vector<4xf32>
    %61 = vector.shape_cast %60 : vector<4xf32> to vector<4x1xf32>
    %62 = vector.broadcast %61 : vector<4x1xf32> to vector<4x128xf32>
    %63 = arith.addf %59, %62 : vector<4x128xf32>
    %c0_52 = arith.constant 0 : index
    %c0_53 = arith.constant 0 : index
    %c1_54 = arith.constant 1 : index
    %c0_55 = arith.constant 0 : index
    %c0_56 = arith.constant 0 : index
    %64 = vector.load %arg14[%c0_52, %c0_53, %c1_54, %c0_55, %c0_56] : memref<1x1x3x4x128xf32, #tpu.memory_space<vmem>>, vector<1x1x1x4x128xf32>
    %65 = vector.shape_cast %64 : vector<1x1x1x4x128xf32> to vector<4x128xf32>
    %66 = vector.shape_cast %63 : vector<4x128xf32> to vector<1x1x1x4x128xf32>
    tpu.vector_store %arg14[%c0_52, %c0_53, %c1_54, %c0_55, %c0_56], %66 {strides = array<i32>} : memref<1x1x3x4x128xf32, #tpu.memory_space<vmem>>, vector<1x1x1x4x128xf32>,
    %c0_57 = arith.constant 0 : index
    %c0_58 = arith.constant 0 : index
    %c2 = arith.constant 2 : index
    %c0_59 = arith.constant 0 : index
    %c0_60 = arith.constant 0 : index
    %67 = vector.load %arg14[%c0_57, %c0_58, %c2, %c0_59, %c0_60] : memref<1x1x3x4x128xf32, #tpu.memory_space<vmem>>, vector<1x1x1x4x128xf32>
    %68 = vector.shape_cast %67 : vector<1x1x1x4x128xf32> to vector<4x128xf32>
    %cst_61 = arith.constant dense<0.000000e+00> : vector<4xf32>
    %69 = vector.multi_reduction <add>, %3, %cst_61 [1] : vector<4x4096xf32> to vector<4xf32>
    %70 = vector.shape_cast %69 : vector<4xf32> to vector<4x1xf32>
    %71 = vector.broadcast %70 : vector<4x1xf32> to vector<4x128xf32>
    %72 = arith.addf %68, %71 : vector<4x128xf32>
    %c0_62 = arith.constant 0 : index
    %c0_63 = arith.constant 0 : index
    %c2_64 = arith.constant 2 : index
    %c0_65 = arith.constant 0 : index
    %c0_66 = arith.constant 0 : index
    %73 = vector.load %arg14[%c0_62, %c0_63, %c2_64, %c0_65, %c0_66] : memref<1x1x3x4x128xf32, #tpu.memory_space<vmem>>, vector<1x1x1x4x128xf32>
    %74 = vector.shape_cast %73 : vector<1x1x1x4x128xf32> to vector<4x128xf32>
    %75 = vector.shape_cast %72 : vector<4x128xf32> to vector<1x1x1x4x128xf32>
    tpu.vector_store %arg14[%c0_62, %c0_63, %c2_64, %c0_65, %c0_66], %75 {strides = array<i32>} : memref<1x1x3x4x128xf32, #tpu.memory_space<vmem>>, vector<1x1x1x4x128xf32>,
    return
  }
  func.func @transform_0(%arg0: i32, %arg1: i32, %arg2: i32) -> i32 {
    %c0_i32 = arith.constant 0 : i32
    %c0_i32_0 = arith.constant 0 : i32
    return %c0_i32 : i32
  }
  func.func @transform_1(%arg0: i32, %arg1: i32, %arg2: i32) -> (i32, i32) {
    %c0_i32 = arith.constant 0 : i32
    %c0_i32_0 = arith.constant 0 : i32
    %c0_i32_1 = arith.constant 0 : i32
    return %c0_i32, %c0_i32_0 : i32, i32
  }
  func.func @transform_2(%arg0: i32, %arg1: i32, %arg2: i32) -> (i32, i32) {
    %c0_i32 = arith.constant 0 : i32
    %c0_i32_0 = arith.constant 0 : i32
    %c0_i32_1 = arith.constant 0 : i32
    return %c0_i32, %c0_i32_0 : i32, i32
  }
  func.func @transform_3(%arg0: i32, %arg1: i32, %arg2: i32) -> (i32, i32) {
    %c0_i32 = arith.constant 0 : i32
    %c0_i32_0 = arith.constant 0 : i32
    %c0_i32_1 = arith.constant 0 : i32
    return %c0_i32, %c0_i32_0 : i32, i32
  }
  func.func @transform_4(%arg0: i32, %arg1: i32, %arg2: i32) -> (i32, i32) {
    %c0_i32 = arith.constant 0 : i32
    %c0_i32_0 = arith.constant 0 : i32
    %c0_i32_1 = arith.constant 0 : i32
    return %c0_i32, %c0_i32_0 : i32, i32
  }
  func.func @transform_5(%arg0: i32, %arg1: i32, %arg2: i32) -> (i32, i32) {
    %c0_i32 = arith.constant 0 : i32
    %c0_i32_0 = arith.constant 0 : i32
    %c0_i32_1 = arith.constant 0 : i32
    return %c0_i32, %c0_i32_0 : i32, i32
  }
  func.func @transform_6(%arg0: i32, %arg1: i32, %arg2: i32) -> (i32, i32) {
    %c0_i32 = arith.constant 0 : i32
    %c0_i32_0 = arith.constant 0 : i32
    %c0_i32_1 = arith.constant 0 : i32
    return %c0_i32, %c0_i32_0 : i32, i32
  }
  func.func @transform_7(%arg0: i32, %arg1: i32, %arg2: i32) -> (i32, i32, i32) {
    %c1_i32 = arith.constant 1 : i32
    %0 = arith.muli %arg1, %c1_i32 : i32
    %1 = arith.addi %0, %arg2 : i32
    %c0_i32 = arith.constant 0 : i32
    %c0_i32_0 = arith.constant 0 : i32
    return %arg0, %c0_i32, %1 : i32, i32, i32
  }
  func.func @transform_8(%arg0: i32, %arg1: i32, %arg2: i32) -> (i32, i32, i32) {
    %c1_i32 = arith.constant 1 : i32
    %0 = arith.muli %arg1, %c1_i32 : i32
    %1 = arith.addi %0, %arg2 : i32
    %c0_i32 = arith.constant 0 : i32
    %c0_i32_0 = arith.constant 0 : i32
    return %arg0, %c0_i32, %1 : i32, i32, i32
  }
  func.func @transform_9(%arg0: i32, %arg1: i32, %arg2: i32) -> (i32, i32, i32) {
    %c1_i32 = arith.constant 1 : i32
    %0 = arith.muli %arg1, %c1_i32 : i32
    %1 = arith.addi %0, %arg2 : i32
    %c0_i32 = arith.constant 0 : i32
    %c0_i32_0 = arith.constant 0 : i32
    return %arg0, %c0_i32, %1 : i32, i32, i32
  }
  func.func @transform_10(%arg0: i32, %arg1: i32, %arg2: i32) -> (i32, i32, i32) {
    %c1_i32 = arith.constant 1 : i32
    %0 = arith.muli %arg1, %c1_i32 : i32
    %1 = arith.addi %0, %arg2 : i32
    %c0_i32 = arith.constant 0 : i32
    %c0_i32_0 = arith.constant 0 : i32
    return %arg0, %c0_i32, %1 : i32, i32, i32
  }
  func.func @transform_11(%arg0: i32, %arg1: i32, %arg2: i32) -> (i32, i32, i32, i32, i32) {
    %c0_i32 = arith.constant 0 : i32
    %c0_i32_0 = arith.constant 0 : i32
    %c0_i32_1 = arith.constant 0 : i32
    %c0_i32_2 = arith.constant 0 : i32
    return %arg0, %arg1, %c0_i32, %c0_i32_0, %c0_i32_1 : i32, i32, i32, i32, i32
  }
}

</mosaic_0001>

<bundles_post_ra>
// kernel: tpu_custom_call.1
= control target key start
LH: loop header
LB: loop body
LE: loop exit
PB: predicated region body
PF: predicated region fallthrough
CT: control target
= control target key end

     0   :  { %s7346_s0 = inlined_call_operand.vmem [shape: f32[2], index: 0, kind: input, shape index: {}]   ;;  %s7347_s1 = inlined_call_operand.vmem [shape: bf16[8,4], index: 1, kind: input, shape index: {}]   ;;  %s7348_s2 = inlined_call_operand.vmem [shape: f32[8,1], index: 2, kind: input, shape index: {}]   ;;  %s7349_s3 = inlined_call_operand.vmem [shape: bf16[32,16], index: 3, kind: input, shape index: {}]   ;;  %s7350_s4 = inlined_call_operand.vmem [shape: f32[32,1], index: 4, kind: input, shape index: {}]   ;;  %s7351_s5 = inlined_call_operand.vmem [shape: bf16[4,32], index: 5, kind: input, shape index: {}]   ;;  %s7352_s6 = inlined_call_operand.vmem [shape: f32[4,1], index: 6, kind: input, shape index: {}]   ;;  %s7353_s7 = inlined_call_operand.hbm [shape: f32[2,4,4096], index: 7, kind: input, shape index: {}]   ;;  %s7354_s8 = inlined_call_operand.hbm [shape: f32[2,4,4096], index: 8, kind: input, shape index: {}]   ;;  %s7355_s9 = inlined_call_operand.hbm [shape: f32[2,4,4096], index: 9, kind: input, shape index: {}]   ;;  %s7356_s10 = inlined_call_operand.hbm [shape: f32[2,4,4096], index: 10, kind: output, shape index: {0}]   ;;  %s7357_s11 = inlined_call_operand.hbm [shape: f32[2,1,3,4,128], index: 11, kind: output, shape index: {1}]  }
   0x1   :  { %7369 = sst [smem:[#allocation26_spill]] %s7346_s0 }
   0x2   :  { %7370 = sst [smem:[#allocation27_spill]] %s7353_s7 }
   0x3   :  { %7371 = sst [smem:[#allocation28_spill]] %s7354_s8 }
   0x4   :  { %7372 = sst [smem:[#allocation29_spill]] %s7356_s10 }
   0x5   :  { %7373 = sst [smem:[#allocation30_spill]] %s7357_s11 }
   0x6   :  { %17 = vsyncpa [#allocation6], 0 }
   0x7   :  { %18 = vsyncpa [#allocation4], 0 }
   0x8   :  { %20 = vsyncpa [#allocation4 + $0x1], 0 }
   0x9   :  { %21 = vsyncpa [#allocation9], 0 }
   0xa   :  { %23 = vsyncpa [#allocation9 + $0x1], 0 }
   0xb   :  { %24 = vsyncpa [#allocation5], 0 }
   0xc   :  { %26 = vsyncpa [#allocation5 + $0x1], 0 }
   0xd   :  { %27 = vsyncpa [#allocation13], 0 }
   0xe   :  { %29 = vsyncpa [#allocation13 + $0x1], 0  ;;  %s5055_s17 = smov 0   ;;  %s5057_s18 = smov 0  }
   0xf   :  { %s5059_s19 = smov 0   ;;  %s5061_s20 = smov 0  }
  0x10   :  { %s5063_s21 = smov 0   ;;  %s5065_s22 = smov 0  }
  0x11 LB: > { %7374 = sst [smem:[#allocation19_spill]] %s4968_s17  ;;  %s54_s23 = sadd.s32 1, %s4984_s21  ;;  %s4988_s22 = sphi %s5065_s22, %s35_s22   ;;  %s4984_s21 = sphi %s5063_s21, %s7469_s21   ;;  %s4980_s20 = sphi %s5061_s20, %s7464_s20   ;;  %s4976_s19 = sphi %s5059_s19, %s7468_s19   ;;  %s4972_s18 = sphi %s5057_s18, %s7467_s18   ;;  %s4968_s17 = sphi %s5055_s17, %s7466_s17  }
  0x12   : > { %7375 = sst [smem:[#allocation20_spill]] %s4984_s21  ;;  %s212_s24 = sadd.s32 1, %s4976_s19 }
  0x13   : > { %7376 = sst [smem:[#allocation21_spill]] %s4988_s22  ;;  %p56_p0 = scmp.ge.s32.totalorder %s54_s23, 2 }
  0x14   : > { %p219_p1 = scmp.ne.s32.totalorder %s4976_s19, %s4972_s18  ;;  %p220_p2 = scmp.eq.s32.totalorder %s4988_s22, 0 }
  0x15   : > { %p4332_p3 = scmp.ge.s32.totalorder %s4988_s22, 2  ;;  %s7471_s23 = smov (%p56_p0, %s54_s23), 0 }
  0x16   : > { %7377 = sst [smem:[#allocation22_spill]] %s7471_s23  ;;  %p221_p4 = por %p220_p2, %p219_p1 }
  0x17   : > { %p4571_p5 = scmp.lt.s32.totalorder %s4988_s22, 2  ;;  %s207_s25 = ssub.s32 %s4984_s21, %s7471_s23 }
  0x18   : > { %s7358_s26 = sand.u32 1, %s4976_s19   ;;  %p210_p6 = scmp.eq.s32.totalorder %s207_s25, 0 }
  0x19   : > { %s5102_s27 = sshll.u32 %s7358_s26, 7  ;;  %s5105_s28 = sshll.u32 %s4984_s21, 7 }
  0x1a   : > { %p5107_p7 = pnand %p4571_p5, %p221_p4  ;;  %s418_s12 = sand.u32 1, %s4988_s22  }
  0x1b   : > { %s5112_s30 = scalar_select %p210_p6, %s4976_s19, %s212_s24  }
  0x1c   : > { %s7380_s8 = sld [smem:[#allocation28_spill]]  ;;  %s422_s16 = scalar_lea.vmem [#allocation8], %s5102_s27 }
  0x1d   : > { %7379 = sst [smem:[#allocation23_spill]] %s5112_s30  ;;  %s434_s25 = sshll.u32 %s422_s16, 4  ;;  %s435_s25 = int_to_ptr.vmem [resolvable:$true] %s434_s25 }
  0x1e   : > { %s5120_s23 = scalar_lea.sflag [#allocation9], %s418_s12  ;;  %s5126_s24 = sadd.s32 4294967295, %s4988_s22  }
  0x1f   : > { %s4329_s13 = sadd.s32 4294967294, %s4988_s22   ;;  %p225_p8 = scmp.ne.s32.totalorder %s4972_s18, %s4968_s17 }
  0x20   : > { %p226_p9 = scmp.eq.s32.totalorder %s5126_s24, 0  ;;  %p313_p10 = scmp.eq.s32.totalorder %s5126_s24, 1 }
  0x21   : > { %p319_p11 = scmp.eq.s32.totalorder %s4329_s13, 1  ;;  %p4330_p12 = scmp.ge.s32.totalorder %s4988_s22, 1 }
  0x22   : > { %s430_s15 = scalar_lea.hbm %s7380_s8, %s5105_s28  ;;  %p5136_p13 = por %p226_p9, %p225_p8 }
  0x23   : > { %s432_s26 = sshll.u32 %s430_s15, 4  ;;  %p5143_p0 = por %p313_p10, %p219_p1  ;;  %s433_s26 = int_to_ptr.hbm [resolvable:$true] %s432_s26 }
  0x24   : > { %4559 = dma.hbm_to_vmem [thread:$0]  (!%p5107_p7), %s433_s26, 2048, %s435_s25, %s5120_s23  }
  0x25   : > { %s7382_s26 = scalar_select %p5143_p0, 1, 0 }
  0x26   : > { %p5147_p2 = por %p319_p11, %p225_p8  ;;  %p354_p4 = scmp.lt.s32.totalorder %s4988_s22, 3 }
  0x27   : > { %7383 = sst [smem:[#allocation24_spill]] %s7382_s26  ;;  %s4990_s16 = smov [#allocation3]  }
  0x28   : > { %s7384_s14 = scalar_select %p5147_p2, 1, 0 }
  0x29   : > { %s7386_s0 = sld [smem:[#allocation26_spill]]  ;;  %p5155_p5 = pnand %p4330_p12, %p354_p4 }
  0x2a   : > { %7385 = sst [smem:[#allocation25_spill]] %s7384_s14  ;;  %s399_s14 = scalar_lea.vmem [#allocation7], %s5102_s27 }
  0x2b   : > { %p4549_p1 = pneg %p5155_p5  ;;  %s7388_s7 = sld [smem:[#allocation27_spill]] }
  0x2c   : > { %s411_s22 = sshll.u32 %s399_s14, 4  ;;  %s453_s8 = scalar_lea.hbm %s7355_s9, %s5105_s28  ;;  %s412_s22 = int_to_ptr.vmem [resolvable:$true] %s411_s22 }
  0x2d   : > { %p4550_p6 = pnand %p4549_p1, %p226_p9  ;;  %s445_s21 = scalar_lea.vmem [#allocation10], %s5102_s27 }
  0x2e   : > { %s455_s26 = sshll.u32 %s453_s8, 4  ;;  %s456_s26 = int_to_ptr.hbm [resolvable:$true] %s455_s26 }
  0x2f   : > { %s366_s25 = sshll.u32 %s7386_s0, 4  ;;  %s7389_s0 = sand.u32 1, %s4976_s19   ;;  %s367_s25 = int_to_ptr.vmem [resolvable:$true] %s366_s25 }
  0x30   : > { %4552 = dma.vmem_to_smem (!%p4550_p6), %s367_s25, 16, %s4990_s16, [#allocation6]  }
  0x31   : > { %s407_s30 = scalar_lea.hbm %s7388_s7, %s5105_s28  ;;  %s396_s17 = scalar_lea.sflag [#allocation4], %s7389_s0 }
  0x32   : > { %s409_s15 = sshll.u32 %s407_s30, 4  ;;  %s457_s7 = sshll.u32 %s445_s21, 4  ;;  %s410_s15 = int_to_ptr.hbm [resolvable:$true] %s409_s15  ;;  %s458_s7 = int_to_ptr.vmem [resolvable:$true] %s457_s7 }
  0x33   : > { %4556 = dma.hbm_to_vmem [thread:$0]  (!%p5107_p7), %s410_s15, 2048, %s412_s22, %s396_s17  }
  0x34   : > { %4562 = dma.hbm_to_vmem [thread:$0]  (!%p5107_p7), %s456_s26, 2048, %s458_s7, %s5120_s23  }
  0x35   : > { %466 = sbr.rel (%p5155_p5) target bundleno = 923 (0x39b), region = 60 }
  0x3a   : > { %4947 = dma.done.wait (%p226_p9), [#allocation6], 16  }
  0x3b   : > { %4949 = vsyncadd (%p226_p9), [#allocation6], 4294967280  ;;  %s5187_s0 = sand.u32 1, %s4972_s18  }
  0x3c   : > { %s5190_s10 = sshll.u32 %s5187_s0, 7  ;;  %s474_s11 = scalar_lea.sflag [#allocation4], %s5187_s0 }
  0x3d   : > { %s5194_s7 = scalar_lea.vmem [#allocation7], %s5190_s10 }
  0x3e   : > { %4951 = dma.done.wait (%p5136_p13), %s474_s11, 2048  }
  0x3f   : > { %4953 = vsyncadd (%p5136_p13), %s474_s11, 4294965248  ;;  %s483_s17 = sand.u32 1, %s5126_s24   ;;  %s5202_s23 = scalar_lea.vmem [#allocation8], %s5190_s10 }
  0x40   : > { %s484_s22 = scalar_lea.sflag [#allocation9], %s483_s17 }
  0x41   : > { %4955 = dma.done.wait (%p5136_p13), %s484_s22, 4096  }
  0x42   : > { %4957 = vsyncadd (%p5136_p13), %s484_s22, 4294963200  ;;  %s5209_s27 = scalar_lea.vmem [#allocation10], %s5190_s10 }
  0x43   : > { %503 = sfence }
  0x44   : > { %v5212_v0 = vld [vmem:[%s5202_s23] sm:$0xff]  ;;  %v5215_v1 = vld [vmem:[%s5202_s23 + $0x8] sm:$0xff]  ;;  %v794_v2 = vld [vmem:[%s7348_s2] sm:$0xff]  ;;  %v4991_v5 = vmov 0   ;;  %vm804_vm0 = vcmask 1041408   ;;  %vm800_vm1 = vcmask 31744  }
  0x45   : > { %679 = vst [vmem:[#allocation1] ss:$2 sm:$0xff] %v5212_v0  ;;  %v5222_v3 = vld [vmem:[%s5202_s23 + $0x10] sm:$0xff]  ;;  %v5225_v4 = vld [vmem:[%s5202_s23 + $0x18] sm:$0xff]  ;;  %4627 = vset.pattern.permute.xlu0 %v4991_v5  ;;  %4628 = vset.pattern.permute.xlu1 %v4991_v5  ;;  %v2306_v6 = vld [vmem:[%s7350_s4 + $0x10] sm:$0xff]  ;;  %s562_s14 = sld [smem:[#allocation3]] }
  0x46   : > { %681 = vst [vmem:[#allocation1 + $0x10] ss:$2 sm:$0xff] %v5215_v1  ;;  %797 = vperm.xlu0 %4627, %v794_v2   ;;  %4629 = vset.pattern.permute.xlu2 %v4991_v5  ;;  %v5234_v9 = vld [vmem:[%s5202_s23 + $0x20] sm:$0xff]  ;;  %v5239_v16 = vld [vmem:[%s7347_s1] sm:$0xf]  ;;  %v5244_v24 = vld [vmem:[%s5202_s23 + $0x28] sm:$0xff] }
  0x47   : > { %683 = vst [vmem:[#allocation1 + $0x20] ss:$2 sm:$0xff] %v5222_v3  ;;  %v5263_v34 = vld [vmem:[%s5202_s23 + $0x30] sm:$0xff]  ;;  %v5266_v35 = vld [vmem:[%s5202_s23 + $0x38] sm:$0xff]  ;;  %v5287_v60 = vld [vmem:[%s5202_s23 + $0x40] sm:$0xff]  ;;  %s4348_s25 = sld [smem:[#allocation3 + $0x1]] }
  0x48   : > { %685 = vst [vmem:[#allocation1 + $0x30] ss:$2 sm:$0xff] %v5225_v4  ;;  %v5290_v61 = vld [vmem:[%s5202_s23 + $0x48] sm:$0xff]  ;;  %vm2338_vm7 = vcmask 130048   ;;  %s6946_s15 = scalar_lea.vmem [#allocation11], %s5190_s10  ;;  %s4533_s10 = smul.u32 12, %s5187_s0 }
  0x49   : > { %s4532_s8 = sshll.u32 %s4980_s20, 7  ;;  %s7457_s22 = sld [smem:[#allocation29_spill]] }
  0x4a   : > { %s7260_s16 = scalar_lea.vmem [#allocation12], %s4533_s10  ;;  %s4118_s29 = sshll.u32 %s6946_s15, 4  ;;  %s4119_s29 = int_to_ptr.vmem [resolvable:$true] %s4118_s29 }
  0x4b   : > { %s4097_s24 = scalar_lea.sflag [#allocation5], %s5187_s0 }
  0x4c   : > { %v686_v7 = vld.sshfl [vmem:[#allocation1] sm:$0xff pattern:$0x75316420]  ;;  %v687_v8 = vld.sshfl [vmem:[#allocation1 + $0x8] sm:$0xff pattern:$0x75316420] }
  0x4d   : > { %v762_v10 = vpack.c.bf16 %v686_v7, %v686_v7  ;;  %v763_v11 = vpack.c.bf16 %v687_v8, %v687_v8  ;;  %v688_v12 = vld.sshfl [vmem:[#allocation1 + $0x10] sm:$0xff pattern:$0x75316420]  ;;  %v689_v13 = vld.sshfl [vmem:[#allocation1 + $0x18] sm:$0xff pattern:$0x75316420] }
  0x4e   : > { %v764_v14 = vpack.c.bf16 %v688_v12, %v688_v12  ;;  %v765_v15 = vpack.c.bf16 %v689_v13, %v689_v13  ;;  %v690_v17 = vld.sshfl [vmem:[#allocation1 + $0x20] sm:$0xff pattern:$0x75316420]  ;;  %v691_v18 = vld.sshfl [vmem:[#allocation1 + $0x28] sm:$0xff pattern:$0x75316420]  ;;  %2320 = vperm.xlu0 %4627, %v2306_v6  }
  0x4f   : > { %v806_v19 = vsel %vm804_vm0, %v762_v10, 0  ;;  %v809_v20 = vsel %vm804_vm0, %v763_v11, 0  ;;  %v766_v21 = vpack.c.bf16 %v690_v17, %v690_v17  ;;  %v767_v22 = vpack.c.bf16 %v691_v18, %v691_v18  ;;  %v692_v23 = vld.sshfl [vmem:[#allocation1 + $0x30] sm:$0xff pattern:$0x75316420]  ;;  %v5310_v17 = vld [vmem:[%s5202_s23 + $0x58] sm:$0xff]  ;;  %s4116_s28 = scalar_lea.hbm %s7457_s22, %s4532_s8 }
  0x50   : > { %908 = vmatpush.bf16.msra.mxu0 %v806_v19  ;;  %921 = vmatpush.bf16.msra.mxu1 %v809_v20  ;;  %v812_v25 = vsel %vm804_vm0, %v764_v14, 0  ;;  %v815_v26 = vsel %vm804_vm0, %v765_v15, 0  ;;  %v768_v27 = vpack.c.bf16 %v692_v23, %v692_v23  ;;  %v693_v28 = vld.sshfl [vmem:[#allocation1 + $0x38] sm:$0xff pattern:$0x75316420]  ;;  %s4120_s30 = sshll.u32 %s4116_s28, 4  ;;  %s4121_s30 = int_to_ptr.hbm [resolvable:$true] %s4120_s30 }
  0x51   : > { %934 = vmatpush.bf16.msra.mxu2 %v812_v25  ;;  %947 = vmatpush.bf16.msra.mxu3 %v815_v26  ;;  %v818_v29 = vsel %vm804_vm0, %v766_v21, 0  ;;  %v821_v30 = vsel %vm804_vm0, %v767_v22, 0  ;;  %v769_v31 = vpack.c.bf16 %v693_v28, %v693_v28  ;;  %694 = vst [vmem:[#allocation1] ss:$2 sm:$0xff] %v5234_v9  ;;  %v5307_v15 = vld [vmem:[%s5202_s23 + $0x50] sm:$0xff]  ;;  %s4880_s12 = sshra.s32 %s4121_s30, 4  ;;  %s4881_s12 = int_to_ptr.hbm [resolvable:$true] %s4880_s12 }
  0x52   : > { %v824_v32 = vsel %vm804_vm0, %v768_v27, 0  ;;  %695 = vst [vmem:[#allocation1 + $0x10] ss:$2 sm:$0xff] %v5244_v24 }
  0x53   : > { %4349 = vmatmul.msk.bf16.vlgmr.msra.gmra.mxu0 %vm800_vm1, %v5239_v16  ;;  %4350 = vmatmul.msk.bf16.vlgmr.msra.gmra.mxu1 %vm800_vm1, %v5239_v16  ;;  %v827_v33 = vsel %vm804_vm0, %v769_v31, 0  ;;  %696 = vst [vmem:[#allocation1 + $0x20] ss:$2 sm:$0xff] %v5263_v34  ;;  %v5327_v31 = vld [vmem:[%s5202_s23 + $0x60] sm:$0xff] }
  0x54   : > { %960 = vmatpush.bf16.msrb.mxu0 %v818_v29  ;;  %973 = vmatpush.bf16.msrb.mxu1 %v821_v30  ;;  %697 = vst [vmem:[#allocation1 + $0x30] ss:$2 sm:$0xff] %v5266_v35 }
  0x55   : > { %4351 = vmatmul.msk.bf16.vlgmr.msra.gmra.mxu2 %vm800_vm1, %v5239_v16  ;;  %4352 = vmatmul.msk.bf16.vlgmr.msra.gmra.mxu3 %vm800_vm1, %v5239_v16 }
  0x56   : > { %986 = vmatpush.bf16.msrb.mxu2 %v824_v32  ;;  %999 = vmatpush.bf16.msrb.mxu3 %v827_v33  ;;  %v5330_v32 = vld [vmem:[%s5202_s23 + $0x68] sm:$0xff] }
  0x58   : > { %v698_v36 = vld.sshfl [vmem:[#allocation1] sm:$0xff pattern:$0x75316420]  ;;  %v699_v37 = vld.sshfl [vmem:[#allocation1 + $0x8] sm:$0xff pattern:$0x75316420] }
  0x59   : > { %v770_v38 = vpack.c.bf16 %v698_v36, %v698_v36  ;;  %v771_v39 = vpack.c.bf16 %v699_v37, %v699_v37  ;;  %v700_v40 = vld.sshfl [vmem:[#allocation1 + $0x10] sm:$0xff pattern:$0x75316420]  ;;  %v701_v41 = vld.sshfl [vmem:[#allocation1 + $0x18] sm:$0xff pattern:$0x75316420] }
  0x5a   : > { %v772_v42 = vpack.c.bf16 %v700_v40, %v700_v40  ;;  %v773_v43 = vpack.c.bf16 %v701_v41, %v701_v41  ;;  %v702_v48 = vld.sshfl [vmem:[#allocation1 + $0x20] sm:$0xff pattern:$0x75316420]  ;;  %v703_v49 = vld.sshfl [vmem:[#allocation1 + $0x28] sm:$0xff pattern:$0x75316420] }
  0x5b   : > { %v830_v44 = vsel %vm804_vm0, %v770_v38, 0  ;;  %v833_v45 = vsel %vm804_vm0, %v771_v39, 0  ;;  %v704_v50 = vld.sshfl [vmem:[#allocation1 + $0x30] sm:$0xff pattern:$0x75316420]  ;;  %v774_v51 = vpack.c.bf16 %v702_v48, %v702_v48  ;;  %v775_v52 = vpack.c.bf16 %v703_v49, %v703_v49  ;;  %v5351_v49 = vld [vmem:[%s5202_s23 + $0x70] sm:$0xff] }
  0x5c   : > { %1012 = vmatpush.bf16.msra.mxu0 %v830_v44  ;;  %1025 = vmatpush.bf16.msra.mxu1 %v833_v45  ;;  %v836_v46 = vsel %vm804_vm0, %v772_v42, 0  ;;  %v839_v47 = vsel %vm804_vm0, %v773_v43, 0  ;;  %v705_v53 = vld.sshfl [vmem:[#allocation1 + $0x38] sm:$0xff pattern:$0x75316420]  ;;  %v776_v54 = vpack.c.bf16 %v704_v50, %v704_v50  ;;  %v5354_v50 = vld [vmem:[%s5202_s23 + $0x78] sm:$0xff]  ;;  %s7458_s23 = smov %s7457_s22 }
  0x5d   : > { %1038 = vmatpush.bf16.msra.mxu2 %v836_v46  ;;  %1051 = vmatpush.bf16.msra.mxu3 %v839_v47  ;;  %v777_v55 = vpack.c.bf16 %v705_v53, %v705_v53  ;;  %v842_v56 = vsel %vm804_vm0, %v774_v51, 0  ;;  %v845_v57 = vsel %vm804_vm0, %v775_v52, 0  ;;  %706 = vst [vmem:[#allocation1] ss:$2 sm:$0xff] %v5287_v60  ;;  %p4887_p10 = scmp.lt.s32.totalorder %s4881_s12, %s7458_s23 }
  0x5e   : > { %v848_v58 = vsel %vm804_vm0, %v776_v54, 0  ;;  %707 = vst [vmem:[#allocation1 + $0x10] ss:$2 sm:$0xff] %v5290_v61 }
  0x5f   : > { %v851_v59 = vsel %vm804_vm0, %v777_v55, 0  ;;  %708 = vst [vmem:[#allocation1 + $0x20] ss:$2 sm:$0xff] %v5307_v15 }
  0x60   : > { %709 = vst [vmem:[#allocation1 + $0x30] ss:$2 sm:$0xff] %v5310_v17 }
  0x63   : > { %4353 = vmatmul.msk.bf16.vlgmr.msrb.gmra.mxu0 %vm800_vm1, %v5239_v16  ;;  %4354 = vmatmul.msk.bf16.vlgmr.msrb.gmra.mxu1 %vm800_vm1, %v5239_v16 }
  0x64   : > { %1064 = vmatpush.bf16.msrb.mxu0 %v842_v56  ;;  %1077 = vmatpush.bf16.msrb.mxu1 %v845_v57  ;;  %v710_v62 = vld.sshfl [vmem:[#allocation1] sm:$0xff pattern:$0x75316420]  ;;  %v711_v63 = vld.sshfl [vmem:[#allocation1 + $0x8] sm:$0xff pattern:$0x75316420] }
  0x65   : > { %4355 = vmatmul.msk.bf16.vlgmr.msrb.gmra.mxu2 %vm800_vm1, %v5239_v16  ;;  %4356 = vmatmul.msk.bf16.vlgmr.msrb.gmra.mxu3 %vm800_vm1, %v5239_v16  ;;  %v712_v2 = vld.sshfl [vmem:[#allocation1 + $0x10] sm:$0xff pattern:$0x75316420]  ;;  %v713_v5 = vld.sshfl [vmem:[#allocation1 + $0x18] sm:$0xff pattern:$0x75316420]  ;;  %v778_v6 = vpack.c.bf16 %v710_v62, %v710_v62  ;;  %v779_v7 = vpack.c.bf16 %v711_v63, %v711_v63 }
  0x66   : > { %1090 = vmatpush.bf16.msrb.mxu2 %v848_v58  ;;  %1103 = vmatpush.bf16.msrb.mxu3 %v851_v59  ;;  %v780_v8 = vpack.c.bf16 %v712_v2, %v712_v2  ;;  %v781_v10 = vpack.c.bf16 %v713_v5, %v713_v5  ;;  %v714_v18 = vld.sshfl [vmem:[#allocation1 + $0x20] sm:$0xff pattern:$0x75316420]  ;;  %v715_v19 = vld.sshfl [vmem:[#allocation1 + $0x28] sm:$0xff pattern:$0x75316420] }
  0x67   : > { %v854_v11 = vsel %vm804_vm0, %v778_v6, 0  ;;  %v857_v12 = vsel %vm804_vm0, %v779_v7, 0  ;;  %v716_v20 = vld.sshfl [vmem:[#allocation1 + $0x30] sm:$0xff pattern:$0x75316420]  ;;  %v782_v22 = vpack.c.bf16 %v714_v18, %v714_v18  ;;  %v783_v23 = vpack.c.bf16 %v715_v19, %v715_v19 }
  0x68   : > { %v860_v13 = vsel %vm804_vm0, %v780_v8, 0  ;;  %v863_v14 = vsel %vm804_vm0, %v781_v10, 0  ;;  %v717_v21 = vld.sshfl [vmem:[#allocation1 + $0x38] sm:$0xff pattern:$0x75316420]  ;;  %v784_v25 = vpack.c.bf16 %v716_v20, %v716_v20  ;;  %v5397_v10 = vstv %s562_s14  ;;  %s4886_s14 = scalar_lea.hbm %s7458_s23, 256 }
  0x69   : > { %v785_v26 = vpack.c.bf16 %v717_v21, %v717_v21  ;;  %v866_v27 = vsel %vm804_vm0, %v782_v22, 0  ;;  %v869_v28 = vsel %vm804_vm0, %v783_v23, 0  ;;  %718 = vst [vmem:[#allocation1] ss:$2 sm:$0xff] %v5327_v31  ;;  %v5406_v21 = vld [vmem:[%s5194_s7 + $0x8] sm:$0xff] }
  0x6a   : > { %v872_v29 = vsel %vm804_vm0, %v784_v25, 0  ;;  %719 = vst [vmem:[#allocation1 + $0x10] ss:$2 sm:$0xff] %v5330_v32  ;;  %v597_v22 = vld [vmem:[%s5209_s27 + $0x8] sm:$0xff]  ;;  %v614_v23 = vmul.f32 %v5397_v10, %v5406_v21 }
  0x6b   : > { %v875_v30 = vsel %vm804_vm0, %v785_v26, 0  ;;  %720 = vst [vmem:[#allocation1 + $0x20] ss:$2 sm:$0xff] %v5351_v49 }
  0x6c   : > { %721 = vst [vmem:[#allocation1 + $0x30] ss:$2 sm:$0xff] %v5354_v50 }
  0x70   : > { %v722_v33 = vld.sshfl [vmem:[#allocation1] sm:$0xff pattern:$0x75316420]  ;;  %v723_v36 = vld.sshfl [vmem:[#allocation1 + $0x8] sm:$0xff pattern:$0x75316420] }
  0x71   : > { %1957 = vst [vmem:[#allocation1] ss:$2 sm:$0xff] %v5212_v0  ;;  %v724_v37 = vld.sshfl [vmem:[#allocation1 + $0x10] sm:$0xff pattern:$0x75316420]  ;;  %v786_v38 = vpack.c.bf16 %v722_v33, %v722_v33  ;;  %v787_v39 = vpack.c.bf16 %v723_v36, %v723_v36 }
  0x72   : > { %v725_v40 = vld.sshfl [vmem:[#allocation1 + $0x18] sm:$0xff pattern:$0x75316420]  ;;  %v788_v41 = vpack.c.bf16 %v724_v37, %v724_v37  ;;  %v727_v51 = vld.sshfl [vmem:[#allocation1 + $0x28] sm:$0xff pattern:$0x75316420] }
  0x73   : > { %4357 = vmatmul.msk.bf16.vlgmr.msra.gmra.mxu0 %vm800_vm1, %v5239_v16  ;;  %4358 = vmatmul.msk.bf16.vlgmr.msra.gmra.mxu1 %vm800_vm1, %v5239_v16  ;;  %1959 = vst [vmem:[#allocation1 + $0x10] ss:$2 sm:$0xff] %v5215_v1  ;;  %v789_v42 = vpack.c.bf16 %v725_v40, %v725_v40  ;;  %v878_v43 = vsel %vm804_vm0, %v786_v38, 0  ;;  %v881_v44 = vsel %vm804_vm0, %v787_v39, 0 }
  0x74   : > { %1116 = vmatpush.bf16.msra.mxu0 %v854_v11  ;;  %1129 = vmatpush.bf16.msra.mxu1 %v857_v12  ;;  %v884_v0 = vsel %vm804_vm0, %v788_v41, 0  ;;  %v728_v53 = vld.sshfl [vmem:[#allocation1 + $0x30] sm:$0xff pattern:$0x75316420]  ;;  %v5399_v11 = vstv %s4348_s25 }
  0x75   : > { %4359 = vmatmul.msk.bf16.vlgmr.msra.gmra.mxu2 %vm800_vm1, %v5239_v16  ;;  %4360 = vmatmul.msk.bf16.vlgmr.msra.gmra.mxu3 %vm800_vm1, %v5239_v16  ;;  %v887_v45 = vsel %vm804_vm0, %v789_v42, 0  ;;  %v729_v54 = vld.sshfl [vmem:[#allocation1 + $0x38] sm:$0xff pattern:$0x75316420]  ;;  %v792_v55 = vpack.c.bf16 %v728_v53, %v728_v53  ;;  %v631_v25 = vmul.f32 %v5399_v11, %v597_v22 }
  0x76   : > { %1142 = vmatpush.bf16.msra.mxu2 %v860_v13  ;;  %1155 = vmatpush.bf16.msra.mxu3 %v863_v14  ;;  %1963 = vst [vmem:[#allocation1 + $0x30] ss:$2 sm:$0xff] %v5225_v4  ;;  %v793_v58 = vpack.c.bf16 %v729_v54, %v729_v54  ;;  %v5424_v53 = vld [vmem:[%s5194_s7 + $0x10] sm:$0xff] }
  0x77   : > { %v647_v26 = vadd.f32 %v631_v25, %v614_v23  ;;  %v598_v54 = vld [vmem:[%s5209_s27 + $0x10] sm:$0xff] }
  0x78   : > { %v1964_v1 = vld.sshfl [vmem:[#allocation1] sm:$0xff pattern:$0x75316420]  ;;  %v1965_v46 = vld.sshfl [vmem:[#allocation1 + $0x8] sm:$0xff pattern:$0x75316420] }
  0x79   : > { %1972 = vst [vmem:[#allocation1] ss:$2 sm:$0xff] %v5234_v9  ;;  %v726_v9 = vld.sshfl [vmem:[#allocation1 + $0x20] sm:$0xff pattern:$0x75316420]  ;;  %v899_v59 = vsel %vm804_vm0, %v793_v58, 0 }
  0x7a   : > { %2040 = vst [vmem:[#allocation2 + $0x148] sm:$0xf] %v1964_v1  ;;  %v1966_v47 = vld.sshfl [vmem:[#allocation1 + $0x10] sm:$0xff pattern:$0x75316420]  ;;  %v790_v52 = vpack.c.bf16 %v726_v9, %v726_v9 }
  0x7b   : > { %2041 = vst [vmem:[#allocation2 + $0x1d0] sm:$0xf] %v1965_v46  ;;  %v1967_v48 = vld.sshfl [vmem:[#allocation1 + $0x18] sm:$0xff pattern:$0x75316420] }
  0x7c   : > { %1973 = vst [vmem:[#allocation1 + $0x10] ss:$2 sm:$0xff] %v5244_v24  ;;  %v791_v24 = vpack.c.bf16 %v727_v51, %v727_v51  ;;  %v890_v56 = vsel %vm804_vm0, %v790_v52, 0 }
  0x7d   : > { %2042 = vst [vmem:[#allocation2 + $0x100] sm:$0xf] %v1966_v47  ;;  %v1970_v2 = vld.sshfl [vmem:[#allocation1 + $0x30] sm:$0xff pattern:$0x75316420] }
  0x7e   : > { %2043 = vst [vmem:[#allocation2 + $0xc8] sm:$0xf] %v1967_v48  ;;  %v893_v57 = vsel %vm804_vm0, %v791_v24, 0  ;;  %v1971_v5 = vld.sshfl [vmem:[#allocation1 + $0x38] sm:$0xff pattern:$0x75316420] }
  0x7f   : > { %1961 = vst [vmem:[#allocation1 + $0x20] ss:$2 sm:$0xff] %v5222_v3  ;;  %v896_v3 = vsel %vm804_vm0, %v792_v55, 0 }
  0x80   : > { %1975 = vst [vmem:[#allocation1 + $0x30] ss:$2 sm:$0xff] %v5266_v35  ;;  %v1976_v4 = vld.sshfl [vmem:[#allocation1] sm:$0xff pattern:$0x75316420] }
  0x81   : > { %2046 = vst [vmem:[#allocation2 + $0x20] sm:$0xf] %v1970_v2  ;;  %v615_v2 = vmul.f32 %v5397_v10, %v5424_v53 }
  0x82   : > { %2047 = vst [vmem:[#allocation2 + $0x128] sm:$0xf] %v1971_v5  ;;  %v632_v5 = vmul.f32 %v5399_v11, %v598_v54 }
  0x83   : > { %4361 = vmatmul.msk.bf16.vlgmr.msrb.gmra.mxu0 %vm800_vm1, %v5239_v16  ;;  %4362 = vmatmul.msk.bf16.vlgmr.msrb.gmra.mxu1 %vm800_vm1, %v5239_v16  ;;  %2048 = vst [vmem:[#allocation2 + $0x1a0] sm:$0xf] %v1976_v4  ;;  %v1978_v35 = vld.sshfl [vmem:[#allocation1 + $0x10] sm:$0xff pattern:$0x75316420] }
  0x84   : > { %1168 = vmatpush.bf16.msrb.mxu0 %v866_v27  ;;  %1181 = vmatpush.bf16.msrb.mxu1 %v869_v28  ;;  %v1979_v6 = vld.sshfl [vmem:[#allocation1 + $0x18] sm:$0xff pattern:$0x75316420]  ;;  %2050 = vst [vmem:[#allocation2 + $0xe8] sm:$0xf] %v1978_v35 }
  0x85   : > { %4363 = vmatmul.msk.bf16.vlgmr.msrb.gmra.mxu2 %vm800_vm1, %v5239_v16  ;;  %4364 = vmatmul.msk.bf16.vlgmr.msrb.gmra.mxu3 %vm800_vm1, %v5239_v16  ;;  %1985 = vst [vmem:[#allocation1 + $0x10] ss:$2 sm:$0xff] %v5290_v61  ;;  %v596_v61 = vld [vmem:[%s5209_s27] sm:$0xff] }
  0x86   : > { %1194 = vmatpush.bf16.msrb.mxu2 %v872_v29  ;;  %1207 = vmatpush.bf16.msrb.mxu3 %v875_v30  ;;  %v1968_v62 = vld.sshfl [vmem:[#allocation1 + $0x20] sm:$0xff pattern:$0x75316420]  ;;  %v1969_v63 = vld.sshfl [vmem:[#allocation1 + $0x28] sm:$0xff pattern:$0x75316420]  ;;  %v630_v13 = vmul.f32 %v5399_v11, %v596_v61 }
  0x87   : > { %1974 = vst [vmem:[#allocation1 + $0x20] ss:$2 sm:$0xff] %v5263_v34  ;;  %v1977_v34 = vld.sshfl [vmem:[#allocation1 + $0x8] sm:$0xff pattern:$0x75316420] }
  0x88   : > { %2044 = vst [vmem:[#allocation2 + $0x40] sm:$0xf] %v1968_v62 }
  0x89   : > { %2045 = vst [vmem:[#allocation2 + $0x1f8] sm:$0xf] %v1969_v63 }
  0x8a   : > { %1984 = vst [vmem:[#allocation1] ss:$2 sm:$0xff] %v5287_v60  ;;  %v5394_v60 = vld [vmem:[%s5194_s7] sm:$0xff] }
  0x8b   : > { %2049 = vst [vmem:[#allocation2 + $0x1f0] sm:$0xf] %v1977_v34  ;;  %v613_v12 = vmul.f32 %v5397_v10, %v5394_v60 }
  0x8c   : > { %2051 = vst [vmem:[#allocation2 + $0x78] sm:$0xf] %v1979_v6  ;;  %v1990_v14 = vld.sshfl [vmem:[#allocation1 + $0x10] sm:$0xff pattern:$0x75316420] }
  0x8d   : > { %v1991_v18 = vld.sshfl [vmem:[#allocation1 + $0x18] sm:$0xff pattern:$0x75316420]  ;;  %2058 = vst [vmem:[#allocation2 + $0xa8] sm:$0xf] %v1990_v14 }
  0x8e   : > { %1997 = vst [vmem:[#allocation1 + $0x10] ss:$2 sm:$0xff] %v5330_v32  ;;  %v1980_v38 = vld.sshfl [vmem:[#allocation1 + $0x20] sm:$0xff pattern:$0x75316420] }
  0x8f   : > { %2059 = vst [vmem:[#allocation2 + $0x1c8] sm:$0xf] %v1991_v18  ;;  %v1981_v39 = vld.sshfl [vmem:[#allocation1 + $0x28] sm:$0xff pattern:$0x75316420]  ;;  %v648_v18 = vadd.f32 %v632_v5, %v615_v2 }
  0x90   : > { %1986 = vst [vmem:[#allocation1 + $0x20] ss:$2 sm:$0xff] %v5307_v15 }
  0x91   : > { %v1988_v7 = vld.sshfl [vmem:[#allocation1] sm:$0xff pattern:$0x75316420]  ;;  %v1989_v8 = vld.sshfl [vmem:[#allocation1 + $0x8] sm:$0xff pattern:$0x75316420] }
  0x92   : > { %1996 = vst [vmem:[#allocation1] ss:$2 sm:$0xff] %v5327_v31 }
  0x93   : > { %4365 = vmatmul.msk.bf16.vlgmr.msra.gmra.mxu0 %vm800_vm1, %v5239_v16  ;;  %4366 = vmatmul.msk.bf16.vlgmr.msra.gmra.mxu1 %vm800_vm1, %v5239_v16  ;;  %2056 = vst [vmem:[#allocation2 + $0xb8] sm:$0xf] %v1988_v7 }
  0x94   : > { %1220 = vmatpush.bf16.msra.mxu0 %v878_v43  ;;  %1233 = vmatpush.bf16.msra.mxu1 %v881_v44  ;;  %2057 = vst [vmem:[#allocation2 + $0x88] sm:$0xf] %v1989_v8 }
  0x95   : > { %4367 = vmatmul.msk.bf16.vlgmr.msra.gmra.mxu2 %vm800_vm1, %v5239_v16  ;;  %4368 = vmatmul.msk.bf16.vlgmr.msra.gmra.mxu3 %vm800_vm1, %v5239_v16  ;;  %v2002_v28 = vld.sshfl [vmem:[#allocation1 + $0x10] sm:$0xff pattern:$0x75316420]  ;;  %v2003_v29 = vld.sshfl [vmem:[#allocation1 + $0x18] sm:$0xff pattern:$0x75316420] }
  0x96   : > { %1246 = vmatpush.bf16.msra.mxu2 %v884_v0  ;;  %1259 = vmatpush.bf16.msra.mxu3 %v887_v45  ;;  %2091 = vst [vmem:[#allocation1 + $0x11] ss:$2 sm:$0xff] %v647_v26 }
  0x97   : > { %2066 = vst [vmem:[#allocation2 + $0xc0] sm:$0xf] %v2002_v28  ;;  %v1992_v55 = vld.sshfl [vmem:[#allocation1 + $0x20] sm:$0xff pattern:$0x75316420] }
  0x98   : > { %2067 = vst [vmem:[#allocation2 + $0x1c0] sm:$0xf] %v2003_v29 }
  0x99   : > { %v2000_v19 = vld.sshfl [vmem:[#allocation1] sm:$0xff pattern:$0x75316420]  ;;  %v2001_v20 = vld.sshfl [vmem:[#allocation1 + $0x8] sm:$0xff pattern:$0x75316420] }
  0x9a   : > { %2064 = vst [vmem:[#allocation2 + $0x198] sm:$0xf] %v2000_v19  ;;  %v599_v19 = vld [vmem:[%s5209_s27 + $0x18] sm:$0xff] }
  0x9b   : > { %2065 = vst [vmem:[#allocation2 + $0x38] sm:$0xf] %v2001_v20 }
  0x9c   : > { %2052 = vst [vmem:[#allocation2 + $0x70] sm:$0xf] %v1980_v38  ;;  %v633_v38 = vmul.f32 %v5399_v11, %v599_v19 }
  0x9d   : > { %v2098_v44 = vld.sshfl [vmem:[#allocation1 + $0x10] sm:$0xff pattern:$0x75316420]  ;;  %v2099_v0 = vld.sshfl [vmem:[#allocation1 + $0x18] sm:$0xff pattern:$0x75316420] }
  0x9e   : > { %2174 = vst [vmem:[#allocation2 + $0x100] sm:$0xf0] %v2098_v44 }
  0x9f   : > { %2175 = vst [vmem:[#allocation2 + $0xc8] sm:$0xf0] %v2099_v0 }
  0xa0   : > { %2053 = vst [vmem:[#allocation2 + $0x90] sm:$0xf] %v1981_v39 }
  0xa1   : > { %2060 = vst [vmem:[#allocation2 + $0x170] sm:$0xf] %v1992_v55 }
  0xa3   : > { %4369 = vmatmul.msk.bf16.vlgmr.msrb.gmra.mxu0 %vm800_vm1, %v5239_v16  ;;  %4370 = vmatmul.msk.bf16.vlgmr.msrb.gmra.mxu1 %vm800_vm1, %v5239_v16 }
  0xa4   : > { %1272 = vmatpush.bf16.msrb.mxu0 %v890_v56  ;;  %1285 = vmatpush.bf16.msrb.mxu1 %v893_v57  ;;  %v1993_v56 = vld.sshfl [vmem:[#allocation1 + $0x28] sm:$0xff pattern:$0x75316420]  ;;  %v1982_v57 = vld.sshfl [vmem:[#allocation1 + $0x30] sm:$0xff pattern:$0x75316420] }
  0xa5   : > { %4371 = vmatmul.msk.bf16.vlgmr.msrb.gmra.mxu2 %vm800_vm1, %v5239_v16  ;;  %4372 = vmatmul.msk.bf16.vlgmr.msrb.gmra.mxu3 %vm800_vm1, %v5239_v16  ;;  %1998 = vst [vmem:[#allocation1 + $0x20] ss:$2 sm:$0xff] %v5351_v49 }
  0xa6   : > { %1298 = vmatpush.bf16.msrb.mxu2 %v896_v3  ;;  %1311 = vmatpush.bf16.msrb.mxu3 %v899_v59  ;;  %v1983_v59 = vld.sshfl [vmem:[#allocation1 + $0x38] sm:$0xff pattern:$0x75316420]  ;;  %2061 = vst [vmem:[#allocation2 + $0x178] sm:$0xf] %v1993_v56  ;;  %v5486_v56 = vld [vmem:[%s5194_s7 + $0x20] sm:$0xff] }
  0xa7   : > { %1987 = vst [vmem:[#allocation1 + $0x30] ss:$2 sm:$0xff] %v5310_v17  ;;  %v617_v5 = vmul.f32 %v5397_v10, %v5486_v56 }
  0xa8   : > { %2054 = vst [vmem:[#allocation2 + $0x1d8] sm:$0xf] %v1982_v57 }
  0xa9   : > { %2055 = vst [vmem:[#allocation2 + $0xd0] sm:$0xf] %v1983_v59 }
  0xb3   : > { %4373 = vmatmul.msk.bf16.vlgmr.msra.gmra.mxu0 %vm800_vm1, %v5239_v16  ;;  %4374 = vmatmul.msk.bf16.vlgmr.msra.gmra.mxu1 %vm800_vm1, %v5239_v16 }
  0xb5   : > { %4375 = vmatmul.msk.bf16.vlgmr.msra.gmra.mxu2 %vm800_vm1, %v5239_v16  ;;  %4376 = vmatmul.msk.bf16.vlgmr.msra.gmra.mxu3 %vm800_vm1, %v5239_v16 }
  0xb8   : > { %v5412_v27 = vpop.permute.xlu0 %797 }
  0xc3   : > { %4377 = vmatmul.msk.bf16.vlgmr.msrb.gmra.mxu0 %vm800_vm1, %v5239_v16  ;;  %4378 = vmatmul.msk.bf16.vlgmr.msrb.gmra.mxu1 %vm800_vm1, %v5239_v16 }
  0xc5   : > { %4379 = vmatmul.msk.bf16.vlgmr.msrb.gmra.mxu2 %vm800_vm1, %v5239_v16  ;;  %4380 = vmatmul.msk.bf16.vlgmr.msrb.gmra.mxu3 %vm800_vm1, %v5239_v16  ;;  %v646_v16 = vadd.f32 %v630_v13, %v613_v12 }
  0xc7   : > { %2089 = vst [vmem:[#allocation1 + $0x1] ss:$2 sm:$0xff] %v646_v16  ;;  %v5447_v16 = vld [vmem:[%s5194_s7 + $0x18] sm:$0xff] }
  0xce   : > { %v2096_v36 = vld.sshfl [vmem:[#allocation1] sm:$0xff pattern:$0x75316420]  ;;  %v2097_v37 = vld.sshfl [vmem:[#allocation1 + $0x8] sm:$0xff pattern:$0x75316420] }
  0xcf   : > { %2172 = vst [vmem:[#allocation2 + $0x148] sm:$0xf0] %v2096_v36  ;;  %v2005_v36 = vld.sshfl [vmem:[#allocation1 + $0x28] sm:$0xff pattern:$0x75316420] }
  0xd0   : > { %v910_v30 = vpop.f32.mrf.mxu0  ;;  %v923_v31 = vpop.f32.mrf.mxu1  ;;  %2173 = vst [vmem:[#allocation2 + $0x1d0] sm:$0xf0] %v2097_v37  ;;  %v616_v37 = vmul.f32 %v5397_v10, %v5447_v16 }
  0xd1   : > { %v911_v32 = vadd.f32 %v910_v30, %v5412_v27  ;;  %v924_v33 = vadd.f32 %v923_v31, %v5412_v27  ;;  %v2004_v30 = vld.sshfl [vmem:[#allocation1 + $0x20] sm:$0xff pattern:$0x75316420]  ;;  %2069 = vst [vmem:[#allocation2 + $0x10] sm:$0xf] %v2005_v36 }
  0xd2   : > { %2093 = vst [vmem:[#allocation1 + $0x21] ss:$2 sm:$0xff] %v648_v18  ;;  %v5482_v55 = vadd.f32 %v633_v38, %v616_v37 }
  0xd3   : > { %v4381_v40 = vmul.f32 -1.442695, %v911_v32  ;;  %v4382_v41 = vmul.f32 -1.442695, %v924_v33  ;;  %2068 = vst [vmem:[#allocation2 + $0x158] sm:$0xf] %v2004_v30 }
  0xd5   : > { %4630 = vpow2.f32 %v4381_v40 }
  0xd6   : > { %4632 = vpow2.f32 %v4382_v41 }
  0xd7   : > { %v2241_v2 = vld [vmem:[#allocation2 + $0x1d0] sm:$0xff] }
  0xd8   : > { %v936_v42 = vpop.f32.mrf.mxu2  ;;  %v949_v43 = vpop.f32.mrf.mxu3 }
  0xd9   : > { %v937_v45 = vadd.f32 %v936_v42, %v5412_v27  ;;  %v950_v1 = vadd.f32 %v949_v43, %v5412_v27  ;;  %v912_v46 = vpop.f32.mrf.mxu0  ;;  %v925_v47 = vpop.f32.mrf.mxu1  ;;  %v2100_v18 = vld.sshfl [vmem:[#allocation1 + $0x20] sm:$0xff pattern:$0x75316420] }
  0xda   : > { %v2240_v47 = vld [vmem:[#allocation2 + $0x148] sm:$0xff]  ;;  %2176 = vst [vmem:[#allocation2 + $0x40] sm:$0xf0] %v2100_v18 }
  0xdb   : > { %v4383_v48 = vmul.f32 -1.442695, %v937_v45  ;;  %v4384_v9 = vmul.f32 -1.442695, %v950_v1  ;;  %v4631_v51 = vpop.eup %4630 }
  0xdc   : > { %v4633_v52 = vpop.eup %4632  ;;  %v5419_v15 = vadd.f32 1.0, %v4631_v51  ;;  %v1994_v45 = vld.sshfl [vmem:[#allocation1 + $0x30] sm:$0xff pattern:$0x75316420] }
  0xdd   : > { %4634 = vpow2.f32 %v4383_v48  ;;  %v5421_v24 = vadd.f32 1.0, %v4633_v52  ;;  %v1995_v48 = vld.sshfl [vmem:[#allocation1 + $0x38] sm:$0xff pattern:$0x75316420]  ;;  %2062 = vst [vmem:[#allocation2 + $0x68] sm:$0xf] %v1994_v45 }
  0xde   : > { %4636 = vpow2.f32 %v4384_v9  ;;  %v1454_v4 = vand.u32 2147483647, %v5419_v15  ;;  %v1456_v34 = vand.u32 2147483648, %v5419_v15  ;;  %vm1450_vm3 = vweird.f32 %v5419_v15  ;;  %1999 = vst [vmem:[#allocation1 + $0x30] ss:$2 sm:$0xff] %v5354_v50  ;;  %v600_v50 = vld [vmem:[%s5209_s27 + $0x20] sm:$0xff] }
  0xdf   : > { %4638 = vrcp.f32 %v5419_v15  ;;  %v1469_v49 = vand.u32 2147483647, %v5421_v24  ;;  %v1471_v13 = vand.u32 2147483648, %v5421_v24  ;;  %vm1465_vm5 = vweird.f32 %v5421_v24  ;;  %2063 = vst [vmem:[#allocation2 + $0x190] sm:$0xf] %v1995_v48 }
  0xe0   : > { %4640 = vrcp.f32 %v5421_v24  ;;  %v938_v58 = vpop.f32.mrf.mxu2  ;;  %v951_v3 = vpop.f32.mrf.mxu3  ;;  %vm5454_vm2 = vcmp.eq.f32.partialorder %v1454_v4, 8.507059e+37  ;;  %v1457_v23 = vor.u32 1.1754944e-38, %v1456_v34  ;;  %v634_v19 = vmul.f32 %v5399_v11, %v600_v50 }
  0xe1   : > { %v962_v62 = vpop.f32.mrf.mxu0  ;;  %v975_v63 = vpop.f32.mrf.mxu1  ;;  %vm5462_vm4 = vcmp.eq.f32.partialorder %v1469_v49, 8.507059e+37  ;;  %v1472_v40 = vor.u32 1.1754944e-38, %v1471_v13  ;;  %v5523_v13 = vld [vmem:[%s7349_s3] sm:$0xff] }
  0xe2   : > { %v963_v35 = vadd.f32 %v962_v62, %v5412_v27  ;;  %v976_v7 = vadd.f32 %v975_v63, %v5412_v27  ;;  %v650_v45 = vadd.f32 %v634_v19, %v617_v5 }
  0xe3   : > { %v4635_v6 = vpop.eup %4634 }
  0xe4   : > { %v4637_v8 = vpop.eup %4636  ;;  %v5439_v61 = vadd.f32 1.0, %v4635_v6  ;;  %v4385_v25 = vmul.f32 -1.442695, %v963_v35  ;;  %v4386_v29 = vmul.f32 -1.442695, %v976_v7 }
  0xe5   : > { %v5441_v12 = vpop.eup %4638  ;;  %v5444_v14 = vadd.f32 1.0, %v4637_v8  ;;  %v2006_v37 = vld.sshfl [vmem:[#allocation1 + $0x30] sm:$0xff pattern:$0x75316420]  ;;  %2104 = vst [vmem:[#allocation1 + $0x1] ss:$2 sm:$0xff] %v650_v45 }
  0xe6   : > { %v5450_v20 = vpop.eup %4640  ;;  %v1446_v22 = vmul.f32 %v5441_v12, %v5419_v15  ;;  %4642 = vrcp.f32 %v5439_v61  ;;  %v1484_v41 = vand.u32 2147483647, %v5439_v61  ;;  %vm1451_vm6 = vweird.f32 %v5441_v12  ;;  %2070 = vst [vmem:[#allocation2 + $0x58] sm:$0xf] %v2006_v37 }
  0xe7   : > { %v1461_v26 = vmul.f32 %v5450_v20, %v5421_v24  ;;  %4644 = vrcp.f32 %v5444_v14  ;;  %vm1466_vm8 = vweird.f32 %v5450_v20  ;;  %v1486_v52 = vand.u32 2147483648, %v5439_v61  ;;  %vm5492_vm9 = vmor %vm1450_vm3, %vm1451_vm6 }
  0xe8   : > { %v1447_v31 = vsub.f32 1.0, %v1446_v22  ;;  %v988_v32 = vpop.f32.mrf.mxu2  ;;  %v1001_v33 = vpop.f32.mrf.mxu3  ;;  %4646 = vpow2.f32 %v4385_v25  ;;  %v1501_v59 = vand.u32 2147483648, %v5444_v14  ;;  %vm1467_vm10 = vmor %vm1465_vm5, %vm1466_vm8  ;;  %vm1480_vm12 = vweird.f32 %v5439_v61 }
  0xe9   : > { %v1462_v39 = vsub.f32 1.0, %v1461_v26  ;;  %v964_v42 = vpop.f32.mrf.mxu0  ;;  %v977_v43 = vpop.f32.mrf.mxu1  ;;  %v989_v0 = vadd.f32 %v988_v32, %v5412_v27  ;;  %4648 = vpow2.f32 %v4386_v29  ;;  %v1002_v46 = vadd.f32 %v1001_v33, %v5412_v27  ;;  %v2101_v29 = vld.sshfl [vmem:[#allocation1 + $0x28] sm:$0xff pattern:$0x75316420]  ;;  %v2307_v32 = vld [vmem:[%s7350_s4 + $0x18] sm:$0xff] }
  0xea   : > { %v1448_v44 = vmul.f32 %v5441_v12, %v1447_v31  ;;  %vm1495_vm13 = vweird.f32 %v5444_v14  ;;  %v1499_v30 = vand.u32 2147483647, %v5444_v14  ;;  %2177 = vst [vmem:[#allocation2 + $0x1f8] sm:$0xf0] %v2101_v29  ;;  %2325 = vperm.xlu1 %4628, %v2307_v32   ;;  %vm1485_vm0 = vcmp.eq.f32.partialorder %v1484_v41, 8.507059e+37 }
  0xeb   : > { %v1463_v1 = vmul.f32 %v5450_v20, %v1462_v39  ;;  %v4387_v54 = vmul.f32 -1.442695, %v989_v0  ;;  %v4388_v62 = vmul.f32 -1.442695, %v1002_v46  ;;  %v1487_v39 = vor.u32 1.1754944e-38, %v1486_v52 }
  0xec   : > { %v5478_v9 = vpop.eup %4642  ;;  %v1449_v51 = vadd.f32 %v5441_v12, %v1448_v44  ;;  %v2007_v42 = vld.sshfl [vmem:[#allocation1 + $0x38] sm:$0xff pattern:$0x75316420] }
  0xed   : > { %v1464_v58 = vadd.f32 %v5450_v20, %v1463_v1  ;;  %v1476_v3 = vmul.f32 %v5478_v9, %v5439_v61  ;;  %v5501_v63 = vpop.eup %4644  ;;  %vm1481_vm11 = vweird.f32 %v5478_v9  ;;  %4650 = vpow2.f32 %v4387_v54  ;;  %2095 = vst [vmem:[#allocation1 + $0x31] ss:$2 sm:$0xff] %v5482_v55 }
  0xee   : > { %v1453_v15 = vsel %vm5492_vm9, %v5441_v12, %v1449_v51  ;;  %v1491_v6 = vmul.f32 %v5501_v63, %v5444_v14  ;;  %v4647_v49 = vpop.eup %4646  ;;  %4652 = vpow2.f32 %v4388_v62  ;;  %vm1496_vm14 = vweird.f32 %v5501_v63  ;;  %vm1482_vm15 = vmor %vm1480_vm12, %vm1481_vm11  ;;  %2071 = vst [vmem:[#allocation2 + $0xa0] sm:$0xf] %v2007_v42  ;;  %v2304_v62 = vld [vmem:[%s7350_s4] sm:$0xff] }
  0xef   : > { %v1458_v4 = vsel %vm5454_vm2, %v1457_v23, %v1453_v15  ;;  %v1468_v34 = vsel %vm1467_vm10, %v5450_v20, %v1464_v58  ;;  %v1477_v35 = vsub.f32 1.0, %v1476_v3  ;;  %v4649_v20 = vpop.eup %4648  ;;  %v5527_v23 = vadd.f32 1.0, %v4647_v49  ;;  %vm1497_vm1 = vmor %vm1495_vm13, %vm1496_vm14 }
  0xf0   : > { %v1473_v24 = vsel %vm5462_vm4, %v1472_v40, %v1468_v34  ;;  %v990_v7 = vpop.f32.mrf.mxu2  ;;  %v1003_v8 = vpop.f32.mrf.mxu3  ;;  %v2272_v12 = vpack.c.bf16 %v2240_v47, %v1458_v4  ;;  %v1492_v17 = vsub.f32 1.0, %v1491_v6  ;;  %v5532_v31 = vadd.f32 1.0, %v4649_v20  ;;  %v2242_v4 = vld [vmem:[#allocation2 + $0x100] sm:$0xff] }
  0xf1   : > { %v1478_v22 = vmul.f32 %v5478_v9, %v1477_v35  ;;  %v1014_v25 = vpop.f32.mrf.mxu0  ;;  %v1027_v26 = vpop.f32.mrf.mxu1  ;;  %v2273_v28 = vpack.c.bf16 %v2241_v2, %v1473_v24  ;;  %4654 = vrcp.f32 %v5527_v23  ;;  %v1502_v40 = vor.u32 1.1754944e-38, %v1501_v59  ;;  %v2243_v7 = vld [vmem:[#allocation2 + $0xc8] sm:$0xff]  ;;  %v2245_v45 = vld [vmem:[#allocation2 + $0x1f8] sm:$0xff] }
  0xf2   : > { %2352 = vmatpush.bf16.msra.mxu0 %v2272_v12  ;;  %v1493_v36 = vmul.f32 %v5501_v63, %v1492_v17  ;;  %4656 = vrcp.f32 %v5532_v31  ;;  %v1514_v0 = vand.u32 2147483647, %v5527_v23  ;;  %v1516_v41 = vand.u32 2147483648, %v5527_v23  ;;  %2310 = vperm.xlu1 %4628, %v2304_v62  }
  0xf3   : > { %v1479_v33 = vadd.f32 %v5478_v9, %v1478_v22  ;;  %2371 = vmatpush.bf16.msra.mxu1 %v2273_v28  ;;  %v4651_v38 = vpop.eup %4650  ;;  %v1531_v46 = vand.u32 2147483648, %v5532_v31  ;;  %vm1500_vm2 = vcmp.eq.f32.partialorder %v1499_v30, 8.507059e+37  ;;  %v1015_v14 = vadd.f32 %v1014_v25, %v5412_v27 }
  0xf4   : > { %v1494_v44 = vadd.f32 %v5501_v63, %v1493_v36  ;;  %v4653_v1 = vpop.eup %4652  ;;  %v5562_v47 = vadd.f32 1.0, %v4651_v38  ;;  %v1028_v54 = vadd.f32 %v1027_v26, %v5412_v27  ;;  %vm1510_vm3 = vweird.f32 %v5527_v23  ;;  %v2102_v25 = vld.sshfl [vmem:[#allocation1 + $0x30] sm:$0xff pattern:$0x75316420] }
  0xf5   : > { %v1483_v43 = vsel %vm1482_vm15, %v5478_v9, %v1479_v33  ;;  %4421 = vmatmul.msk.bf16.vlgmr.msra.gmra.mxu0 %vm2338_vm7, %v5523_v13  ;;  %v1529_v9 = vand.u32 2147483647, %v5532_v31  ;;  %v5568_v51 = vadd.f32 1.0, %v4653_v1  ;;  %vm1525_vm4 = vweird.f32 %v5532_v31  ;;  %2178 = vst [vmem:[#allocation2 + $0x20] sm:$0xf0] %v2102_v25  ;;  %v5629_v1 = vld [vmem:[%s7349_s3 + $0x8] sm:$0xff] }
  0xf6   : > { %v5554_v61 = vsel %vm1485_vm0, %v1487_v39, %v1483_v43  ;;  %4423 = vmatmul.msk.bf16.vlgmr.msra.gmra.mxu1 %vm2338_vm7, %v5523_v13  ;;  %v1498_v48 = vsel %vm1497_vm1, %v5501_v63, %v1494_v44  ;;  %4658 = vrcp.f32 %v5562_v47  ;;  %vm5585_vm5 = vcmp.eq.f32.partialorder %v1514_v0, 8.507059e+37  ;;  %v2103_v32 = vld.sshfl [vmem:[#allocation1 + $0x38] sm:$0xff pattern:$0x75316420]  ;;  %v2244_v0 = vld [vmem:[#allocation2 + $0x40] sm:$0xff] }
  0xf7   : > { %v1503_v52 = vsel %vm1500_vm2, %v1502_v40, %v1498_v48  ;;  %v5573_v58 = vpop.eup %4654  ;;  %4660 = vrcp.f32 %v5568_v51  ;;  %v5589_v2 = vor.u32 1.1754944e-38, %v1516_v41  ;;  %v5591_v5 = vor.u32 1.1754944e-38, %v1531_v46  ;;  %2179 = vst [vmem:[#allocation2 + $0x128] sm:$0xf0] %v2103_v32  ;;  %v601_v32 = vld [vmem:[%s5209_s27 + $0x28] sm:$0xff] }
  0xf8   : > { %v1040_v55 = vpop.f32.mrf.mxu2  ;;  %v1053_v57 = vpop.f32.mrf.mxu3  ;;  %v1506_v63 = vmul.f32 %v5573_v58, %v5527_v23  ;;  %vm5595_vm6 = vcmp.eq.f32.partialorder %v1529_v9, 8.507059e+37  ;;  %v1544_v6 = vand.u32 2147483647, %v5562_v47  ;;  %v1546_v49 = vand.u32 2147483648, %v5562_v47 }
  0xf9   : > { %v1016_v3 = vpop.f32.mrf.mxu0  ;;  %v1029_v59 = vpop.f32.mrf.mxu1  ;;  %v1559_v24 = vand.u32 2147483647, %v5568_v51  ;;  %vm1511_vm8 = vweird.f32 %v5573_v58  ;;  %v4389_v12 = vmul.f32 -1.442695, %v1015_v14  ;;  %v4390_v18 = vmul.f32 -1.442695, %v1028_v54 }
  0xfa   : > { %v5581_v50 = vpop.eup %4656  ;;  %v1507_v8 = vsub.f32 1.0, %v1506_v63  ;;  %vm1540_vm9 = vweird.f32 %v5562_v47  ;;  %v1041_v20 = vadd.f32 %v1040_v55, %v5412_v27  ;;  %v1054_v22 = vadd.f32 %v1053_v57, %v5412_v27  ;;  %vm5635_vm14 = vmor %vm1510_vm3, %vm1511_vm8  ;;  %v2108_v14 = vld.sshfl [vmem:[#allocation1] sm:$0xff pattern:$0x75316420] }
  0xfb   : > { %v1521_v34 = vmul.f32 %v5581_v50, %v5532_v31  ;;  %v2274_v17 = vpack.c.bf16 %v2242_v4, %v5554_v61  ;;  %vm1555_vm10 = vweird.f32 %v5568_v51  ;;  %v1561_v29 = vand.u32 2147483648, %v5568_v51  ;;  %2180 = vst [vmem:[#allocation2 + $0x1a0] sm:$0xf0] %v2108_v14  ;;  %v2109_v57 = vld.sshfl [vmem:[#allocation1 + $0x8] sm:$0xff pattern:$0x75316420] }
  0xfc   : > { %v5607_v26 = vpop.eup %4658  ;;  %v1508_v28 = vmul.f32 %v5573_v58, %v1507_v8  ;;  %4662 = vpow2.f32 %v4389_v12  ;;  %v2275_v30 = vpack.c.bf16 %v2243_v7, %v1503_v52  ;;  %vm1526_vm11 = vweird.f32 %v5581_v50  ;;  %2181 = vst [vmem:[#allocation2 + $0x1f0] sm:$0xf0] %v2109_v57 }
  0xfd   : > { %v1522_v19 = vsub.f32 1.0, %v1521_v34  ;;  %v5612_v33 = vpop.eup %4660  ;;  %v1536_v37 = vmul.f32 %v5607_v26, %v5562_v47  ;;  %vm5618_vm12 = vcmp.eq.f32.partialorder %v1544_v6, 8.507059e+37  ;;  %4664 = vpow2.f32 %v4390_v18  ;;  %2390 = vmatpush.bf16.msra.mxu2 %v2274_v17  ;;  %vm1527_vm0 = vmor %vm1525_vm4, %vm1526_vm11 }
  0xfe   : > { %v1509_v39 = vadd.f32 %v5573_v58, %v1508_v28  ;;  %vm1541_vm13 = vweird.f32 %v5607_v26  ;;  %v1551_v40 = vmul.f32 %v5612_v33, %v5568_v51  ;;  %v4391_v42 = vmul.f32 -1.442695, %v1041_v20  ;;  %2409 = vmatpush.bf16.msra.mxu3 %v2275_v30  ;;  %v5696_v30 = vld [vmem:[%s5194_s7 + $0x28] sm:$0xff] }
  0xff   : > { %v1523_v36 = vmul.f32 %v5581_v50, %v1522_v19  ;;  %v1537_v46 = vsub.f32 1.0, %v1536_v37  ;;  %vm1556_vm15 = vweird.f32 %v5612_v33  ;;  %v4392_v48 = vmul.f32 -1.442695, %v1054_v22  ;;  %vm1542_vm1 = vmor %vm1540_vm9, %vm1541_vm13 }
 0x100   : > { %v1042_v43 = vpop.f32.mrf.mxu2  ;;  %v1055_v44 = vpop.f32.mrf.mxu3  ;;  %v1513_v54 = vsel %vm5635_vm14, %v5573_v58, %v1509_v39  ;;  %v1552_v23 = vsub.f32 1.0, %v1551_v40  ;;  %4666 = vpow2.f32 %v4391_v42  ;;  %4425 = vmatmul.msk.bf16.vlgmr.msra.gmra.mxu2 %vm2338_vm7, %v5523_v13  ;;  %vm1557_vm2 = vmor %vm1555_vm10, %vm1556_vm15  ;;  %v1562_v18 = vor.u32 1.1754944e-38, %v1561_v29 }
 0x101   : > { %v1524_v41 = vadd.f32 %v5581_v50, %v1523_v36  ;;  %v1066_v9 = vpop.f32.mrf.mxu0  ;;  %v1079_v52 = vpop.f32.mrf.mxu1  ;;  %v1518_v3 = vsel %vm5585_vm5, %v5589_v2, %v1513_v54  ;;  %v1538_v59 = vmul.f32 %v5607_v26, %v1537_v46  ;;  %4668 = vpow2.f32 %v4392_v48  ;;  %4427 = vmatmul.msk.bf16.vlgmr.msra.gmra.mxu3 %vm2338_vm7, %v5523_v13  ;;  %v2246_v46 = vld [vmem:[#allocation2 + $0x20] sm:$0xff]  ;;  %v2247_v48 = vld [vmem:[#allocation2 + $0x128] sm:$0xff] }
 0x102   : > { %v1067_v55 = vadd.f32 %v1066_v9, %v5412_v27  ;;  %v4663_v31 = vpop.eup %4662  ;;  %v1553_v63 = vmul.f32 %v5612_v33, %v1552_v23  ;;  %v1080_v15 = vadd.f32 %v1079_v52, %v5412_v27  ;;  %v2276_v6 = vpack.c.bf16 %v2244_v0, %v1518_v3 }
 0x103   : > { %v1528_v58 = vsel %vm1527_vm0, %v5581_v50, %v1524_v41  ;;  %v4665_v2 = vpop.eup %4664  ;;  %v1539_v50 = vadd.f32 %v5607_v26, %v1538_v59  ;;  %v5664_v34 = vadd.f32 1.0, %v4663_v31  ;;  %vm1560_vm3 = vcmp.eq.f32.partialorder %v1559_v24, 8.507059e+37 }
 0x104   : > { %v1533_v62 = vsel %vm5595_vm6, %v5591_v5, %v1528_v58  ;;  %v4393_v4 = vmul.f32 -1.442695, %v1067_v55  ;;  %v1547_v5 = vor.u32 1.1754944e-38, %v1546_v49  ;;  %v1554_v35 = vadd.f32 %v5612_v33, %v1553_v63  ;;  %2428 = vmatpush.bf16.msrb.mxu0 %v2276_v6 }
 0x105   : > { %v2277_v7 = vpack.c.bf16 %v2245_v45, %v1533_v62  ;;  %4422 = vmatmul.msk.bf16.gmra.mxu0 %vm2338_vm7, %v5629_v1  ;;  %v5675_v8 = vadd.f32 1.0, %v4665_v2  ;;  %v1543_v12 = vsel %vm1542_vm1, %v5607_v26, %v1539_v50  ;;  %v4394_v47 = vmul.f32 -1.442695, %v1080_v15 }
 0x106   : > { %4670 = vpow2.f32 %v4393_v4  ;;  %4424 = vmatmul.msk.bf16.gmra.mxu1 %vm2338_vm7, %v5629_v1  ;;  %v4667_v49 = vpop.eup %4666  ;;  %v5689_v19 = vsel %vm5618_vm12, %v1547_v5, %v1543_v12  ;;  %v1558_v20 = vsel %vm1557_vm2, %v5612_v33, %v1554_v35  ;;  %v1574_v36 = vand.u32 2147483647, %v5664_v34 }
 0x107   : > { %4672 = vrcp.f32 %v5664_v34  ;;  %2447 = vmatpush.bf16.msrb.mxu1 %v2277_v7  ;;  %v4669_v25 = vpop.eup %4668  ;;  %v1563_v26 = vsel %vm1560_vm3, %v1562_v18, %v1558_v20  ;;  %v1576_v37 = vand.u32 2147483648, %v5664_v34  ;;  %v5701_v38 = vadd.f32 1.0, %v4667_v49 }
 0x108   : > { %4674 = vrcp.f32 %v5675_v8  ;;  %v1092_v22 = vpop.f32.mrf.mxu2  ;;  %v1105_v17 = vpop.f32.mrf.mxu3  ;;  %v5703_v33 = vadd.f32 1.0, %v4669_v25  ;;  %v1589_v51 = vand.u32 2147483647, %v5675_v8  ;;  %v1591_v39 = vand.u32 2147483648, %v5675_v8 }
 0x109   : > { %v1068_v28 = vpop.f32.mrf.mxu0  ;;  %v1081_v29 = vpop.f32.mrf.mxu1  ;;  %4676 = vpow2.f32 %v4394_v47  ;;  %vm1570_vm4 = vweird.f32 %v5664_v34  ;;  %v5714_v42 = vmul.f32 %v5397_v10, %v5696_v30  ;;  %v5717_v43 = vmul.f32 %v5399_v11, %v601_v32 }
 0x10a   : > { %4678 = vrcp.f32 %v5701_v38  ;;  %vm5723_vm5 = vcmp.eq.f32.partialorder %v1574_v36, 8.507059e+37  ;;  %v1577_v61 = vor.u32 1.1754944e-38, %v1576_v37  ;;  %vm1585_vm6 = vweird.f32 %v5675_v8 }
 0x10b   : > { %4680 = vrcp.f32 %v5703_v33  ;;  %v1093_v41 = vadd.f32 %v1092_v22, %v5412_v27  ;;  %vm5731_vm8 = vcmp.eq.f32.partialorder %v1589_v51, 8.507059e+37  ;;  %v1604_v14 = vand.u32 2147483647, %v5701_v38 }
 0x10c   : > { %v4671_v24 = vpop.eup %4670  ;;  %v1106_v54 = vadd.f32 %v1105_v17, %v5412_v27  ;;  %v1592_v55 = vor.u32 1.1754944e-38, %v1591_v39  ;;  %v1606_v57 = vand.u32 2147483648, %v5701_v38  ;;  %vm1600_vm9 = vweird.f32 %v5701_v38 }
 0x10d   : > { %v5708_v40 = vpop.eup %4672  ;;  %v5738_v3 = vadd.f32 1.0, %v4671_v24  ;;  %v1619_v63 = vand.u32 2147483647, %v5703_v33  ;;  %v2278_v4 = vpack.c.bf16 %v2246_v46, %v5689_v19  ;;  %v2279_v15 = vpack.c.bf16 %v2247_v48, %v1563_v26 }
 0x10e   : > { %v5719_v44 = vpop.eup %4674  ;;  %v1566_v0 = vmul.f32 %v5708_v40, %v5664_v34  ;;  %vm1571_vm10 = vweird.f32 %v5708_v40  ;;  %vm1615_vm11 = vweird.f32 %v5703_v33  ;;  %v4395_v5 = vmul.f32 -1.442695, %v1093_v41 }
 0x10f   : > { %v1581_v9 = vmul.f32 %v5719_v44, %v5675_v8  ;;  %v4677_v31 = vpop.eup %4676  ;;  %4682 = vrcp.f32 %v5738_v3  ;;  %vm1586_vm12 = vweird.f32 %v5719_v44  ;;  %vm5752_vm13 = vcmp.eq.f32.partialorder %v1604_v14, 8.507059e+37  ;;  %2466 = vmatpush.bf16.msrb.mxu2 %v2278_v4  ;;  %2485 = vmatpush.bf16.msrb.mxu3 %v2279_v15  ;;  %vm1572_vm14 = vmor %vm1570_vm4, %vm1571_vm10 }
 0x110   : > { %v1567_v23 = vsub.f32 1.0, %v1566_v0  ;;  %v1094_v58 = vpop.f32.mrf.mxu2  ;;  %v1107_v59 = vpop.f32.mrf.mxu3  ;;  %4426 = vmatmul.msk.bf16.gmra.mxu2 %vm2338_vm7, %v5629_v1  ;;  %v1621_v49 = vand.u32 2147483648, %v5703_v33  ;;  %v1607_v20 = vor.u32 1.1754944e-38, %v1606_v57  ;;  %v4396_v17 = vmul.f32 -1.442695, %v1106_v54  ;;  %vm1587_vm0 = vmor %vm1585_vm6, %vm1586_vm12 }
 0x111   : > { %v1582_v62 = vsub.f32 1.0, %v1581_v9  ;;  %v1118_v2 = vpop.f32.mrf.mxu0  ;;  %v1131_v50 = vpop.f32.mrf.mxu1  ;;  %4428 = vmatmul.msk.bf16.gmra.mxu3 %vm2338_vm7, %v5629_v1  ;;  %v5766_v28 = vadd.f32 1.0, %v4677_v31  ;;  %4684 = vpow2.f32 %v4395_v5  ;;  %vm5788_vm2 = vcmp.eq.f32.partialorder %v1619_v63, 8.507059e+37 }
 0x112   : > { %v4679_v6 = vpop.eup %4678  ;;  %v1568_v7 = vmul.f32 %v5708_v40, %v1567_v23  ;;  %v1119_v34 = vadd.f32 %v1118_v2, %v5412_v27  ;;  %v1622_v41 = vor.u32 1.1754944e-38, %v1621_v49  ;;  %v1634_v46 = vand.u32 2147483647, %v5738_v3 }
 0x113   : > { %v4681_v35 = vpop.eup %4680  ;;  %v1583_v12 = vmul.f32 %v5719_v44, %v1582_v62  ;;  %v1596_v18 = vmul.f32 %v4679_v6, %v5701_v38  ;;  %vm1601_vm15 = vweird.f32 %v4679_v6  ;;  %4686 = vrcp.f32 %v5766_v28 }
 0x114   : > { %v1569_v19 = vadd.f32 %v5708_v40, %v1568_v7  ;;  %v1611_v22 = vmul.f32 %v4681_v35, %v5703_v33  ;;  %vm1616_vm1 = vweird.f32 %v4681_v35  ;;  %vm1602_vm3 = vmor %vm1600_vm9, %vm1601_vm15  ;;  %v1636_v14 = vand.u32 2147483648, %v5738_v3 }
 0x115   : > { %v1584_v25 = vadd.f32 %v5719_v44, %v1583_v12  ;;  %v1597_v26 = vsub.f32 1.0, %v1596_v18  ;;  %4429 = vmatmul.msk.bf16.vlgmr.msrb.gmra.mxu0 %vm2338_vm7, %v5523_v13  ;;  %v4683_v24 = vpop.eup %4682  ;;  %4688 = vpow2.f32 %v4396_v17  ;;  %v4397_v54 = vmul.f32 -1.442695, %v1119_v34  ;;  %vm1617_vm4 = vmor %vm1615_vm11, %vm1616_vm1 }
 0x116   : > { %v1573_v29 = vsel %vm1572_vm14, %v5708_v40, %v1569_v19  ;;  %v1612_v32 = vsub.f32 1.0, %v1611_v22  ;;  %4431 = vmatmul.msk.bf16.vlgmr.msrb.gmra.mxu1 %vm2338_vm7, %v5523_v13  ;;  %v1132_v57 = vadd.f32 %v1131_v50, %v5412_v27  ;;  %vm1630_vm6 = vweird.f32 %v5738_v3 }
 0x117   : > { %v5780_v36 = vsel %vm5723_vm5, %v1577_v61, %v1573_v29  ;;  %v1588_v37 = vsel %vm1587_vm0, %v5719_v44, %v1584_v25  ;;  %v1598_v51 = vmul.f32 %v4679_v6, %v1597_v26  ;;  %v1626_v44 = vmul.f32 %v4683_v24, %v5738_v3  ;;  %v4685_v58 = vpop.eup %4684  ;;  %v2248_v26 = vld [vmem:[#allocation2 + $0x1a0] sm:$0xff]  ;;  %v2249_v29 = vld [vmem:[#allocation2 + $0x1f0] sm:$0xff] }
 0x118   : > { %v5786_v8 = vsel %vm5731_vm8, %v1592_v55, %v1588_v37  ;;  %v1613_v39 = vmul.f32 %v4681_v35, %v1612_v32  ;;  %v1144_v0 = vpop.f32.mrf.mxu2  ;;  %v1157_v45 = vpop.f32.mrf.mxu3  ;;  %vm1631_vm5 = vweird.f32 %v4683_v24  ;;  %4690 = vpow2.f32 %v4397_v54 }
 0x119   : > { %v1599_v61 = vadd.f32 %v4679_v6, %v1598_v51  ;;  %v1120_v48 = vpop.f32.mrf.mxu0  ;;  %v1133_v9 = vpop.f32.mrf.mxu1  ;;  %v1627_v55 = vsub.f32 1.0, %v1626_v44  ;;  %v1145_v31 = vadd.f32 %v1144_v0, %v5412_v27  ;;  %v5811_v4 = vadd.f32 1.0, %v4685_v58  ;;  %vm5823_vm9 = vmor %vm1630_vm6, %vm1631_vm5 }
 0x11a   : > { %v1614_v52 = vadd.f32 %v4681_v35, %v1613_v39  ;;  %v4687_v62 = vpop.eup %4686  ;;  %v4398_v15 = vmul.f32 -1.442695, %v1132_v57  ;;  %vm5816_vm8 = vcmp.eq.f32.partialorder %v1634_v46, 8.507059e+37  ;;  %v1637_v3 = vor.u32 1.1754944e-38, %v1636_v14 }
 0x11b   : > { %v1603_v23 = vsel %vm1602_vm3, %v4679_v6, %v1599_v61  ;;  %v1628_v33 = vmul.f32 %v4683_v24, %v1627_v55  ;;  %v1641_v2 = vmul.f32 %v4687_v62, %v5766_v28  ;;  %v4399_v50 = vmul.f32 -1.442695, %v1145_v31  ;;  %v4689_v12 = vpop.eup %4688 }
 0x11c   : > { %v5804_v59 = vsel %vm5752_vm13, %v1607_v20, %v1603_v23  ;;  %v1618_v38 = vsel %vm1617_vm4, %v4681_v35, %v1614_v52  ;;  %v1158_v6 = vadd.f32 %v1157_v45, %v5412_v27  ;;  %v1649_v35 = vand.u32 2147483647, %v5766_v28 }
 0x11d   : > { %v5809_v63 = vsel %vm5788_vm2, %v1622_v41, %v1618_v38  ;;  %v1629_v7 = vadd.f32 %v4683_v24, %v1628_v33  ;;  %4692 = vrcp.f32 %v5811_v4  ;;  %v1642_v47 = vsub.f32 1.0, %v1641_v2 }
 0x11e   : > { %4694 = vpow2.f32 %v4398_v15  ;;  %v4400_v49 = vmul.f32 -1.442695, %v1158_v6  ;;  %v1651_v17 = vand.u32 2147483648, %v5766_v28  ;;  %v5830_v25 = vadd.f32 1.0, %v4689_v12  ;;  %v4691_v34 = vpop.eup %4690 }
 0x11f   : > { %v1633_v22 = vsel %vm5823_vm9, %v4683_v24, %v1629_v7  ;;  %4696 = vpow2.f32 %v4399_v50  ;;  %v1643_v51 = vmul.f32 %v4687_v62, %v1642_v47  ;;  %vm1646_vm10 = vweird.f32 %v4687_v62 }
 0x120   : > { %v1146_v19 = vpop.f32.mrf.mxu2  ;;  %v1159_v20 = vpop.f32.mrf.mxu3  ;;  %v5834_v37 = vsel %vm5816_vm8, %v1637_v3, %v1633_v22  ;;  %4698 = vpow2.f32 %v4400_v49  ;;  %4433 = vmatmul.msk.bf16.vlgmr.msrb.gmra.mxu2 %vm2338_vm7, %v5523_v13  ;;  %vm1645_vm11 = vweird.f32 %v5766_v28  ;;  %vm5839_vm12 = vcmp.eq.f32.partialorder %v1649_v35, 8.507059e+37 }
 0x121   : > { %v1170_v32 = vpop.f32.mrf.mxu0  ;;  %v1664_v39 = vand.u32 2147483647, %v5811_v4  ;;  %4700 = vrcp.f32 %v5830_v25  ;;  %v1644_v40 = vadd.f32 %v4687_v62, %v1643_v51  ;;  %v5845_v0 = vadd.f32 1.0, %v4691_v34  ;;  %v1183_v41 = vpop.f32.mrf.mxu1  ;;  %4435 = vmatmul.msk.bf16.vlgmr.msrb.gmra.mxu3 %vm2338_vm7, %v5523_v13  ;;  %vm1647_vm13 = vmor %vm1645_vm11, %vm1646_vm10 }
 0x122   : > { %v2280_v45 = vpack.c.bf16 %v2248_v26, %v5780_v36  ;;  %v2281_v61 = vpack.c.bf16 %v2249_v29, %v5786_v8  ;;  %v1652_v44 = vor.u32 1.1754944e-38, %v1651_v17  ;;  %v1666_v46 = vand.u32 2147483648, %v5811_v4 }
 0x123   : > { %v4693_v28 = vpop.eup %4692  ;;  %v1681_v48 = vand.u32 2147483648, %v5830_v25  ;;  %v651_v9 = vadd.f32 %v5717_v43, %v5714_v42  ;;  %v1648_v52 = vsel %vm1647_vm13, %v4687_v62, %v1644_v40  ;;  %v1679_v14 = vand.u32 2147483647, %v5830_v25 }
 0x124   : > { %v4695_v36 = vpop.eup %4694  ;;  %v1656_v8 = vmul.f32 %v4693_v28, %v5811_v4  ;;  %4702 = vrcp.f32 %v5845_v0  ;;  %2504 = vmatpush.bf16.msra.mxu0 %v2280_v45  ;;  %2523 = vmatpush.bf16.msra.mxu1 %v2281_v61  ;;  %v5862_v23 = vsel %vm5839_vm12, %v1652_v44, %v1648_v52  ;;  %vm1660_vm14 = vweird.f32 %v5811_v4 }
 0x125   : > { %4430 = vmatmul.msk.bf16.gmra.mxu0 %vm2338_vm7, %v5629_v1  ;;  %v4697_v54 = vpop.eup %4696  ;;  %vm5865_vm15 = vcmp.eq.f32.partialorder %v1664_v39, 8.507059e+37  ;;  %2105 = vst [vmem:[#allocation1 + $0x11] ss:$2 sm:$0xff] %v651_v9  ;;  %v1171_v43 = vadd.f32 %v1170_v32, %v5412_v27  ;;  %v1696_v58 = vand.u32 2147483648, %v5845_v0  ;;  %v5873_v38 = vadd.f32 1.0, %v4695_v36  ;;  %v603_v36 = vld [vmem:[%s5209_s27 + $0x38] sm:$0xff] }
 0x126   : > { %4432 = vmatmul.msk.bf16.gmra.mxu1 %vm2338_vm7, %v5629_v1  ;;  %v4699_v55 = vpop.eup %4698  ;;  %v1657_v57 = vsub.f32 1.0, %v1656_v8  ;;  %v5875_v31 = vadd.f32 1.0, %v4697_v54  ;;  %v1667_v33 = vor.u32 1.1754944e-38, %v1666_v46  ;;  %vm1675_vm0 = vweird.f32 %v5830_v25 }
 0x127   : > { %v5877_v62 = vpop.eup %4700  ;;  %v1682_v15 = vor.u32 1.1754944e-38, %v1681_v48  ;;  %v1694_v2 = vand.u32 2147483647, %v5845_v0  ;;  %vm1661_vm1 = vweird.f32 %v4693_v28  ;;  %vm5883_vm2 = vcmp.eq.f32.partialorder %v1679_v14, 8.507059e+37 }
 0x128   : > { %v1658_v6 = vmul.f32 %v4693_v28, %v1657_v57  ;;  %v1671_v7 = vmul.f32 %v5877_v62, %v5830_v25  ;;  %4704 = vrcp.f32 %v5873_v38  ;;  %v1196_v35 = vpop.f32.mrf.mxu2  ;;  %v1209_v12 = vpop.f32.mrf.mxu3  ;;  %vm1690_vm3 = vweird.f32 %v5845_v0  ;;  %vm1662_vm4 = vmor %vm1660_vm14, %vm1661_vm1  ;;  %v5957_v57 = vld [vmem:[%s5194_s7 + $0x30] sm:$0xff] }
 0x129   : > { %v1172_v50 = vpop.f32.mrf.mxu0  ;;  %4706 = vrcp.f32 %v5875_v31  ;;  %v5890_v18 = vadd.f32 1.0, %v4699_v55  ;;  %v4401_v3 = vmul.f32 -1.442695, %v1171_v43  ;;  %v5894_v20 = vor.u32 1.1754944e-38, %v1696_v58  ;;  %v1185_v17 = vpop.f32.mrf.mxu1  ;;  %v602_v58 = vld [vmem:[%s5209_s27 + $0x30] sm:$0xff] }
 0x12a   : > { %v5892_v47 = vpop.eup %4702  ;;  %v1659_v49 = vadd.f32 %v4693_v28, %v1658_v6  ;;  %v1672_v19 = vsub.f32 1.0, %v1671_v7  ;;  %v1711_v22 = vand.u32 2147483648, %v5873_v38  ;;  %vm1676_vm5 = vweird.f32 %v5877_v62  ;;  %v2305_v7 = vld [vmem:[%s7350_s4 + $0x8] sm:$0xff] }
 0x12b   : > { %v1686_v26 = vmul.f32 %v5892_v47, %v5845_v0  ;;  %vm5903_vm6 = vcmp.eq.f32.partialorder %v1694_v2, 8.507059e+37  ;;  %v1709_v32 = vand.u32 2147483647, %v5873_v38  ;;  %v1184_v34 = vadd.f32 %v1183_v41, %v5412_v27  ;;  %vm5933_vm11 = vmor %vm1675_vm0, %vm1676_vm5  ;;  %2315 = vperm.xlu2 %4629, %v2305_v7  }
 0x12c   : > { %v1663_v51 = vsel %vm1662_vm4, %v4693_v28, %v1659_v49  ;;  %v1673_v24 = vmul.f32 %v5877_v62, %v1672_v19  ;;  %v1724_v39 = vand.u32 2147483647, %v5875_v31  ;;  %v1726_v4 = vand.u32 2147483648, %v5875_v31  ;;  %v2110_v40 = vld.sshfl [vmem:[#allocation1 + $0x10] sm:$0xff pattern:$0x75316420] }
 0x12d   : > { %v5914_v45 = vsel %vm5865_vm15, %v1667_v33, %v1663_v51  ;;  %v1687_v61 = vsub.f32 1.0, %v1686_v26  ;;  %vm1705_vm8 = vweird.f32 %v5873_v38  ;;  %4708 = vrcp.f32 %v5890_v18  ;;  %2182 = vst [vmem:[#allocation2 + $0xe8] sm:$0xf0] %v2110_v40  ;;  %v2111_v44 = vld.sshfl [vmem:[#allocation1 + $0x18] sm:$0xff pattern:$0x75316420] }
 0x12e   : > { %v5918_v41 = vpop.eup %4704  ;;  %v1674_v28 = vadd.f32 %v5877_v62, %v1673_v24  ;;  %vm1691_vm9 = vweird.f32 %v5892_v47  ;;  %v5922_v46 = vor.u32 1.1754944e-38, %v1711_v22  ;;  %vm1720_vm10 = vweird.f32 %v5875_v31  ;;  %2183 = vst [vmem:[#allocation2 + $0x78] sm:$0xf0] %v2111_v44 }
 0x12f   : > { %v5925_v48 = vor.u32 1.1754944e-38, %v1726_v4  ;;  %v5927_v9 = vpop.eup %4706  ;;  %v1688_v52 = vmul.f32 %v5892_v47, %v1687_v61  ;;  %v1701_v8 = vmul.f32 %v5918_v41, %v5873_v38  ;;  %vm5940_vm12 = vcmp.eq.f32.partialorder %v1709_v32, 8.507059e+37  ;;  %vm1692_vm0 = vmor %vm1690_vm3, %vm1691_vm9 }
 0x130   : > { %v1739_v54 = vand.u32 2147483647, %v5890_v18  ;;  %4710 = vpow2.f32 %v4401_v3  ;;  %v1678_v25 = vsel %vm5933_vm11, %v5877_v62, %v1674_v28  ;;  %vm1706_vm13 = vweird.f32 %v5918_v41  ;;  %v1198_v33 = vpop.f32.mrf.mxu2  ;;  %v1211_v2 = vpop.f32.mrf.mxu3  ;;  %4434 = vmatmul.msk.bf16.gmra.mxu2 %vm2338_vm7, %v5629_v1  ;;  %v6011_v28 = vld [vmem:[%s5194_s7 + $0x38] sm:$0xff] }
 0x131   : > { %v1716_v42 = vmul.f32 %v5927_v9, %v5875_v31  ;;  %vm5951_vm14 = vcmp.eq.f32.partialorder %v1724_v39, 8.507059e+37  ;;  %v1741_v55 = vand.u32 2147483648, %v5890_v18  ;;  %v5964_v62 = vsel %vm5883_vm2, %v1682_v15, %v1678_v25  ;;  %4436 = vmatmul.msk.bf16.gmra.mxu3 %vm2338_vm7, %v5629_v1  ;;  %v1222_v4 = vpop.f32.mrf.mxu0  ;;  %vm1707_vm2 = vmor %vm1705_vm8, %vm1706_vm13 }
 0x132   : > { %v1689_v50 = vadd.f32 %v5892_v47, %v1688_v52  ;;  %v1702_v6 = vsub.f32 1.0, %v1701_v8  ;;  %vm1721_vm15 = vweird.f32 %v5927_v9  ;;  %v4402_v49 = vmul.f32 -1.442695, %v1184_v34 }
 0x133   : > { %v1717_v3 = vsub.f32 1.0, %v1716_v42  ;;  %v1197_v5 = vadd.f32 %v1196_v35, %v5412_v27  ;;  %v1210_v15 = vadd.f32 %v1209_v12, %v5412_v27  ;;  %v4709_v19 = vpop.eup %4708  ;;  %v619_v26 = vmul.f32 %v5397_v10, %v5957_v57  ;;  %vm1722_vm3 = vmor %vm1720_vm10, %vm1721_vm15 }
 0x134   : > { %v1693_v22 = vsel %vm1692_vm0, %v5892_v47, %v1689_v50  ;;  %v1703_v17 = vmul.f32 %v5918_v41, %v1702_v6  ;;  %v636_v0 = vmul.f32 %v5399_v11, %v602_v58  ;;  %v1731_v32 = vmul.f32 %v4709_v19, %v5890_v18  ;;  %v2250_v47 = vld [vmem:[#allocation2 + $0xe8] sm:$0xff] }
 0x135   : > { %4437 = vmatmul.msk.bf16.vlgmr.msra.gmra.mxu0 %vm2338_vm7, %v5523_v13  ;;  %v5989_v35 = vsel %vm5903_vm6, %v5894_v20, %v1693_v22  ;;  %v1718_v12 = vmul.f32 %v5927_v9, %v1717_v3  ;;  %vm1736_vm1 = vweird.f32 %v4709_v19  ;;  %v2282_v24 = vpack.c.bf16 %v2250_v47, %v5804_v59  ;;  %v2251_v40 = vld [vmem:[#allocation2 + $0x78] sm:$0xff] }
 0x136   : > { %v4711_v34 = vpop.eup %4710  ;;  %v1704_v51 = vadd.f32 %v5918_v41, %v1703_v17  ;;  %4712 = vpow2.f32 %v4402_v49  ;;  %v4403_v39 = vmul.f32 -1.442695, %v1197_v5  ;;  %4439 = vmatmul.msk.bf16.vlgmr.msra.gmra.mxu1 %vm2338_vm7, %v5523_v13  ;;  %v1732_v29 = vsub.f32 1.0, %v1731_v32  ;;  %v6052_v17 = vld [vmem:[%s5194_s7 + $0x40] sm:$0xff]  ;;  %v6059_v32 = vld [vmem:[%s7349_s3] sm:$0xff] }
 0x137   : > { %v1719_v20 = vadd.f32 %v5927_v9, %v1718_v12  ;;  %v6002_v61 = vadd.f32 1.0, %v4711_v34  ;;  %v4404_v59 = vmul.f32 -1.442695, %v1210_v15  ;;  %2542 = vmatpush.bf16.msra.mxu2 %v2282_v24  ;;  %v2283_v13 = vpack.c.bf16 %v2251_v40, %v5809_v63  ;;  %v1235_v63 = vpop.f32.mrf.mxu1  ;;  %v604_v12 = vld [vmem:[%s5209_s27 + $0x40] sm:$0xff] }
 0x138   : > { %v1708_v44 = vsel %vm1707_vm2, %v5918_v41, %v1704_v51  ;;  %4714 = vpow2.f32 %v4403_v39  ;;  %v652_v38 = vadd.f32 %v636_v0, %v619_v26  ;;  %v1733_v8 = vmul.f32 %v4709_v19, %v1732_v29  ;;  %v1248_v58 = vpop.f32.mrf.mxu2  ;;  %v1261_v24 = vpop.f32.mrf.mxu3 }
 0x139   : > { %v6017_v52 = vsel %vm5940_vm12, %v5922_v46, %v1708_v44  ;;  %v1723_v41 = vsel %vm1722_vm3, %v5927_v9, %v1719_v20  ;;  %4716 = vrcp.f32 %v6002_v61  ;;  %vm1735_vm4 = vweird.f32 %v5890_v18  ;;  %2561 = vmatpush.bf16.msra.mxu3 %v2283_v13  ;;  %v1224_v5 = vpop.f32.mrf.mxu0 }
 0x13a   : > { %v6024_v31 = vsel %vm5951_vm14, %v5925_v48, %v1723_v41  ;;  %v1734_v25 = vadd.f32 %v4709_v19, %v1733_v8  ;;  %4718 = vpow2.f32 %v4404_v59  ;;  %v620_v46 = vmul.f32 %v5397_v10, %v6011_v28  ;;  %vm1737_vm5 = vmor %vm1735_vm4, %vm1736_vm1  ;;  %2106 = vst [vmem:[#allocation1 + $0x21] ss:$2 sm:$0xff] %v652_v38 }
 0x13b   : > { %v637_v14 = vmul.f32 %v5399_v11, %v603_v36  ;;  %v1742_v42 = vor.u32 1.1754944e-38, %v1741_v55  ;;  %v1223_v48 = vadd.f32 %v1222_v4, %v5412_v27  ;;  %v1236_v43 = vadd.f32 %v1235_v63, %v5412_v27 }
 0x13c   : > { %v4713_v9 = vpop.eup %4712  ;;  %v1738_v33 = vsel %vm1737_vm5, %v4709_v19, %v1734_v25  ;;  %vm1740_vm6 = vcmp.eq.f32.partialorder %v1739_v54, 8.507059e+37  ;;  %v1249_v49 = vadd.f32 %v1248_v58, %v5412_v27  ;;  %v1754_v19 = vand.u32 2147483647, %v6002_v61 }
 0x13d   : > { %v6037_v2 = vadd.f32 1.0, %v4713_v9  ;;  %v653_v50 = vadd.f32 %v637_v14, %v620_v46  ;;  %v6039_v7 = vsel %vm1740_vm6, %v1742_v42, %v1738_v33  ;;  %v4405_v3 = vmul.f32 -1.442695, %v1223_v48  ;;  %v6097_v48 = vld [vmem:[%s5194_s7 + $0x48] sm:$0xff] }
 0x13e   : > { %v4715_v6 = vpop.eup %4714  ;;  %v4406_v55 = vmul.f32 -1.442695, %v1236_v43  ;;  %v1756_v54 = vand.u32 2147483648, %v6002_v61  ;;  %v4407_v51 = vmul.f32 -1.442695, %v1249_v49  ;;  %vm1750_vm8 = vweird.f32 %v6002_v61 }
 0x13f   : > { %v6042_v15 = vpop.eup %4716  ;;  %4720 = vrcp.f32 %v6037_v2  ;;  %v6049_v22 = vadd.f32 1.0, %v4715_v6  ;;  %2107 = vst [vmem:[#allocation1 + $0x31] ss:$2 sm:$0xff] %v653_v50  ;;  %v1771_v0 = vand.u32 2147483648, %v6037_v2  ;;  %v1769_v34 = vand.u32 2147483647, %v6037_v2  ;;  %v1237_v39 = vpop.f32.mrf.mxu1 }
 0x140   : > { %v1746_v18 = vmul.f32 %v6042_v15, %v6002_v61  ;;  %4722 = vpow2.f32 %v4405_v3  ;;  %v4719_v26 = vpop.eup %4718  ;;  %4441 = vmatmul.msk.bf16.vlgmr.msra.gmra.mxu2 %vm2338_vm7, %v6059_v32  ;;  %vm6066_vm9 = vcmp.eq.f32.partialorder %v1754_v19, 8.507059e+37  ;;  %v621_v40 = vmul.f32 %v5397_v10, %v6052_v17  ;;  %v1250_v36 = vpop.f32.mrf.mxu2 }
 0x141   : > { %4724 = vpow2.f32 %v4406_v55  ;;  %v6070_v20 = vadd.f32 1.0, %v4719_v26  ;;  %v2112_v29 = vld.sshfl [vmem:[#allocation1 + $0x20] sm:$0xff pattern:$0x75316420]  ;;  %4443 = vmatmul.msk.bf16.vlgmr.msra.gmra.mxu3 %vm2338_vm7, %v6059_v32  ;;  %vm1751_vm10 = vweird.f32 %v6042_v15  ;;  %v1757_v44 = vor.u32 1.1754944e-38, %v1756_v54  ;;  %v605_v55 = vld [vmem:[%s5209_s27 + $0x48] sm:$0xff] }
 0x142   : > { %v1747_v47 = vsub.f32 1.0, %v1746_v18  ;;  %4726 = vrcp.f32 %v6049_v22  ;;  %2184 = vst [vmem:[#allocation2 + $0x70] sm:$0xf0] %v2112_v29  ;;  %v2113_v13 = vld.sshfl [vmem:[#allocation1 + $0x28] sm:$0xff pattern:$0x75316420]  ;;  %v638_v38 = vmul.f32 %v5399_v11, %v604_v12  ;;  %vm1765_vm11 = vweird.f32 %v6037_v2  ;;  %vm1752_vm13 = vmor %vm1750_vm8, %vm1751_vm10 }
 0x143   : > { %v6084_v8 = vor.u32 1.1754944e-38, %v1771_v0  ;;  %v1784_v63 = vand.u32 2147483647, %v6049_v22  ;;  %4728 = vrcp.f32 %v6070_v20  ;;  %2185 = vst [vmem:[#allocation2 + $0x90] sm:$0xf0] %v2113_v13  ;;  %vm6091_vm12 = vcmp.eq.f32.partialorder %v1769_v34, 8.507059e+37  ;;  %v1263_v34 = vpop.f32.mrf.mxu3 }
 0x144   : > { %v1748_v59 = vmul.f32 %v6042_v15, %v1747_v47  ;;  %v1786_v42 = vand.u32 2147483648, %v6049_v22  ;;  %4730 = vpow2.f32 %v4407_v51  ;;  %vm1780_vm14 = vweird.f32 %v6049_v22 }
 0x145   : > { %4438 = vmatmul.msk.bf16.gmra.mxu0 %vm2338_vm7, %v5629_v1  ;;  %v6081_v41 = vpop.eup %4720  ;;  %v1801_v58 = vand.u32 2147483648, %v6070_v20  ;;  %v1262_v6 = vadd.f32 %v1261_v24, %v5412_v27  ;;  %v654_v3 = vadd.f32 %v638_v38, %v621_v40  ;;  %v1799_v19 = vand.u32 2147483647, %v6070_v20 }
 0x146   : > { %v4723_v25 = vpop.eup %4722  ;;  %v1749_v46 = vadd.f32 %v6042_v15, %v1748_v59  ;;  %v1761_v14 = vmul.f32 %v6081_v41, %v6037_v2  ;;  %4440 = vmatmul.msk.bf16.gmra.mxu1 %vm2338_vm7, %v5629_v1  ;;  %v2114_v33 = vld.sshfl [vmem:[#allocation1 + $0x30] sm:$0xff pattern:$0x75316420]  ;;  %vm6123_vm15 = vcmp.eq.f32.partialorder %v1784_v63, 8.507059e+37  ;;  %vm1766_vm0 = vweird.f32 %v6081_v41  ;;  %v1274_v2 = vpop.f32.mrf.mxu0 }
 0x147   : > { %v4725_v43 = vpop.eup %4724  ;;  %v6107_v50 = vadd.f32 1.0, %v4723_v25  ;;  %2186 = vst [vmem:[#allocation2 + $0x1d8] sm:$0xf0] %v2114_v33  ;;  %v2115_v0 = vld.sshfl [vmem:[#allocation1 + $0x38] sm:$0xff pattern:$0x75316420]  ;;  %vm1795_vm1 = vweird.f32 %v6070_v20  ;;  %v6141_v29 = vmul.f32 %v5399_v11, %v605_v55  ;;  %vm1767_vm3 = vmor %vm1765_vm11, %vm1766_vm0 }
 0x148   : > { %v6111_v49 = vpop.eup %4726  ;;  %v1753_v1 = vsel %vm1752_vm13, %v6042_v15, %v1749_v46  ;;  %v1762_v5 = vsub.f32 1.0, %v1761_v14  ;;  %v6115_v61 = vadd.f32 1.0, %v4725_v43  ;;  %2116 = vst [vmem:[#allocation1 + $0x1] ss:$2 sm:$0xff] %v654_v3  ;;  %v6130_v15 = vmul.f32 %v5397_v10, %v6097_v48 }
 0x149   : > { %v6119_v18 = vsel %vm6066_vm9, %v1757_v44, %v1753_v1  ;;  %v1776_v54 = vmul.f32 %v6111_v49, %v6049_v22  ;;  %4732 = vrcp.f32 %v6107_v50  ;;  %v1787_v47 = vor.u32 1.1754944e-38, %v1786_v42  ;;  %v6135_v51 = vpop.eup %4728  ;;  %v2252_v4 = vld [vmem:[#allocation2 + $0x70] sm:$0xff]  ;;  %2187 = vst [vmem:[#allocation2 + $0xd0] sm:$0xf0] %v2115_v0  ;;  %v1287_v1 = vpop.f32.mrf.mxu1 }
 0x14a   : > { %v1763_v12 = vmul.f32 %v6081_v41, %v1762_v5  ;;  %v6137_v39 = vor.u32 1.1754944e-38, %v1801_v58  ;;  %4734 = vrcp.f32 %v6115_v61  ;;  %v4731_v40 = vpop.eup %4730  ;;  %v1791_v44 = vmul.f32 %v6135_v51, %v6070_v20  ;;  %v2253_v36 = vld [vmem:[#allocation2 + $0x90] sm:$0xff] }
 0x14b   : > { %v1777_v24 = vsub.f32 1.0, %v1776_v54  ;;  %vm6146_vm2 = vcmp.eq.f32.partialorder %v1799_v19, 8.507059e+37  ;;  %v2284_v38 = vpack.c.bf16 %v2252_v4, %v5834_v37  ;;  %v1814_v63 = vand.u32 2147483647, %v6107_v50  ;;  %v6201_v4 = vld [vmem:[%s7349_s3 + $0x8] sm:$0xff]  ;;  %v6230_v20 = vld [vmem:[%s5194_s7 + $0x50] sm:$0xff] }
 0x14c   : > { %v1764_v59 = vadd.f32 %v6081_v41, %v1763_v12  ;;  %vm1781_vm4 = vweird.f32 %v6111_v49  ;;  %v2285_v46 = vpack.c.bf16 %v2253_v36, %v5862_v23  ;;  %v1816_v14 = vand.u32 2147483648, %v6107_v50 }
 0x14d   : > { %v1778_v25 = vmul.f32 %v6111_v49, %v1777_v24  ;;  %v1792_v43 = vsub.f32 1.0, %v1791_v44  ;;  %vm1796_vm5 = vweird.f32 %v6135_v51  ;;  %2580 = vmatpush.bf16.msrb.mxu0 %v2284_v38  ;;  %vm1810_vm6 = vweird.f32 %v6107_v50  ;;  %vm6179_vm8 = vmor %vm1780_vm14, %vm1781_vm4  ;;  %v608_v38 = vld [vmem:[%s5209_s27 + $0x60] sm:$0xff] }
 0x14e   : > { %v1768_v42 = vsel %vm1767_vm3, %v6081_v41, %v1764_v59  ;;  %v1829_v37 = vand.u32 2147483647, %v6115_v61  ;;  %2599 = vmatpush.bf16.msrb.mxu1 %v2285_v46  ;;  %v2254_v41 = vld [vmem:[#allocation2 + $0x1d8] sm:$0xff]  ;;  %v1831_v3 = vand.u32 2147483648, %v6115_v61  ;;  %v6173_v55 = vadd.f32 1.0, %v4731_v40  ;;  %v1276_v13 = vpop.f32.mrf.mxu0 }
 0x14f   : > { %v6164_v58 = vpop.eup %4732  ;;  %v6169_v33 = vsel %vm6091_vm12, %v6084_v8, %v1768_v42  ;;  %v1779_v23 = vadd.f32 %v6111_v49, %v1778_v25  ;;  %v1793_v8 = vmul.f32 %v6135_v51, %v1792_v43  ;;  %v2286_v9 = vpack.c.bf16 %v2254_v41, %v5914_v45  ;;  %v2120_v12 = vld.sshfl [vmem:[#allocation1] sm:$0xff pattern:$0x75316420]  ;;  %v2121_v45 = vld.sshfl [vmem:[#allocation1 + $0x8] sm:$0xff pattern:$0x75316420]  ;;  %vm1797_vm12 = vmor %vm1795_vm1, %vm1796_vm5 }
 0x150   : > { %v1806_v19 = vmul.f32 %v6164_v58, %v6107_v50  ;;  %vm6187_vm9 = vcmp.eq.f32.partialorder %v1814_v63, 8.507059e+37  ;;  %v4408_v0 = vmul.f32 -1.442695, %v1262_v6  ;;  %v6191_v34 = vpop.eup %4734  ;;  %v1817_v24 = vor.u32 1.1754944e-38, %v1816_v14  ;;  %2188 = vst [vmem:[#allocation2 + $0xb8] sm:$0xf0] %v2120_v12  ;;  %4442 = vmatmul.msk.bf16.gmra.mxu2 %vm2338_vm7, %v6201_v4 }
 0x151   : > { %v1783_v22 = vsel %vm6179_vm8, %v6111_v49, %v1779_v23  ;;  %vm1825_vm10 = vweird.f32 %v6115_v61  ;;  %4736 = vrcp.f32 %v6173_v55  ;;  %v1794_v49 = vadd.f32 %v6135_v51, %v1793_v8  ;;  %2618 = vmatpush.bf16.msrb.mxu2 %v2286_v9  ;;  %v2255_v40 = vld [vmem:[#allocation2 + $0xd0] sm:$0xff]  ;;  %2189 = vst [vmem:[#allocation2 + $0x88] sm:$0xf0] %v2121_v45  ;;  %4444 = vmatmul.msk.bf16.gmra.mxu3 %vm2338_vm7, %v6201_v4  ;;  %v1313_v8 = vpop.f32.mrf.mxu3 }
 0x152   : > { %v6207_v6 = vsel %vm6123_vm15, %v1787_v47, %v1783_v22  ;;  %v1807_v59 = vsub.f32 1.0, %v1806_v19  ;;  %v1821_v44 = vmul.f32 %v6191_v34, %v6115_v61  ;;  %vm6212_vm11 = vcmp.eq.f32.partialorder %v1829_v37, 8.507059e+37 }
 0x153   : > { %v2287_v26 = vpack.c.bf16 %v2255_v40, %v5964_v62  ;;  %vm1811_vm13 = vweird.f32 %v6164_v58  ;;  %vm1826_vm14 = vweird.f32 %v6191_v34  ;;  %v1832_v47 = vor.u32 1.1754944e-38, %v1831_v3  ;;  %v606_v62 = vld [vmem:[%s5209_s27 + $0x50] sm:$0xff]  ;;  %v1300_v3 = vpop.f32.mrf.mxu2 }
 0x154   : > { %v1798_v36 = vsel %vm1797_vm12, %v6135_v51, %v1794_v49  ;;  %v1808_v63 = vmul.f32 %v6164_v58, %v1807_v59  ;;  %v1822_v25 = vsub.f32 1.0, %v1821_v44  ;;  %4738 = vpow2.f32 %v4408_v0  ;;  %vm1812_vm15 = vmor %vm1810_vm6, %vm1811_vm13  ;;  %v6273_v49 = vld [vmem:[%s5194_s7 + $0x58] sm:$0xff] }
 0x155   : > { %4445 = vmatmul.msk.bf16.vlgmr.msrb.gmra.mxu0 %vm2338_vm7, %v6059_v32  ;;  %v6236_v46 = vsel %vm6146_vm2, %v6137_v39, %v1798_v36  ;;  %2637 = vmatpush.bf16.msrb.mxu3 %v2287_v26  ;;  %v1844_v14 = vand.u32 2147483647, %v6173_v55  ;;  %v1846_v51 = vand.u32 2147483648, %v6173_v55  ;;  %v1275_v42 = vadd.f32 %v1274_v2, %v5412_v27  ;;  %vm1827_vm1 = vmor %vm1825_vm10, %vm1826_vm14  ;;  %v607_v36 = vld [vmem:[%s5209_s27 + $0x58] sm:$0xff] }
 0x156   : > { %v1809_v43 = vadd.f32 %v6164_v58, %v1808_v63  ;;  %v1823_v37 = vmul.f32 %v6191_v34, %v1822_v25  ;;  %v1288_v23 = vadd.f32 %v1287_v1, %v5412_v27  ;;  %v655_v41 = vadd.f32 %v6141_v29, %v6130_v15  ;;  %4447 = vmatmul.msk.bf16.vlgmr.msrb.gmra.mxu1 %vm2338_vm7, %v6059_v32  ;;  %v1289_v1 = vpop.f32.mrf.mxu1  ;;  %v6286_v63 = vld [vmem:[%s5194_s7 + $0x60] sm:$0xff] }
 0x157   : > { %v6246_v39 = vpop.eup %4736  ;;  %v4409_v5 = vmul.f32 -1.442695, %v1275_v42  ;;  %v1301_v2 = vadd.f32 %v1300_v3, %v5412_v27  ;;  %v623_v15 = vmul.f32 %v5397_v10, %v6230_v20  ;;  %v640_v29 = vmul.f32 %v5399_v11, %v606_v62  ;;  %v2256_v0 = vld [vmem:[#allocation2 + $0xb8] sm:$0xff]  ;;  %v609_v1 = vld [vmem:[%s5209_s27 + $0x68] sm:$0xff] }
 0x158   : > { %v1813_v9 = vsel %vm1812_vm15, %v6164_v58, %v1809_v43  ;;  %v1824_v19 = vadd.f32 %v6191_v34, %v1823_v37  ;;  %v1836_v50 = vmul.f32 %v6246_v39, %v6173_v55  ;;  %vm1841_vm0 = vweird.f32 %v6246_v39  ;;  %2117 = vst [vmem:[#allocation1 + $0x11] ss:$2 sm:$0xff] %v655_v41  ;;  %v2257_v22 = vld [vmem:[#allocation2 + $0x88] sm:$0xff] }
 0x159   : > { %v6265_v12 = vsel %vm6187_vm9, %v1817_v24, %v1813_v9  ;;  %v2288_v58 = vpack.c.bf16 %v2256_v0, %v5989_v35  ;;  %4740 = vpow2.f32 %v4409_v5  ;;  %v4410_v45 = vmul.f32 -1.442695, %v1288_v23  ;;  %v1315_v41 = vpop.f32.mrf.mxu3 }
 0x15a   : > { %v4739_v40 = vpop.eup %4738  ;;  %v1828_v59 = vsel %vm1827_vm1, %v6191_v34, %v1824_v19  ;;  %v1837_v54 = vsub.f32 1.0, %v1836_v50  ;;  %v2289_v24 = vpack.c.bf16 %v2257_v22, %v6017_v52  ;;  %v4411_v44 = vmul.f32 -1.442695, %v1301_v2 }
 0x15b   : > { %v6279_v61 = vsel %vm6212_vm11, %v1832_v47, %v1828_v59  ;;  %v6281_v26 = vadd.f32 1.0, %v4739_v40  ;;  %2656 = vmatpush.bf16.msra.mxu0 %v2288_v58  ;;  %4742 = vpow2.f32 %v4410_v45  ;;  %v1314_v35 = vadd.f32 %v1313_v8, %v5412_v27  ;;  %v1302_v42 = vpop.f32.mrf.mxu2 }
 0x15c   : > { %v1838_v34 = vmul.f32 %v6246_v39, %v1837_v54  ;;  %2675 = vmatpush.bf16.msra.mxu1 %v2289_v24  ;;  %4744 = vpow2.f32 %v4411_v44  ;;  %v656_v25 = vadd.f32 %v640_v29, %v623_v15  ;;  %v624_v52 = vmul.f32 %v5397_v10, %v6273_v49 }
 0x15d   : > { %vm1840_vm2 = vweird.f32 %v6173_v55  ;;  %4746 = vrcp.f32 %v6281_v26  ;;  %v4412_v62 = vmul.f32 -1.442695, %v1314_v35  ;;  %v641_v27 = vmul.f32 %v5399_v11, %v607_v36  ;;  %v6332_v35 = vld [vmem:[%s5194_s7 + $0x70] sm:$0xff] }
 0x15e   : > { %v1839_v47 = vadd.f32 %v6246_v39, %v1838_v34  ;;  %2118 = vst [vmem:[#allocation1 + $0x21] ss:$2 sm:$0xff] %v656_v25  ;;  %v625_v43 = vmul.f32 %v5397_v10, %v6286_v63  ;;  %vm1842_vm3 = vmor %vm1840_vm2, %vm1841_vm0  ;;  %vm1845_vm4 = vcmp.eq.f32.partialorder %v1844_v14, 8.507059e+37  ;;  %v1847_v23 = vor.u32 1.1754944e-38, %v1846_v51  ;;  %v6309_v51 = vld [vmem:[%s5194_s7 + $0x68] sm:$0xff] }
 0x15f   : > { %v4741_v37 = vpop.eup %4740  ;;  %v2122_v55 = vld.sshfl [vmem:[#allocation1 + $0x10] sm:$0xff pattern:$0x75316420]  ;;  %v642_v3 = vmul.f32 %v5399_v11, %v608_v38  ;;  %v2123_v2 = vld.sshfl [vmem:[#allocation1 + $0x18] sm:$0xff pattern:$0x75316420]  ;;  %4748 = vpow2.f32 %v4412_v62  ;;  %v657_v8 = vadd.f32 %v641_v27, %v624_v52  ;;  %v626_v45 = vmul.f32 %v5397_v10, %v6309_v51 }
 0x160   : > { %v1843_v13 = vsel %vm1842_vm3, %v6246_v39, %v1839_v47  ;;  %v6302_v5 = vadd.f32 1.0, %v4741_v37  ;;  %2190 = vst [vmem:[#allocation2 + $0xa8] sm:$0xf0] %v2122_v55  ;;  %4449 = vmatmul.msk.bf16.vlgmr.msrb.gmra.mxu2 %vm2338_vm7, %v6059_v32  ;;  %v1859_v39 = vand.u32 2147483647, %v6281_v26  ;;  %v1861_v50 = vand.u32 2147483648, %v6281_v26 }
 0x161   : > { %v4743_v15 = vpop.eup %4742  ;;  %v6304_v29 = vsel %vm1845_vm4, %v1847_v23, %v1843_v13  ;;  %2191 = vst [vmem:[#allocation2 + $0x1c8] sm:$0xf0] %v2123_v2  ;;  %v658_v14 = vadd.f32 %v642_v3, %v625_v43  ;;  %4451 = vmatmul.msk.bf16.vlgmr.msrb.gmra.mxu3 %vm2338_vm7, %v6059_v32  ;;  %v643_v40 = vmul.f32 %v5399_v11, %v609_v1  ;;  %vm1855_vm5 = vweird.f32 %v6281_v26  ;;  %v610_v47 = vld [vmem:[%s5209_s27 + $0x70] sm:$0xff] }
 0x162   : > { %v4745_v9 = vpop.eup %4744  ;;  %4750 = vrcp.f32 %v6302_v5  ;;  %v6315_v0 = vadd.f32 1.0, %v4743_v15  ;;  %2119 = vst [vmem:[#allocation1 + $0x31] ss:$2 sm:$0xff] %v657_v8  ;;  %v1874_v59 = vand.u32 2147483647, %v6302_v5  ;;  %vm6334_vm6 = vcmp.eq.f32.partialorder %v1859_v39, 8.507059e+37 }
 0x163   : > { %v4747_v19 = vpop.eup %4746  ;;  %v6317_v58 = vadd.f32 1.0, %v4745_v9  ;;  %2128 = vst [vmem:[#allocation1 + $0x1] ss:$2 sm:$0xff] %v658_v14  ;;  %v1862_v34 = vor.u32 1.1754944e-38, %v1861_v50  ;;  %v1876_v25 = vand.u32 2147483648, %v6302_v5  ;;  %v659_v23 = vadd.f32 %v643_v40, %v626_v45 }
 0x164   : > { %v1851_v22 = vmul.f32 %v4747_v19, %v6281_v26  ;;  %4752 = vrcp.f32 %v6315_v0  ;;  %vm1856_vm8 = vweird.f32 %v4747_v19  ;;  %vm6349_vm9 = vcmp.eq.f32.partialorder %v1874_v59, 8.507059e+37 }
 0x165   : > { %4446 = vmatmul.msk.bf16.gmra.mxu0 %vm2338_vm7, %v6201_v4  ;;  %v2124_v54 = vld.sshfl [vmem:[#allocation1 + $0x20] sm:$0xff pattern:$0x75316420]  ;;  %v4749_v24 = vpop.eup %4748  ;;  %4754 = vrcp.f32 %v6317_v58  ;;  %v2125_v37 = vld.sshfl [vmem:[#allocation1 + $0x28] sm:$0xff pattern:$0x75316420]  ;;  %v627_v13 = vmul.f32 %v5397_v10, %v6332_v35  ;;  %v644_v15 = vmul.f32 %v5399_v11, %v610_v47  ;;  %vm1857_vm10 = vmor %vm1855_vm5, %vm1856_vm8  ;;  %vm1870_vm11 = vweird.f32 %v6302_v5 }
 0x166   : > { %v1852_v44 = vsub.f32 1.0, %v1851_v22  ;;  %2192 = vst [vmem:[#allocation2 + $0x170] sm:$0xf0] %v2124_v54  ;;  %v6339_v38 = vadd.f32 1.0, %v4749_v24  ;;  %4448 = vmatmul.msk.bf16.gmra.mxu1 %vm2338_vm7, %v6201_v4  ;;  %v1889_v8 = vand.u32 2147483647, %v6315_v0  ;;  %vm1885_vm13 = vweird.f32 %v6315_v0 }
 0x167   : > { %v2258_v52 = vld [vmem:[#allocation2 + $0xa8] sm:$0xff]  ;;  %2193 = vst [vmem:[#allocation2 + $0x178] sm:$0xf0] %v2125_v37  ;;  %v1877_v1 = vor.u32 1.1754944e-38, %v1876_v25  ;;  %v1904_v9 = vand.u32 2147483647, %v6317_v58  ;;  %v660_v47 = vadd.f32 %v644_v15, %v627_v13  ;;  %vm1900_vm14 = vweird.f32 %v6317_v58 }
 0x168   : > { %v6344_v62 = vpop.eup %4750  ;;  %v1853_v27 = vmul.f32 %v4747_v19, %v1852_v44  ;;  %v2290_v42 = vpack.c.bf16 %v2258_v52, %v6024_v31  ;;  %v2259_v43 = vld [vmem:[#allocation2 + $0x1c8] sm:$0xff]  ;;  %4756 = vrcp.f32 %v6339_v38  ;;  %v1891_v45 = vand.u32 2147483648, %v6315_v0  ;;  %2129 = vst [vmem:[#allocation1 + $0x11] ss:$2 sm:$0xff] %v659_v23 }
 0x169   : > { %v1866_v55 = vmul.f32 %v6344_v62, %v6302_v5  ;;  %v2291_v3 = vpack.c.bf16 %v2259_v43, %v6039_v7  ;;  %v2126_v31 = vld.sshfl [vmem:[#allocation1 + $0x30] sm:$0xff pattern:$0x75316420]  ;;  %v2127_v40 = vld.sshfl [vmem:[#allocation1 + $0x38] sm:$0xff pattern:$0x75316420]  ;;  %vm1871_vm12 = vweird.f32 %v6344_v62  ;;  %vm1915_vm8 = vweird.f32 %v6339_v38 }
 0x16a   : > { %v1854_v2 = vadd.f32 %v4747_v19, %v1853_v27  ;;  %2694 = vmatpush.bf16.msra.mxu2 %v2290_v42  ;;  %v6359_v14 = vpop.eup %4752  ;;  %2194 = vst [vmem:[#allocation2 + $0x68] sm:$0xf0] %v2126_v31  ;;  %v2132_v24 = vld.sshfl [vmem:[#allocation1] sm:$0xff pattern:$0x75316420]  ;;  %v1906_v27 = vand.u32 2147483648, %v6317_v58  ;;  %vm6390_vm15 = vmor %vm1870_vm11, %vm1871_vm12 }
 0x16b   : > { %v1867_v7 = vsub.f32 1.0, %v1866_v55  ;;  %2713 = vmatpush.bf16.msra.mxu3 %v2291_v3  ;;  %v6365_v39 = vpop.eup %4754  ;;  %v1881_v22 = vmul.f32 %v6359_v14, %v6315_v0  ;;  %2195 = vst [vmem:[#allocation2 + $0x190] sm:$0xf0] %v2127_v40  ;;  %v2133_v52 = vld.sshfl [vmem:[#allocation1 + $0x8] sm:$0xff pattern:$0x75316420]  ;;  %vm1886_vm0 = vweird.f32 %v6359_v14 }
 0x16c   : > { %v1858_v50 = vsel %vm1857_vm10, %v4747_v19, %v1854_v2  ;;  %v1896_v19 = vmul.f32 %v6365_v39, %v6317_v58  ;;  %2196 = vst [vmem:[#allocation2 + $0x198] sm:$0xf0] %v2132_v24  ;;  %vm6396_vm1 = vcmp.eq.f32.partialorder %v1889_v8, 8.507059e+37  ;;  %v1892_v23 = vor.u32 1.1754944e-38, %v1891_v45  ;;  %v611_v45 = vld [vmem:[%s5209_s27 + $0x78] sm:$0xff]  ;;  %vm6432_vm4 = vmor %vm1885_vm13, %vm1886_vm0 }
 0x16d   : > { %v6373_v26 = vsel %vm6334_vm6, %v1862_v34, %v1858_v50  ;;  %v1868_v59 = vmul.f32 %v6344_v62, %v1867_v7  ;;  %v2260_v54 = vld [vmem:[#allocation2 + $0x170] sm:$0xff]  ;;  %v1882_v44 = vsub.f32 1.0, %v1881_v22  ;;  %2197 = vst [vmem:[#allocation2 + $0x38] sm:$0xf0] %v2133_v52  ;;  %vm1901_vm2 = vweird.f32 %v6365_v39  ;;  %v6425_v22 = vld [vmem:[%s5194_s7 + $0x78] sm:$0xff]  ;;  %s4882_s7 = scalar_lea.hbm %s4881_s12, 128 }
 0x16e   : > { %v2292_v25 = vpack.c.bf16 %v2260_v54, %v6119_v18  ;;  %v1897_v34 = vsub.f32 1.0, %v1896_v19  ;;  %v6384_v42 = vpop.eup %4756  ;;  %v2261_v55 = vld [vmem:[#allocation2 + $0x178] sm:$0xff]  ;;  %3693 = vst [vmem:[#allocation1] ss:$2 sm:$0xff] %v5394_v60  ;;  %vm6417_vm3 = vcmp.eq.f32.partialorder %v1904_v9, 8.507059e+37  ;;  %v1907_v9 = vor.u32 1.1754944e-38, %v1906_v27  ;;  %vm1902_vm5 = vmor %vm1900_vm14, %vm1901_vm2  ;;  %p4883_p7 = scmp.ne.s32.totalorder %s4881_s12, %s4882_s7  ;;  %p4888_p11 = scmp.lt.s32.totalorder %s4886_s14, %s4882_s7 }
 0x16f   : > { %v1869_v36 = vadd.f32 %v6344_v62, %v1868_v59  ;;  %v1883_v18 = vmul.f32 %v6359_v14, %v1882_v44  ;;  %v1911_v13 = vmul.f32 %v6384_v42, %v6339_v38  ;;  %v2293_v15 = vpack.c.bf16 %v2261_v55, %v6169_v33  ;;  %2130 = vst [vmem:[#allocation1 + $0x21] ss:$2 sm:$0xff] %v660_v47  ;;  %v2134_v59 = vld.sshfl [vmem:[#allocation1 + $0x10] sm:$0xff pattern:$0x75316420] }
 0x170   : > { %2732 = vmatpush.bf16.msrb.mxu0 %v2292_v25  ;;  %v1898_v3 = vmul.f32 %v6365_v39, %v1897_v34  ;;  %4450 = vmatmul.msk.bf16.gmra.mxu2 %vm2338_vm7, %v6201_v4  ;;  %vm1916_vm6 = vweird.f32 %v6384_v42  ;;  %v1919_v0 = vand.u32 2147483647, %v6339_v38  ;;  %v1921_v54 = vand.u32 2147483648, %v6339_v38  ;;  %2198 = vst [vmem:[#allocation2 + $0xc0] sm:$0xf0] %v2134_v59  ;;  %p4884_p8 = pnand %p4883_p7, %p5143_p0  ;;  %p4889_p12 = por %p4888_p11, %p4887_p10 }
 0x171   : > { %v1873_v5 = vsel %vm6390_vm15, %v6344_v62, %v1869_v36  ;;  %v1884_v62 = vadd.f32 %v6359_v14, %v1883_v18  ;;  %v2262_v7 = vld [vmem:[#allocation2 + $0x68] sm:$0xff]  ;;  %v1912_v40 = vsub.f32 1.0, %v1911_v13  ;;  %4452 = vmatmul.msk.bf16.gmra.mxu3 %vm2338_vm7, %v6201_v4  ;;  %2751 = vmatpush.bf16.msrb.mxu1 %v2293_v15  ;;  %v2135_v25 = vld.sshfl [vmem:[#allocation1 + $0x18] sm:$0xff pattern:$0x75316420]  ;;  %v628_v36 = vmul.f32 %v5397_v10, %v6425_v22 }
 0x172   : > { %v6409_v2 = vpop.f32.mrf.mxu0  ;;  %v6414_v8 = vsel %vm6349_vm9, %v1877_v1, %v1873_v5  ;;  %v1899_v1 = vadd.f32 %v6365_v39, %v1898_v3  ;;  %v2294_v33 = vpack.c.bf16 %v2262_v7, %v6207_v6  ;;  %v2263_v6 = vld [vmem:[#allocation2 + $0x190] sm:$0xff]  ;;  %v645_v34 = vmul.f32 %v5399_v11, %v611_v45  ;;  %vm1917_vm9 = vmor %vm1915_vm8, %vm1916_vm6  ;;  %2199 = vst [vmem:[#allocation2 + $0x1c0] sm:$0xf0] %v2135_v25  ;;  %p4885_p9 = pneg %p4884_p8 }
 0x173   : > { %v6422_v50 = vpop.f32.mrf.mxu1  ;;  %v1888_v19 = vsel %vm6432_vm4, %v6359_v14, %v1884_v62  ;;  %v1913_v58 = vmul.f32 %v6384_v42, %v1912_v40  ;;  %v2295_v44 = vpack.c.bf16 %v2263_v6, %v6236_v46  ;;  %v2264_v47 = vld [vmem:[#allocation2 + $0x198] sm:$0xff]  ;;  %v1922_v43 = vor.u32 1.1754944e-38, %v1921_v54  ;;  %3695 = vst [vmem:[#allocation1 + $0x10] ss:$2 sm:$0xff] %v5406_v21 }
 0x174   : > { %v6454_v14 = vsel %vm6396_vm1, %v1892_v23, %v1888_v19  ;;  %v1903_v24 = vsel %vm1902_vm5, %v6365_v39, %v1899_v1  ;;  %2770 = vmatpush.bf16.msrb.mxu2 %v2294_v33  ;;  %v2296_v46 = vpack.c.bf16 %v2264_v47, %v6265_v12  ;;  %v2265_v39 = vld [vmem:[#allocation2 + $0x38] sm:$0xff]  ;;  %vm1920_vm10 = vcmp.eq.f32.partialorder %v1919_v0, 8.507059e+37  ;;  %p4890_p13 = pnand %p4889_p12, %p4885_p9 }
 0x175   : > { %4453 = vmatmul.msk.bf16.vlgmr.msra.gmra.mxu0 %vm2338_vm7, %v6059_v32  ;;  %v6461_v52 = vsel %vm6417_vm3, %v1907_v9, %v1903_v24  ;;  %v1914_v27 = vadd.f32 %v6384_v42, %v1913_v58  ;;  %2789 = vmatpush.bf16.msrb.mxu3 %v2295_v44  ;;  %v2297_v18 = vpack.c.bf16 %v2265_v39, %v6279_v61  ;;  %v6536_v39 = vpop.permute.xlu1 %2325  ;;  %vm3152_vm11 = vcmask 261120  }
 0x176   : > { %4455 = vmatmul.msk.bf16.vlgmr.msra.gmra.mxu1 %vm2338_vm7, %v6059_v32  ;;  %2808 = vmatpush.bf16.msra.mxu0 %v2296_v46  ;;  %v2136_v38 = vld.sshfl [vmem:[#allocation1 + $0x20] sm:$0xff pattern:$0x75316420]  ;;  %v2137_v23 = vld.sshfl [vmem:[#allocation1 + $0x28] sm:$0xff pattern:$0x75316420]  ;;  %v661_v55 = vadd.f32 %v645_v34, %v628_v36 }
 0x177   : > { %v1918_v10 = vsel %vm1917_vm9, %v6384_v42, %v1914_v27  ;;  %2827 = vmatpush.bf16.msra.mxu1 %v2297_v18  ;;  %2200 = vst [vmem:[#allocation2 + $0x158] sm:$0xf0] %v2136_v38  ;;  %v2266_v5 = vld [vmem:[#allocation2 + $0xc0] sm:$0xff] }
 0x178   : > { %v1923_v37 = vsel %vm1920_vm10, %v1922_v43, %v1918_v10  ;;  %2201 = vst [vmem:[#allocation2 + $0x10] sm:$0xf0] %v2137_v23  ;;  %v2298_v42 = vpack.c.bf16 %v2266_v5, %v6304_v29  ;;  %v6548_v10 = vpop.permute.xlu0 %2320 }
 0x179   : > { %3697 = vst [vmem:[#allocation1 + $0x20] ss:$2 sm:$0xff] %v5424_v53  ;;  %v2267_v61 = vld [vmem:[#allocation2 + $0x1c0] sm:$0xff] }
 0x17a   : > { %v6475_v11 = vpop.f32.mrf.mxu0  ;;  %2131 = vst [vmem:[#allocation1 + $0x31] ss:$2 sm:$0xff] %v661_v55  ;;  %v2299_v13 = vpack.c.bf16 %v2267_v61, %v6373_v26 }
 0x17b   : > { %v6478_v12 = vpop.f32.mrf.mxu1 }
 0x17d   : > { %v6558_v61 = vpop.permute.xlu1 %2310 }
 0x17e   : > { %v2268_v9 = vld [vmem:[#allocation2 + $0x158] sm:$0xff] }
 0x17f   : > { %v2300_v59 = vpack.c.bf16 %v2268_v9, %v6414_v8  ;;  %v2269_v19 = vld [vmem:[#allocation2 + $0x10] sm:$0xff]  ;;  %v3146_v8 = vld [vmem:[%s7352_s6] sm:$0xf] }
 0x180   : > { %4457 = vmatmul.msk.bf16.vlgmr.msra.gmra.mxu2 %vm2338_vm7, %v6059_v32  ;;  %v2301_v6 = vpack.c.bf16 %v2269_v19, %v6454_v14  ;;  %3149 = vperm.xlu2 %4629, %v3146_v8  }
 0x181   : > { %2846 = vmatpush.bf16.msra.mxu2 %v2298_v42  ;;  %4459 = vmatmul.msk.bf16.vlgmr.msra.gmra.mxu3 %vm2338_vm7, %v6059_v32  ;;  %v2138_v29 = vld.sshfl [vmem:[#allocation1 + $0x30] sm:$0xff pattern:$0x75316420]  ;;  %v2139_v7 = vld.sshfl [vmem:[#allocation1 + $0x38] sm:$0xff pattern:$0x75316420] }
 0x182   : > { %v2359_v3 = vpop.f32.mrf.mxu0  ;;  %2865 = vmatpush.bf16.msra.mxu3 %v2299_v13  ;;  %2202 = vst [vmem:[#allocation2 + $0x58] sm:$0xf0] %v2138_v29 }
 0x183   : > { %v6485_v62 = vpop.f32.mrf.mxu1  ;;  %v6489_v31 = vpop.f32.mrf.mxu2  ;;  %2203 = vst [vmem:[#allocation2 + $0xa0] sm:$0xf0] %v2139_v7  ;;  %v2360_v5 = vadd.f32 %v2359_v3, %v6548_v10  ;;  %v2355_v7 = vadd.f32 %v6409_v2, %v6558_v61 }
 0x184   : > { %v6493_v15 = vpop.f32.mrf.mxu3  ;;  %3699 = vst [vmem:[#allocation1 + $0x30] ss:$2 sm:$0xff] %v5447_v16  ;;  %v2379_v9 = vadd.f32 %v6485_v62, %v6548_v10 }
 0x185   : > { %4454 = vmatmul.msk.bf16.gmra.mxu0 %vm2338_vm7, %v6201_v4  ;;  %v6553_v23 = vpop.permute.xlu2 %2315  ;;  %v2953_v62 = vmax.f32 %v2355_v7, 0.0 }
 0x186   : > { %4456 = vmatmul.msk.bf16.gmra.mxu1 %vm2338_vm7, %v6201_v4 }
 0x189   : > { %v2270_v25 = vld [vmem:[#allocation2 + $0x58] sm:$0xff] }
 0x18a   : > { %v2361_v26 = vpop.f32.mrf.mxu0  ;;  %v2271_v36 = vld [vmem:[#allocation2 + $0xa0] sm:$0xff]  ;;  %v2302_v34 = vpack.c.bf16 %v2270_v25, %v6461_v52  ;;  %v3018_v25 = vmax.f32 %v2379_v9, 0.0 }
 0x18b   : > { %v2380_v45 = vpop.f32.mrf.mxu1  ;;  %v6498_v41 = vpop.f32.mrf.mxu2  ;;  %v2303_v27 = vpack.c.bf16 %v2271_v36, %v1923_v37  ;;  %v2362_v38 = vadd.f32 %v2361_v26, %v6536_v39  ;;  %v2357_v26 = vadd.f32 %v6475_v11, %v6553_v23 }
 0x18c   : > { %v6500_v1 = vpop.f32.mrf.mxu3  ;;  %v2381_v42 = vadd.f32 %v2380_v45, %v6536_v39  ;;  %v2374_v45 = vadd.f32 %v6422_v50, %v6558_v61 }
 0x18d   : > { %v3049_v29 = vmax.f32 %v2362_v38, 0.0  ;;  %v2985_v8 = vmax.f32 %v2357_v26, 0.0 }
 0x18e   : > { %v3050_v19 = vmax.f32 %v2381_v42, 0.0 }
 0x18f   : > { %v3082_v38 = vpack.c.bf16 %v2985_v8, %v2953_v62 }
 0x190   : > { %4458 = vmatmul.msk.bf16.gmra.mxu2 %vm2338_vm7, %v6201_v4 }
 0x191   : > { %4460 = vmatmul.msk.bf16.gmra.mxu3 %vm2338_vm7, %v6201_v4 }
 0x192   : > { %v6504_v40 = vpop.f32.mrf.mxu0 }
 0x193   : > { %v6506_v33 = vpop.f32.mrf.mxu1  ;;  %v6511_v0 = vpop.f32.mrf.mxu2 }
 0x194   : > { %v6515_v54 = vpop.f32.mrf.mxu3 }
 0x195   : > { %4461 = vmatmul.msk.bf16.vlgmr.msrb.gmra.mxu0 %vm2338_vm7, %v6059_v32 }
 0x196   : > { %2884 = vmatpush.bf16.msrb.mxu0 %v2300_v59  ;;  %4463 = vmatmul.msk.bf16.vlgmr.msrb.gmra.mxu1 %vm2338_vm7, %v6059_v32  ;;  %v3017_v59 = vmax.f32 %v2360_v5, 0.0 }
 0x197   : > { %2903 = vmatpush.bf16.msrb.mxu1 %v2301_v6  ;;  %v2376_v6 = vadd.f32 %v6478_v12, %v6553_v23 }
 0x198   : > { %v3114_v2 = vpack.c.bf16 %v3049_v29, %v3017_v59  ;;  %v2398_v29 = vadd.f32 %v6511_v0, %v6548_v10  ;;  %v2395_v59 = vadd.f32 %v6498_v41, %v6553_v23  ;;  %v2412_v41 = vadd.f32 %v6493_v15, %v6558_v61 }
 0x199   : > { %v2986_v12 = vmax.f32 %v2376_v6, 0.0  ;;  %v2414_v6 = vadd.f32 %v6500_v1, %v6553_v23 }
 0x19a   : > { %v6520_v24 = vpop.f32.mrf.mxu0  ;;  %v2987_v8 = vmax.f32 %v2395_v59, 0.0 }
 0x19b   : > { %v6525_v58 = vpop.f32.mrf.mxu1  ;;  %v2399_v44 = vpop.f32.mrf.mxu2 }
 0x19c   : > { %v2418_v47 = vpop.f32.mrf.mxu3  ;;  %v2400_v5 = vadd.f32 %v2399_v44, %v6536_v39 }
 0x19d   : > { %v2419_v7 = vadd.f32 %v2418_v47, %v6536_v39  ;;  %v2393_v47 = vadd.f32 %v6489_v31, %v6558_v61 }
 0x19f   : > { %v3052_v62 = vmax.f32 %v2419_v7, 0.0  ;;  %v2955_v1 = vmax.f32 %v2393_v47, 0.0  ;;  %v2433_v47 = vadd.f32 %v6520_v24, %v6553_v23 }
 0x1a0   : > { %4465 = vmatmul.msk.bf16.vlgmr.msrb.gmra.mxu2 %vm2338_vm7, %v6059_v32 }
 0x1a1   : > { %2922 = vmatpush.bf16.msrb.mxu2 %v2302_v34  ;;  %4467 = vmatmul.msk.bf16.vlgmr.msrb.gmra.mxu3 %vm2338_vm7, %v6059_v32  ;;  %v3115_v34 = vpack.c.bf16 %v3050_v19, %v3018_v25  ;;  %v2417_v19 = vadd.f32 %v6515_v54, %v6548_v10 }
 0x1a2   : > { %v6530_v14 = vpop.f32.mrf.mxu0  ;;  %2941 = vmatpush.bf16.msrb.mxu3 %v2303_v27  ;;  %v2954_v27 = vmax.f32 %v2374_v45, 0.0  ;;  %v3051_v45 = vmax.f32 %v2400_v5, 0.0  ;;  %v3084_v5 = vpack.c.bf16 %v2987_v8, %v2955_v1 }
 0x1a3   : > { %v6534_v46 = vpop.f32.mrf.mxu1  ;;  %v6538_v43 = vpop.f32.mrf.mxu2  ;;  %v3020_v25 = vmax.f32 %v2417_v19, 0.0 }
 0x1a4   : > { %v6542_v52 = vpop.f32.mrf.mxu3  ;;  %v3083_v26 = vpack.c.bf16 %v2986_v12, %v2954_v27  ;;  %v2988_v27 = vmax.f32 %v2414_v6, 0.0 }
 0x1a5   : > { %4462 = vmatmul.msk.bf16.gmra.mxu0 %vm2338_vm7, %v6201_v4  ;;  %v3117_v12 = vpack.c.bf16 %v3052_v62, %v3020_v25  ;;  %v2431_v62 = vadd.f32 %v6504_v40, %v6558_v61 }
 0x1a6   : > { %4464 = vmatmul.msk.bf16.gmra.mxu1 %vm2338_vm7, %v6201_v4 }
 0x1aa   : > { %v6546_v18 = vpop.f32.mrf.mxu0 }
 0x1ab   : > { %v6551_v37 = vpop.f32.mrf.mxu1  ;;  %v6555_v55 = vpop.f32.mrf.mxu2 }
 0x1ac   : > { %v6561_v13 = vpop.f32.mrf.mxu3  ;;  %v2457_v6 = vadd.f32 %v6551_v37, %v6536_v39  ;;  %v2450_v37 = vadd.f32 %v6506_v33, %v6558_v61 }
 0x1ae   : > { %v3054_v40 = vmax.f32 %v2457_v6, 0.0  ;;  %v2958_v33 = vmax.f32 %v2450_v37, 0.0 }
 0x1b0   : > { %4466 = vmatmul.msk.bf16.gmra.mxu2 %vm2338_vm7, %v6201_v4 }
 0x1b1   : > { %4468 = vmatmul.msk.bf16.gmra.mxu3 %vm2338_vm7, %v6201_v4 }
 0x1b2   : > { %v6571_v3 = vpop.f32.mrf.mxu0 }
 0x1b3   : > { %v6579_v11 = vpop.f32.mrf.mxu1  ;;  %v6581_v36 = vpop.f32.mrf.mxu2 }
 0x1b4   : > { %v6585_v50 = vpop.f32.mrf.mxu3 }
 0x1b5   : > { %4469 = vmatmul.msk.bf16.vlgmr.msra.gmra.mxu0 %vm2338_vm7, %v6059_v32 }
 0x1b6   : > { %3162 = vmatpush.bf16.msra.mxu0 %v3114_v2  ;;  %4471 = vmatmul.msk.bf16.vlgmr.msra.gmra.mxu1 %vm2338_vm7, %v6059_v32  ;;  %v3019_v2 = vmax.f32 %v2398_v29, 0.0  ;;  %v2956_v29 = vmax.f32 %v2412_v41, 0.0  ;;  %v2957_v41 = vmax.f32 %v2431_v62, 0.0  ;;  %v2474_v62 = vadd.f32 %v6581_v36, %v6548_v10 }
 0x1b7   : > { %3175 = vmatpush.bf16.msra.mxu1 %v3115_v34  ;;  %v2490_v36 = vadd.f32 %v6561_v13, %v6553_v23 }
 0x1b8   : > { %v3116_v34 = vpack.c.bf16 %v3051_v45, %v3019_v2  ;;  %v3085_v7 = vpack.c.bf16 %v2988_v27, %v2956_v29  ;;  %v2436_v45 = vadd.f32 %v6530_v14, %v6548_v10  ;;  %v2989_v27 = vmax.f32 %v2433_v47, 0.0 }
 0x1ba   : > { %3163 = vmatpush.bf16.msra.mxu0 %v3082_v38  ;;  %v6590_v42 = vpop.f32.mrf.mxu0  ;;  %v3021_v25 = vmax.f32 %v2436_v45, 0.0 }
 0x1bb   : > { %v6595_v9 = vpop.f32.mrf.mxu1  ;;  %v2475_v44 = vpop.f32.mrf.mxu2  ;;  %3176 = vmatpush.bf16.msra.mxu1 %v3083_v26 }
 0x1bc   : > { %v2494_v0 = vpop.f32.mrf.mxu3  ;;  %v2476_v45 = vadd.f32 %v2475_v44, %v6536_v39 }
 0x1bd   : > { %v2495_v47 = vadd.f32 %v2494_v0, %v6536_v39  ;;  %v3023_v0 = vmax.f32 %v2474_v62, 0.0 }
 0x1be   : > { %v3055_v37 = vmax.f32 %v2476_v45, 0.0 }
 0x1c0   : > { %4473 = vmatmul.msk.bf16.vlgmr.msra.gmra.mxu2 %vm2338_vm7, %v6059_v32 }
 0x1c1   : > { %3188 = vmatpush.bf16.msra.mxu2 %v3116_v34  ;;  %4475 = vmatmul.msk.bf16.vlgmr.msra.gmra.mxu3 %vm2338_vm7, %v6059_v32  ;;  %v2438_v32 = vadd.f32 %v6546_v18, %v6536_v39  ;;  %v2455_v18 = vadd.f32 %v6534_v46, %v6548_v10  ;;  %v2452_v34 = vadd.f32 %v6525_v58, %v6553_v23 }
 0x1c2   : > { %v6609_v54 = vpop.f32.mrf.mxu0  ;;  %3201 = vmatpush.bf16.msra.mxu3 %v3117_v12 }
 0x1c3   : > { %v6613_v38 = vpop.f32.mrf.mxu1  ;;  %v6615_v31 = vpop.f32.mrf.mxu2  ;;  %v3053_v8 = vmax.f32 %v2438_v32, 0.0  ;;  %v3022_v46 = vmax.f32 %v2455_v18, 0.0  ;;  %v2990_v58 = vmax.f32 %v2452_v34, 0.0  ;;  %v3086_v32 = vpack.c.bf16 %v2989_v27, %v2957_v41 }
 0x1c4   : > { %v6619_v15 = vpop.f32.mrf.mxu3  ;;  %v2471_v18 = vadd.f32 %v6555_v55, %v6553_v23  ;;  %v3056_v41 = vmax.f32 %v2495_v47, 0.0  ;;  %v2488_v55 = vadd.f32 %v6542_v52, %v6558_v61 }
 0x1c5   : > { %4470 = vmatmul.msk.bf16.gmra.mxu0 %vm2338_vm7, %v6201_v4  ;;  %3189 = vmatpush.bf16.msra.mxu2 %v3084_v5  ;;  %v3118_v24 = vpack.c.bf16 %v3053_v8, %v3021_v25  ;;  %v4760_v5 = vld [vmem:[%s7349_s3] sm:$0xff]  ;;  %v3119_v29 = vpack.c.bf16 %v3054_v40, %v3022_v46  ;;  %v3087_v8 = vpack.c.bf16 %v2990_v58, %v2958_v33 }
 0x1c6   : > { %4472 = vmatmul.msk.bf16.gmra.mxu1 %vm2338_vm7, %v6201_v4  ;;  %3202 = vmatpush.bf16.msra.mxu3 %v3085_v7  ;;  %v2493_v25 = vadd.f32 %v6585_v50, %v6548_v10  ;;  %v2469_v40 = vadd.f32 %v6538_v43, %v6558_v61  ;;  %v3120_v46 = vpack.c.bf16 %v3055_v37, %v3023_v0  ;;  %v2960_v43 = vmax.f32 %v2488_v55, 0.0 }
 0x1c7   : > { %v2512_v37 = vadd.f32 %v6609_v54, %v6548_v10  ;;  %v2507_v0 = vadd.f32 %v6571_v3, %v6558_v61  ;;  %v2526_v3 = vadd.f32 %v6579_v11, %v6558_v61 }
 0x1c8   : > { %v3024_v50 = vmax.f32 %v2493_v25, 0.0  ;;  %v2959_v58 = vmax.f32 %v2469_v40, 0.0 }
 0x1c9   : > { %v2962_v11 = vmax.f32 %v2526_v3, 0.0 }
 0x1ca   : > { %v6623_v26 = vpop.f32.mrf.mxu0 }
 0x1cb   : > { %v6627_v59 = vpop.f32.mrf.mxu1  ;;  %v6629_v19 = vpop.f32.mrf.mxu2 }
 0x1cc   : > { %v6635_v2 = vpop.f32.mrf.mxu3  ;;  %v2533_v40 = vadd.f32 %v6627_v59, %v6536_v39  ;;  %v6721_v59 = vld [vmem:[%s7351_s5] sm:$0x3] }
 0x1d0   : > { %4474 = vmatmul.msk.bf16.gmra.mxu2 %vm2338_vm7, %v6201_v4 }
 0x1d1   : > { %4476 = vmatmul.msk.bf16.gmra.mxu3 %vm2338_vm7, %v6201_v4 }
 0x1d2   : > { %v6645_v14 = vpop.f32.mrf.mxu0 }
 0x1d3   : > { %v6653_v12 = vpop.f32.mrf.mxu2  ;;  %v6655_v1 = vpop.f32.mrf.mxu1 }
 0x1d4   : > { %v6661_v7 = vpop.f32.mrf.mxu3 }
 0x1d5   : > { %4477 = vmatmul.msk.bf16.vlgmr.msrb.gmra.mxu0 %vm2338_vm7, %v4760_v5 }
 0x1d6   : > { %3214 = vmatpush.bf16.msrb.mxu0 %v3118_v24  ;;  %4479 = vmatmul.msk.bf16.vlgmr.msrb.gmra.mxu1 %vm2338_vm7, %v4760_v5  ;;  %v2991_v24 = vmax.f32 %v2471_v18, 0.0 }
 0x1d7   : > { %3227 = vmatpush.bf16.msrb.mxu1 %v3119_v29  ;;  %v2992_v29 = vmax.f32 %v2490_v36, 0.0 }
 0x1d8   : > { %v3088_v45 = vpack.c.bf16 %v2991_v24, %v2959_v58  ;;  %v3025_v24 = vmax.f32 %v2512_v37, 0.0 }
 0x1d9   : > { %v3089_v47 = vpack.c.bf16 %v2992_v29, %v2960_v43 }
 0x1da   : > { %3215 = vmatpush.bf16.msrb.mxu0 %v3086_v32  ;;  %v6665_v6 = vpop.f32.mrf.mxu0  ;;  %v3121_v32 = vpack.c.bf16 %v3056_v41, %v3024_v50  ;;  %v2509_v41 = vadd.f32 %v6590_v42, %v6553_v23  ;;  %v2528_v42 = vadd.f32 %v6595_v9, %v6553_v23  ;;  %v3058_v50 = vmax.f32 %v2533_v40, 0.0 }
 0x1db   : > { %v6674_v34 = vpop.f32.mrf.mxu2  ;;  %3228 = vmatpush.bf16.msrb.mxu1 %v3087_v8  ;;  %v6676_v44 = vpop.f32.mrf.mxu1  ;;  %v2550_v40 = vadd.f32 %v6653_v12, %v6548_v10  ;;  %v2566_v12 = vadd.f32 %v6635_v2, %v6553_v23 }
 0x1dc   : > { %v2570_v27 = vpop.f32.mrf.mxu3 }
 0x1e0   : > { %4481 = vmatmul.msk.bf16.vlgmr.msrb.gmra.mxu2 %vm2338_vm7, %v4760_v5 }
 0x1e1   : > { %3240 = vmatpush.bf16.msrb.mxu2 %v3120_v46  ;;  %4483 = vmatmul.msk.bf16.vlgmr.msrb.gmra.mxu3 %vm2338_vm7, %v4760_v5  ;;  %v2514_v5 = vadd.f32 %v6623_v26, %v6536_v39  ;;  %v2531_v26 = vadd.f32 %v6613_v38, %v6548_v10  ;;  %v2961_v38 = vmax.f32 %v2507_v0, 0.0  ;;  %v2993_v46 = vmax.f32 %v2509_v41, 0.0 }
 0x1e2   : > { %v6685_v33 = vpop.f32.mrf.mxu0  ;;  %3253 = vmatpush.bf16.msrb.mxu3 %v3121_v32  ;;  %v2571_v0 = vadd.f32 %v2570_v27, %v6536_v39 }
 0x1e3   : > { %v6688_v13 = vpop.f32.mrf.mxu2  ;;  %v6690_v62 = vpop.f32.mrf.mxu1  ;;  %v3057_v55 = vmax.f32 %v2514_v5, 0.0  ;;  %v3026_v29 = vmax.f32 %v2531_v26, 0.0  ;;  %v3090_v5 = vpack.c.bf16 %v2993_v46, %v2961_v38  ;;  %v2547_v26 = vadd.f32 %v6629_v19, %v6553_v23 }
 0x1e4   : > { %v6694_v52 = vpop.f32.mrf.mxu3  ;;  %v2588_v27 = vadd.f32 %v6685_v33, %v6548_v10  ;;  %v3060_v38 = vmax.f32 %v2571_v0, 0.0  ;;  %v2607_v33 = vadd.f32 %v6690_v62, %v6548_v10 }
 0x1e5   : > { %4478 = vmatmul.msk.bf16.gmra.mxu0 %vm2338_vm7, %v6201_v4  ;;  %3241 = vmatpush.bf16.msrb.mxu2 %v3088_v45  ;;  %v3122_v58 = vpack.c.bf16 %v3057_v55, %v3025_v24  ;;  %v2994_v45 = vmax.f32 %v2528_v42, 0.0  ;;  %v2569_v24 = vadd.f32 %v6661_v7, %v6548_v10  ;;  %v2564_v7 = vadd.f32 %v6619_v15, %v6558_v61 }
 0x1e6   : > { %4480 = vmatmul.msk.bf16.gmra.mxu1 %vm2338_vm7, %v6201_v4  ;;  %3254 = vmatpush.bf16.msrb.mxu3 %v3089_v47  ;;  %v3123_v47 = vpack.c.bf16 %v3058_v50, %v3026_v29  ;;  %v2545_v50 = vadd.f32 %v6615_v31, %v6558_v61  ;;  %v2585_v31 = vadd.f32 %v6665_v6, %v6553_v23 }
 0x1e7   : > { %v3091_v41 = vpack.c.bf16 %v2994_v45, %v2962_v11  ;;  %v2995_v11 = vmax.f32 %v2547_v26, 0.0  ;;  %v3028_v2 = vmax.f32 %v2569_v24, 0.0  ;;  %v2604_v6 = vadd.f32 %v6676_v44, %v6553_v23 }
 0x1e8   : > { %v2964_v62 = vmax.f32 %v2564_v7, 0.0  ;;  %v3030_v26 = vmax.f32 %v2607_v33, 0.0 }
 0x1e9   : > { %v2998_v44 = vmax.f32 %v2604_v6, 0.0 }
 0x1ea   : > { %v2589_v8 = vpop.f32.mrf.mxu0 }
 0x1eb   : > { %v6700_v18 = vpop.f32.mrf.mxu2  ;;  %v2608_v25 = vpop.f32.mrf.mxu1  ;;  %v2590_v55 = vadd.f32 %v2589_v8, %v6536_v39  ;;  %v3027_v8 = vmax.f32 %v2550_v40, 0.0 }
 0x1ec   : > { %v6706_v36 = vpop.f32.mrf.mxu3  ;;  %v2609_v19 = vadd.f32 %v2608_v25, %v6536_v39  ;;  %v3029_v25 = vmax.f32 %v2588_v27, 0.0 }
 0x1ed   : > { %v3061_v29 = vmax.f32 %v2590_v55, 0.0 }
 0x1ee   : > { %v3062_v40 = vmax.f32 %v2609_v19, 0.0 }
 0x1ef   : > { %v3126_v55 = vpack.c.bf16 %v3061_v29, %v3029_v25 }
 0x1f0   : > { %4482 = vmatmul.msk.bf16.gmra.mxu2 %vm2338_vm7, %v6201_v4 }
 0x1f1   : > { %4484 = vmatmul.msk.bf16.gmra.mxu3 %vm2338_vm7, %v6201_v4  ;;  %v2552_v4 = vadd.f32 %v6674_v34, %v6536_v39  ;;  %vm3620_vm7 = vcmask 1043456  }
 0x1f2   : > { %v6716_v54 = vpop.f32.mrf.mxu0 }
 0x1f3   : > { %v6729_v32 = vpop.f32.mrf.mxu2  ;;  %v6731_v43 = vpop.f32.mrf.mxu1  ;;  %v3059_v3 = vmax.f32 %v2552_v4, 0.0  ;;  %v3125_v4 = vpack.c.bf16 %v3060_v38, %v3028_v2  ;;  %v2623_v2 = vadd.f32 %v6700_v18, %v6553_v23  ;;  %v2659_v6 = vadd.f32 %v6716_v54, %v6558_v61 }
 0x1f4   : > { %v6735_v9 = vpop.f32.mrf.mxu3 }
 0x1f5   : > { %4485 = vmatmul.msk.bf16.vlgmr.msra.gmra.mxu0 %vm3152_vm11, %v6721_v59  ;;  %v3124_v45 = vpack.c.bf16 %v3059_v3, %v3027_v8 }
 0x1f6   : > { %3266 = vmatpush.bf16.msra.mxu0 %v3122_v58  ;;  %4486 = vmatmul.msk.bf16.vlgmr.msra.gmra.mxu1 %vm3152_vm11, %v6721_v59  ;;  %v2583_v58 = vadd.f32 %v6645_v14, %v6558_v61  ;;  %v2602_v14 = vadd.f32 %v6655_v1, %v6558_v61 }
 0x1f7   : > { %3279 = vmatpush.bf16.msra.mxu1 %v3123_v47  ;;  %v2963_v47 = vmax.f32 %v2545_v50, 0.0 }
 0x1f8   : > { %v2965_v0 = vmax.f32 %v2583_v58, 0.0  ;;  %v2966_v1 = vmax.f32 %v2602_v14, 0.0  ;;  %v2626_v58 = vadd.f32 %v6729_v32, %v6548_v10  ;;  %v2642_v32 = vadd.f32 %v6706_v36, %v6553_v23 }
 0x1f9   : > { %v3092_v3 = vpack.c.bf16 %v2995_v11, %v2963_v47 }
 0x1fa   : > { %3267 = vmatpush.bf16.msra.mxu0 %v3090_v5  ;;  %v6741_v37 = vpop.f32.mrf.mxu0  ;;  %v2996_v5 = vmax.f32 %v2566_v12, 0.0  ;;  %v3127_v12 = vpack.c.bf16 %v3062_v40, %v3030_v26  ;;  %v3095_v29 = vpack.c.bf16 %v2998_v44, %v2966_v1  ;;  %v3031_v25 = vmax.f32 %v2626_v58, 0.0 }
 0x1fb   : > { %v2627_v34 = vpop.f32.mrf.mxu2  ;;  %3280 = vmatpush.bf16.msra.mxu1 %v3091_v41  ;;  %v6751_v42 = vpop.f32.mrf.mxu1  ;;  %v2997_v41 = vmax.f32 %v2585_v31, 0.0  ;;  %v2661_v40 = vadd.f32 %v6741_v37, %v6553_v23  ;;  %v2969_v44 = vmax.f32 %v2659_v6, 0.0 }
 0x1fc   : > { %v2646_v46 = vpop.f32.mrf.mxu3  ;;  %v3093_v8 = vpack.c.bf16 %v2996_v5, %v2964_v62  ;;  %v2628_v19 = vadd.f32 %v2627_v34, %v6536_v39  ;;  %v2621_v5 = vadd.f32 %v6688_v13, %v6558_v61  ;;  %v3000_v62 = vmax.f32 %v2642_v32, 0.0 }
 0x1fd   : > { %v3094_v38 = vpack.c.bf16 %v2997_v41, %v2965_v0  ;;  %v2647_v31 = vadd.f32 %v2646_v46, %v6536_v39  ;;  %v2999_v0 = vmax.f32 %v2623_v2, 0.0  ;;  %v2680_v37 = vadd.f32 %v6751_v42, %v6553_v23 }
 0x1fe   : > { %v3063_v33 = vmax.f32 %v2628_v19, 0.0 }
 0x1ff   : > { %v3064_v14 = vmax.f32 %v2647_v31, 0.0  ;;  %v3002_v42 = vmax.f32 %v2680_v37, 0.0 }
 0x200   : > { %4487 = vmatmul.msk.bf16.vlgmr.msra.gmra.mxu2 %vm3152_vm11, %v6721_v59  ;;  %v3128_v36 = vpack.c.bf16 %v3063_v33, %v3031_v25 }
 0x201   : > { %3292 = vmatpush.bf16.msra.mxu2 %v3124_v45  ;;  %4488 = vmatmul.msk.bf16.vlgmr.msra.gmra.mxu3 %vm3152_vm11, %v6721_v59  ;;  %v2645_v45 = vadd.f32 %v6735_v9, %v6548_v10  ;;  %v2640_v9 = vadd.f32 %v6694_v52, %v6558_v61  ;;  %v2678_v52 = vadd.f32 %v6731_v43, %v6558_v61 }
 0x202   : > { %v2663_v15 = vpop.f32.mrf.mxu0  ;;  %3305 = vmatpush.bf16.msra.mxu3 %v3125_v4 }
 0x203   : > { %v6776_v24 = vpop.f32.mrf.mxu2  ;;  %v2682_v50 = vpop.f32.mrf.mxu1  ;;  %v2664_v46 = vadd.f32 %v2663_v15, %v6548_v10  ;;  %v3032_v41 = vmax.f32 %v2645_v45, 0.0  ;;  %v2970_v43 = vmax.f32 %v2678_v52, 0.0 }
 0x204   : > { %v6780_v27 = vpop.f32.mrf.mxu3  ;;  %v2683_v15 = vadd.f32 %v2682_v50, %v6548_v10 }
 0x205   : > { %4489 = vmatmul.msk.bf16.vlgmr.msrb.gmra.mxu0 %vm3152_vm11, %v6721_v59  ;;  %3293 = vmatpush.bf16.msra.mxu2 %v3092_v3  ;;  %v3033_v26 = vmax.f32 %v2664_v46, 0.0  ;;  %v3129_v54 = vpack.c.bf16 %v3064_v14, %v3032_v41  ;;  %v3099_v33 = vpack.c.bf16 %v3002_v42, %v2970_v43  ;;  %v2716_v41 = vadd.f32 %v6780_v27, %v6558_v61 }
 0x206   : > { %3318 = vmatpush.bf16.msrb.mxu0 %v3126_v55  ;;  %4490 = vmatmul.msk.bf16.vlgmr.msrb.gmra.mxu1 %vm3152_vm11, %v6721_v59  ;;  %v2967_v55 = vmax.f32 %v2621_v5, 0.0 }
 0x207   : > { %3306 = vmatpush.bf16.msra.mxu3 %v3093_v8  ;;  %3331 = vmatpush.bf16.msrb.mxu1 %v3127_v12  ;;  %v3001_v12 = vmax.f32 %v2661_v40, 0.0  ;;  %v2968_v8 = vmax.f32 %v2640_v9, 0.0  ;;  %v2972_v27 = vmax.f32 %v2716_v41, 0.0 }
 0x209   : > { %v3098_v2 = vpack.c.bf16 %v3001_v12, %v2969_v44 }
 0x20a   : > { %3319 = vmatpush.bf16.msrb.mxu0 %v3094_v38  ;;  %v2665_v7 = vpop.f32.mrf.mxu0  ;;  %v3034_v38 = vmax.f32 %v2683_v15, 0.0 }
 0x20b   : > { %v2666_v11 = vadd.f32 %v2665_v7, %v6536_v39  ;;  %v2698_v34 = vpop.f32.mrf.mxu2  ;;  %3332 = vmatpush.bf16.msrb.mxu1 %v3095_v29  ;;  %v2684_v47 = vpop.f32.mrf.mxu1  ;;  %v3096_v7 = vpack.c.bf16 %v2999_v0, %v2967_v55 }
 0x20c   : > { %v2717_v4 = vpop.f32.mrf.mxu3  ;;  %v2685_v18 = vadd.f32 %v2684_v47, %v6536_v39  ;;  %v2699_v46 = vadd.f32 %v2698_v34, %v6553_v23 }
 0x20d   : > { %v3065_v13 = vmax.f32 %v2666_v11, 0.0  ;;  %v3097_v11 = vpack.c.bf16 %v3000_v62, %v2968_v8  ;;  %v2718_v6 = vadd.f32 %v2717_v4, %v6553_v23 }
 0x20e   : > { %v3066_v1 = vmax.f32 %v2685_v18, 0.0  ;;  %v2697_v18 = vadd.f32 %v6776_v24, %v6558_v61 }
 0x20f   : > { %v3130_v50 = vpack.c.bf16 %v3065_v13, %v3033_v26  ;;  %v3004_v24 = vmax.f32 %v2718_v6, 0.0 }
 0x210   : > { %4491 = vmatmul.msk.bf16.vlgmr.msrb.gmra.mxu2 %vm3152_vm11, %v6721_v59  ;;  %v3131_v31 = vpack.c.bf16 %v3066_v1, %v3034_v38  ;;  %v2971_v26 = vmax.f32 %v2697_v18, 0.0 }
 0x211   : > { %3344 = vmatpush.bf16.msrb.mxu2 %v3128_v36  ;;  %4492 = vmatmul.msk.bf16.vlgmr.msrb.gmra.mxu3 %vm3152_vm11, %v6721_v59  ;;  %v3003_v36 = vmax.f32 %v2699_v46, 0.0  ;;  %v3101_v44 = vpack.c.bf16 %v3004_v24, %v2972_v27 }
 0x212   : > { %v6808_v3 = vpop.f32.mrf.mxu0  ;;  %3357 = vmatpush.bf16.msrb.mxu3 %v3129_v54 }
 0x213   : > { %v2701_v19 = vpop.f32.mrf.mxu2  ;;  %v6816_v58 = vpop.f32.mrf.mxu1  ;;  %v3100_v37 = vpack.c.bf16 %v3003_v36, %v2971_v26 }
 0x214   : > { %v2720_v29 = vpop.f32.mrf.mxu3  ;;  %v2702_v47 = vadd.f32 %v2701_v19, %v6548_v10 }
 0x215   : > { %4493 = vmatmul.msk.bf16.vlgmr.msra.gmra.mxu0 %vm3152_vm11, %v6721_v59  ;;  %3345 = vmatpush.bf16.msrb.mxu2 %v3096_v7  ;;  %v2721_v25 = vadd.f32 %v2720_v29, %v6548_v10  ;;  %v2735_v29 = vadd.f32 %v6808_v3, %v6558_v61 }
 0x216   : > { %3370 = vmatpush.bf16.msra.mxu0 %v3130_v50  ;;  %4494 = vmatmul.msk.bf16.vlgmr.msra.gmra.mxu1 %vm3152_vm11, %v6721_v59  ;;  %v3035_v40 = vmax.f32 %v2702_v47, 0.0 }
 0x217   : > { %3358 = vmatpush.bf16.msrb.mxu3 %v3097_v11  ;;  %3383 = vmatpush.bf16.msra.mxu1 %v3131_v31  ;;  %v3036_v15 = vmax.f32 %v2721_v25, 0.0 }
 0x21a   : > { %3371 = vmatpush.bf16.msra.mxu0 %v3098_v2  ;;  %v2736_v45 = vpop.f32.mrf.mxu0 }
 0x21b   : > { %v2703_v5 = vpop.f32.mrf.mxu2  ;;  %3384 = vmatpush.bf16.msra.mxu1 %v3099_v33  ;;  %v2755_v32 = vpop.f32.mrf.mxu1  ;;  %v2737_v38 = vadd.f32 %v2736_v45, %v6553_v23  ;;  %v2754_v45 = vadd.f32 %v6816_v58, %v6558_v61 }
 0x21c   : > { %v2704_v14 = vadd.f32 %v2703_v5, %v6536_v39  ;;  %v2722_v9 = vpop.f32.mrf.mxu3  ;;  %v2756_v2 = vadd.f32 %v2755_v32, %v6553_v23 }
 0x21d   : > { %v2723_v0 = vadd.f32 %v2722_v9, %v6536_v39  ;;  %v3005_v5 = vmax.f32 %v2737_v38, 0.0  ;;  %v2974_v6 = vmax.f32 %v2754_v45, 0.0 }
 0x21e   : > { %v3067_v13 = vmax.f32 %v2704_v14, 0.0  ;;  %v2973_v14 = vmax.f32 %v2735_v29, 0.0  ;;  %v3006_v3 = vmax.f32 %v2756_v2, 0.0 }
 0x21f   : > { %v3068_v55 = vmax.f32 %v2723_v0, 0.0 }
 0x220   : > { %v3132_v34 = vpack.c.bf16 %v3067_v13, %v3035_v40  ;;  %4495 = vmatmul.msk.bf16.vlgmr.msra.gmra.mxu2 %vm3152_vm11, %v6721_v59  ;;  %v3102_v32 = vpack.c.bf16 %v3005_v5, %v2973_v14  ;;  %v3103_v0 = vpack.c.bf16 %v3006_v3, %v2974_v6 }
 0x221   : > { %v3133_v52 = vpack.c.bf16 %v3068_v55, %v3036_v15  ;;  %4496 = vmatmul.msk.bf16.vlgmr.msra.gmra.mxu3 %vm3152_vm11, %v6721_v59 }
 0x222   : > { %v2739_v62 = vpop.f32.mrf.mxu0  ;;  %3396 = vmatpush.bf16.msra.mxu2 %v3132_v34 }
 0x223   : > { %v2772_v4 = vpop.f32.mrf.mxu2  ;;  %v2758_v54 = vpop.f32.mrf.mxu1  ;;  %3409 = vmatpush.bf16.msra.mxu3 %v3133_v52  ;;  %v2740_v12 = vadd.f32 %v2739_v62, %v6548_v10 }
 0x224   : > { %v2791_v1 = vpop.f32.mrf.mxu3  ;;  %v2759_v19 = vadd.f32 %v2758_v54, %v6548_v10  ;;  %v2773_v24 = vadd.f32 %v2772_v4, %v6558_v61 }
 0x225   : > { %4497 = vmatmul.msk.bf16.vlgmr.msrb.gmra.mxu0 %vm3152_vm11, %v6721_v59  ;;  %v3037_v7 = vmax.f32 %v2740_v12, 0.0  ;;  %v2792_v12 = vadd.f32 %v2791_v1, %v6558_v61 }
 0x226   : > { %3397 = vmatpush.bf16.msra.mxu2 %v3100_v37  ;;  %4498 = vmatmul.msk.bf16.vlgmr.msrb.gmra.mxu1 %vm3152_vm11, %v6721_v59  ;;  %v3038_v46 = vmax.f32 %v2759_v19, 0.0 }
 0x227   : > { %3410 = vmatpush.bf16.msra.mxu3 %v3101_v44  ;;  %v2976_v1 = vmax.f32 %v2792_v12, 0.0 }
 0x22a   : > { %v2741_v50 = vpop.f32.mrf.mxu0 }
 0x22b   : > { %v2742_v8 = vadd.f32 %v2741_v50, %v6536_v39  ;;  %v2774_v43 = vpop.f32.mrf.mxu2  ;;  %v2760_v31 = vpop.f32.mrf.mxu1 }
 0x22c   : > { %v2761_v11 = vadd.f32 %v2760_v31, %v6536_v39  ;;  %v2793_v33 = vpop.f32.mrf.mxu3  ;;  %v2775_v55 = vadd.f32 %v2774_v43, %v6553_v23  ;;  %v2975_v43 = vmax.f32 %v2773_v24, 0.0 }
 0x22d   : > { %v3069_v42 = vmax.f32 %v2742_v8, 0.0  ;;  %v2794_v54 = vadd.f32 %v2793_v33, %v6553_v23 }
 0x22e   : > { %v3070_v25 = vmax.f32 %v2761_v11, 0.0  ;;  %v3007_v50 = vmax.f32 %v2775_v55, 0.0 }
 0x22f   : > { %v3134_v47 = vpack.c.bf16 %v3069_v42, %v3037_v7  ;;  %v3008_v42 = vmax.f32 %v2794_v54, 0.0 }
 0x230   : > { %v3135_v18 = vpack.c.bf16 %v3070_v25, %v3038_v46  ;;  %4499 = vmatmul.msk.bf16.vlgmr.msrb.gmra.mxu2 %vm3152_vm11, %v6721_v59  ;;  %v3104_v11 = vpack.c.bf16 %v3007_v50, %v2975_v43  ;;  %v6892_v50 = vld.sshfl [vmem:[#allocation1] sm:$0xff pattern:$0x75316420] }
 0x231   : > { %3422 = vmatpush.bf16.msrb.mxu0 %v3134_v47  ;;  %4500 = vmatmul.msk.bf16.vlgmr.msrb.gmra.mxu3 %vm3152_vm11, %v6721_v59  ;;  %v3105_v33 = vpack.c.bf16 %v3008_v42, %v2976_v1 }
 0x232   : > { %v2810_v9 = vpop.f32.mrf.mxu0  ;;  %3435 = vmatpush.bf16.msrb.mxu1 %v3135_v18 }
 0x233   : > { %v2777_v40 = vpop.f32.mrf.mxu2  ;;  %v2829_v13 = vpop.f32.mrf.mxu1  ;;  %v2811_v14 = vadd.f32 %v2810_v9, %v6558_v61 }
 0x234   : > { %v2796_v58 = vpop.f32.mrf.mxu3  ;;  %v2778_v36 = vadd.f32 %v2777_v40, %v6548_v10  ;;  %v2830_v55 = vadd.f32 %v2829_v13, %v6558_v61 }
 0x235   : > { %4501 = vmatmul.msk.bf16.vlgmr.msra.gmra.mxu0 %vm3152_vm11, %v6721_v59  ;;  %v2797_v62 = vadd.f32 %v2796_v58, %v6548_v10 }
 0x236   : > { %3423 = vmatpush.bf16.msrb.mxu0 %v3102_v32  ;;  %4502 = vmatmul.msk.bf16.vlgmr.msra.gmra.mxu1 %vm3152_vm11, %v6721_v59  ;;  %v3039_v27 = vmax.f32 %v2778_v36, 0.0 }
 0x237   : > { %3436 = vmatpush.bf16.msrb.mxu1 %v3103_v0  ;;  %v3040_v8 = vmax.f32 %v2797_v62, 0.0 }
 0x23a   : > { %v2812_v41 = vpop.f32.mrf.mxu0 }
 0x23b   : > { %v2779_v15 = vpop.f32.mrf.mxu2  ;;  %v2831_v34 = vpop.f32.mrf.mxu1  ;;  %v2813_v46 = vadd.f32 %v2812_v41, %v6553_v23 }
 0x23c   : > { %v2780_v26 = vadd.f32 %v2779_v15, %v6536_v39  ;;  %v2798_v52 = vpop.f32.mrf.mxu3  ;;  %v2832_v40 = vadd.f32 %v2831_v34, %v6553_v23 }
 0x23d   : > { %v2799_v44 = vadd.f32 %v2798_v52, %v6536_v39  ;;  %v3009_v0 = vmax.f32 %v2813_v46, 0.0 }
 0x23e   : > { %v3071_v37 = vmax.f32 %v2780_v26, 0.0  ;;  %v2977_v26 = vmax.f32 %v2811_v14, 0.0  ;;  %v3010_v24 = vmax.f32 %v2832_v40, 0.0 }
 0x23f   : > { %v3072_v19 = vmax.f32 %v2799_v44, 0.0 }
 0x240   : > { %v3136_v38 = vpack.c.bf16 %v3071_v37, %v3039_v27  ;;  %4503 = vmatmul.msk.bf16.vlgmr.msra.gmra.mxu2 %vm3152_vm11, %v6721_v59  ;;  %v3106_v54 = vpack.c.bf16 %v3009_v0, %v2977_v26  ;;  %v2978_v27 = vmax.f32 %v2830_v55, 0.0 }
 0x241   : > { %v3137_v4 = vpack.c.bf16 %v3072_v19, %v3040_v8  ;;  %4504 = vmatmul.msk.bf16.vlgmr.msra.gmra.mxu3 %vm3152_vm11, %v6721_v59  ;;  %v6894_v8 = vld.sshfl [vmem:[#allocation1 + $0x8] sm:$0xff pattern:$0x75316420] }
 0x242   : > { %v2815_v7 = vpop.f32.mrf.mxu0  ;;  %3448 = vmatpush.bf16.msrb.mxu2 %v3136_v38  ;;  %v3107_v13 = vpack.c.bf16 %v3010_v24, %v2978_v27  ;;  %3708 = vst [vmem:[#allocation1] ss:$2 sm:$0xff] %v5486_v56 }
 0x243   : > { %v2848_v31 = vpop.f32.mrf.mxu2  ;;  %v2834_v29 = vpop.f32.mrf.mxu1  ;;  %3461 = vmatpush.bf16.msrb.mxu3 %v3137_v4  ;;  %v2816_v47 = vadd.f32 %v2815_v7, %v6548_v10 }
 0x244   : > { %v2867_v2 = vpop.f32.mrf.mxu3  ;;  %v2835_v45 = vadd.f32 %v2834_v29, %v6548_v10  ;;  %v2849_v29 = vadd.f32 %v2848_v31, %v6558_v61 }
 0x245   : > { %4505 = vmatmul.msk.bf16.vlgmr.msrb.gmra.mxu0 %vm3152_vm11, %v6721_v59  ;;  %v3041_v18 = vmax.f32 %v2816_v47, 0.0  ;;  %v2868_v46 = vadd.f32 %v2867_v2, %v6558_v61 }
 0x246   : > { %3449 = vmatpush.bf16.msrb.mxu2 %v3104_v11  ;;  %4506 = vmatmul.msk.bf16.vlgmr.msrb.gmra.mxu1 %vm3152_vm11, %v6721_v59  ;;  %v3042_v41 = vmax.f32 %v2835_v45, 0.0 }
 0x247   : > { %3462 = vmatpush.bf16.msrb.mxu3 %v3105_v33  ;;  %v2980_v0 = vmax.f32 %v2868_v46, 0.0 }
 0x24a   : > { %v2817_v5 = vpop.f32.mrf.mxu0 }
 0x24b   : > { %v2818_v25 = vadd.f32 %v2817_v5, %v6536_v39  ;;  %v2850_v3 = vpop.f32.mrf.mxu2  ;;  %v2836_v6 = vpop.f32.mrf.mxu1 }
 0x24c   : > { %v2837_v58 = vadd.f32 %v2836_v6, %v6536_v39  ;;  %v2869_v36 = vpop.f32.mrf.mxu3  ;;  %v2851_v43 = vadd.f32 %v2850_v3, %v6553_v23 }
 0x24d   : > { %v3073_v32 = vmax.f32 %v2818_v25, 0.0  ;;  %v2870_v11 = vadd.f32 %v2869_v36, %v6553_v23 }
 0x24e   : > { %v3074_v62 = vmax.f32 %v2837_v58, 0.0  ;;  %v3011_v25 = vmax.f32 %v2851_v43, 0.0 }
 0x24f   : > { %v3138_v15 = vpack.c.bf16 %v3073_v32, %v3041_v18  ;;  %v2979_v32 = vmax.f32 %v2849_v29, 0.0  ;;  %v3012_v6 = vmax.f32 %v2870_v11, 0.0  ;;  %v6925_v29 = vld.sshfl [vmem:[#allocation1 + $0x20] sm:$0xff pattern:$0x75316420] }
 0x250   : > { %v3139_v52 = vpack.c.bf16 %v3074_v62, %v3042_v41  ;;  %4507 = vmatmul.msk.bf16.vlgmr.msrb.gmra.mxu2 %vm3152_vm11, %v6721_v59 }
 0x251   : > { %3474 = vmatpush.bf16.msra.mxu0 %v3138_v15  ;;  %4508 = vmatmul.msk.bf16.vlgmr.msrb.gmra.mxu3 %vm3152_vm11, %v6721_v59  ;;  %v3108_v36 = vpack.c.bf16 %v3011_v25, %v2979_v32  ;;  %v3109_v55 = vpack.c.bf16 %v3012_v6, %v2980_v0 }
 0x252   : > { %v2886_v9 = vpop.f32.mrf.mxu0  ;;  %3487 = vmatpush.bf16.msra.mxu1 %v3139_v52  ;;  %v6915_v52 = vld.sshfl [vmem:[#allocation1 + $0x10] sm:$0xff pattern:$0x75316420] }
 0x253   : > { %v2853_v34 = vpop.f32.mrf.mxu2  ;;  %v6886_v37 = vpop.f32.mrf.mxu1 }
 0x254   : > { %v2872_v44 = vpop.f32.mrf.mxu3  ;;  %v2854_v38 = vadd.f32 %v2853_v34, %v6548_v10 }
 0x255   : > { %3475 = vmatpush.bf16.msra.mxu0 %v3106_v54  ;;  %v2873_v42 = vadd.f32 %v2872_v44, %v6548_v10  ;;  %v2887_v54 = vadd.f32 %v2886_v9, %v6558_v61  ;;  %v6927_v9 = vld.sshfl [vmem:[#allocation1 + $0x28] sm:$0xff pattern:$0x75316420] }
 0x256   : > { %3488 = vmatpush.bf16.msra.mxu1 %v3107_v13  ;;  %v3043_v33 = vmax.f32 %v2854_v38, 0.0  ;;  %3710 = vst [vmem:[#allocation1 + $0x20] ss:$2 sm:$0xff] %v5957_v57 }
 0x257   : > { %v3044_v45 = vmax.f32 %v2873_v42, 0.0 }
 0x258   : > { %4509 = vmatmul.msk.bf16.vlgmr.msra.gmra.mxu0 %vm3152_vm11, %v6721_v59 }
 0x259   : > { %4510 = vmatmul.msk.bf16.vlgmr.msra.gmra.mxu1 %vm3152_vm11, %v6721_v59 }
 0x25a   : > { %v2888_v12 = vpop.f32.mrf.mxu0 }
 0x25b   : > { %v2855_v19 = vpop.f32.mrf.mxu2  ;;  %v2907_v7 = vpop.f32.mrf.mxu1  ;;  %v2889_v41 = vadd.f32 %v2888_v12, %v6553_v23  ;;  %v6920_v12 = vld.sshfl [vmem:[#allocation1 + $0x18] sm:$0xff pattern:$0x75316420] }
 0x25c   : > { %v2856_v4 = vadd.f32 %v2855_v19, %v6536_v39  ;;  %v2874_v1 = vpop.f32.mrf.mxu3  ;;  %v2908_v19 = vadd.f32 %v2907_v7, %v6553_v23  ;;  %3709 = vst [vmem:[#allocation1 + $0x10] ss:$2 sm:$0xff] %v5696_v30  ;;  %v6932_v7 = vpop.permute.xlu2 %3149 }
 0x25d   : > { %v2875_v5 = vadd.f32 %v2874_v1, %v6536_v39  ;;  %v3013_v38 = vmax.f32 %v2889_v41, 0.0  ;;  %v2906_v1 = vadd.f32 %v6886_v37, %v6558_v61 }
 0x25e   : > { %v3075_v47 = vmax.f32 %v2856_v4, 0.0 }
 0x25f   : > { %v3076_v18 = vmax.f32 %v2875_v5, 0.0  ;;  %v3014_v5 = vmax.f32 %v2908_v19, 0.0 }
 0x260   : > { %v3140_v14 = vpack.c.bf16 %v3075_v47, %v3043_v33  ;;  %v2981_v47 = vmax.f32 %v2887_v54, 0.0 }
 0x261   : > { %v3141_v40 = vpack.c.bf16 %v3076_v18, %v3044_v45  ;;  %v2982_v18 = vmax.f32 %v2906_v1, 0.0 }
 0x262   : > { %v2891_v3 = vpop.f32.mrf.mxu0  ;;  %3500 = vmatpush.bf16.msra.mxu2 %v3140_v14  ;;  %v3110_v45 = vpack.c.bf16 %v3013_v38, %v2981_v47  ;;  %v6954_v38 = vld.sshfl [vmem:[#allocation1 + $0x38] sm:$0xff pattern:$0x75316420]  ;;  %v6963_v47 = vld.sshfl [vmem:[#allocation1 + $0x8] sm:$0xff pattern:$0x75316420] }
 0x263   : > { %v6905_v58 = vpop.f32.mrf.mxu2  ;;  %v2910_v31 = vpop.f32.mrf.mxu1  ;;  %3513 = vmatpush.bf16.msra.mxu3 %v3141_v40  ;;  %v2892_v2 = vadd.f32 %v2891_v3, %v6548_v10  ;;  %v3111_v6 = vpack.c.bf16 %v3014_v5, %v2982_v18 }
 0x264   : > { %v6907_v15 = vpop.f32.mrf.mxu3  ;;  %v2911_v24 = vadd.f32 %v2910_v31, %v6548_v10  ;;  %v2925_v5 = vadd.f32 %v6905_v58, %v6558_v61 }
 0x265   : > { %v3045_v27 = vmax.f32 %v2892_v2, 0.0 }
 0x266   : > { %3501 = vmatpush.bf16.msra.mxu2 %v3108_v36  ;;  %v3046_v11 = vmax.f32 %v2911_v24, 0.0 }
 0x267   : > { %3514 = vmatpush.bf16.msra.mxu3 %v3109_v55 }
 0x269   : > { %4511 = vmatmul.msk.bf16.vlgmr.msra.gmra.mxu2 %vm3152_vm11, %v6721_v59 }
 0x26a   : > { %v2893_v62 = vpop.f32.mrf.mxu0  ;;  %4512 = vmatmul.msk.bf16.vlgmr.msra.gmra.mxu3 %vm3152_vm11, %v6721_v59 }
 0x26b   : > { %v2894_v26 = vadd.f32 %v2893_v62, %v6536_v39  ;;  %v2926_v34 = vpop.f32.mrf.mxu2  ;;  %v2912_v44 = vpop.f32.mrf.mxu1 }
 0x26c   : > { %v2913_v43 = vadd.f32 %v2912_v44, %v6536_v39  ;;  %v2945_v42 = vpop.f32.mrf.mxu3  ;;  %v6952_v44 = vld.sshfl [vmem:[#allocation1 + $0x30] sm:$0xff pattern:$0x75316420]  ;;  %v2927_v19 = vadd.f32 %v2926_v34, %v6553_v23 }
 0x26d   : > { %v3077_v13 = vmax.f32 %v2894_v26, 0.0  ;;  %3711 = vst [vmem:[#allocation1 + $0x30] ss:$2 sm:$0xff] %v6011_v28  ;;  %v2946_v1 = vadd.f32 %v2945_v42, %v6553_v23 }
 0x26e   : > { %v3078_v33 = vmax.f32 %v2913_v43, 0.0 }
 0x26f   : > { %v3142_v4 = vpack.c.bf16 %v3077_v13, %v3045_v27 }
 0x270   : > { %v3143_v46 = vpack.c.bf16 %v3078_v33, %v3046_v11  ;;  %v6961_v33 = vld.sshfl [vmem:[#allocation1] sm:$0xff pattern:$0x75316420] }
 0x271   : > { %3526 = vmatpush.bf16.msrb.mxu0 %v3142_v4  ;;  %3720 = vst [vmem:[#allocation1] ss:$2 sm:$0xff] %v6052_v17 }
 0x272   : > { %v3165_v25 = vpop.f32.mrf.mxu0  ;;  %3539 = vmatpush.bf16.msrb.mxu1 %v3143_v46 }
 0x273   : > { %v3166_v14 = vadd.f32 %v3165_v25, %v6932_v7  ;;  %v2929_v3 = vpop.f32.mrf.mxu2  ;;  %v3178_v32 = vpop.f32.mrf.mxu1 }
 0x274   : > { %v3179_v40 = vadd.f32 %v3178_v32, %v6932_v7  ;;  %v2948_v31 = vpop.f32.mrf.mxu3  ;;  %v2983_v32 = vmax.f32 %v2925_v5, 0.0 }
 0x275   : > { %v3776_v37 = vmul.f32 %v6892_v50, %v3166_v14  ;;  %3527 = vmatpush.bf16.msrb.mxu0 %v3110_v45  ;;  %v3877_v0 = vsel %vm3620_vm7, %v3166_v14, 0.0  ;;  %v2949_v43 = vadd.f32 %v2948_v31, %v6548_v10  ;;  %v3015_v45 = vmax.f32 %v2927_v19, 0.0 }
 0x276   : > { %v3604_v55 = vrot.slane %v3179_v40, 4  ;;  %v3777_v2 = vmul.f32 %v6894_v8, %v3179_v40  ;;  %3540 = vmatpush.bf16.msrb.mxu1 %v3111_v6  ;;  %v3878_v50 = vsel %vm3620_vm7, %v3179_v40, 0.0  ;;  %v2930_v8 = vadd.f32 %v2929_v3, %v6548_v10 }
 0x277   : > { %v3808_v36 = vsel %vm3620_vm7, %v3776_v37, 0.0  ;;  %v3879_v26 = vadd.f32 %v3878_v50, %v3877_v0  ;;  %v2944_v10 = vadd.f32 %v6907_v15, %v6558_v61  ;;  %v3016_v3 = vmax.f32 %v2946_v1, 0.0 }
 0x278   : > { %4513 = vmatmul.msk.bf16.vlgmr.msrb.gmra.mxu0 %vm3152_vm11, %v6721_v59  ;;  %v3621_v41 = vsel %vm3620_vm7, %v3166_v14, %v3604_v55  ;;  %v3809_v62 = vsel %vm3620_vm7, %v3777_v2, 0.0  ;;  %v3047_v46 = vmax.f32 %v2930_v8, 0.0  ;;  %v3048_v14 = vmax.f32 %v2949_v43, 0.0 }
 0x279   : > { %3653 = vst [vmem:[%s6946_s15] sm:$0xff] %v3621_v41  ;;  %v3810_v54 = vadd.f32 %v3809_v62, %v3808_v36  ;;  %4514 = vmatmul.msk.bf16.vlgmr.msrb.gmra.mxu1 %vm3152_vm11, %v6721_v59  ;;  %v2984_v58 = vmax.f32 %v2944_v10, 0.0 }
 0x27a   : > { %v3167_v24 = vpop.f32.mrf.mxu0 }
 0x27b   : > { %v2931_v27 = vpop.f32.mrf.mxu2  ;;  %v3180_v13 = vpop.f32.mrf.mxu1  ;;  %v3113_v15 = vpack.c.bf16 %v3016_v3, %v2984_v58  ;;  %v6999_v3 = vld.sshfl [vmem:[#allocation1 + $0x28] sm:$0xff pattern:$0x75316420] }
 0x27c   : > { %v2932_v4 = vadd.f32 %v2931_v27, %v6536_v39  ;;  %v2950_v11 = vpop.f32.mrf.mxu3 }
 0x27d   : > { %v2951_v34 = vadd.f32 %v2950_v11, %v6536_v39  ;;  %v3112_v39 = vpack.c.bf16 %v3015_v45, %v2983_v32  ;;  %v6995_v45 = vld.sshfl [vmem:[#allocation1 + $0x18] sm:$0xff pattern:$0x75316420] }
 0x27e   : > { %v3079_v25 = vmax.f32 %v2932_v4, 0.0 }
 0x27f   : > { %v3080_v42 = vmax.f32 %v2951_v34, 0.0 }
 0x280   : > { %v3144_v23 = vpack.c.bf16 %v3079_v25, %v3047_v46  ;;  %v6990_v46 = vld.sshfl [vmem:[#allocation1 + $0x10] sm:$0xff pattern:$0x75316420] }
 0x281   : > { %v3145_v6 = vpack.c.bf16 %v3080_v42, %v3048_v14  ;;  %3721 = vst [vmem:[#allocation1 + $0x10] ss:$2 sm:$0xff] %v6097_v48 }
 0x282   : > { %v3217_v18 = vpop.f32.mrf.mxu0  ;;  %3552 = vmatpush.bf16.msrb.mxu2 %v3144_v23 }
 0x283   : > { %v3218_v37 = vadd.f32 %v3217_v18, %v6932_v7  ;;  %v3191_v40 = vpop.f32.mrf.mxu2  ;;  %v3230_v31 = vpop.f32.mrf.mxu1  ;;  %3565 = vmatpush.bf16.msrb.mxu3 %v3145_v6 }
 0x284   : > { %v3192_v0 = vadd.f32 %v3191_v40, %v6932_v7  ;;  %v3231_v61 = vadd.f32 %v3230_v31, %v6932_v7  ;;  %v3204_v36 = vpop.f32.mrf.mxu3 }
 0x285   : > { %v3780_v55 = vmul.f32 %v6925_v29, %v3218_v37  ;;  %v3205_v41 = vadd.f32 %v3204_v36, %v6932_v7  ;;  %v3884_v8 = vsel %vm3620_vm7, %v3218_v37, 0.0 }
 0x286   : > { %v3778_v2 = vmul.f32 %v6915_v52, %v3192_v0  ;;  %v3880_v50 = vsel %vm3620_vm7, %v3192_v0, 0.0  ;;  %3553 = vmatpush.bf16.msrb.mxu2 %v3112_v39  ;;  %v3606_v62 = vrot.slane %v3231_v61, 4  ;;  %v3886_v14 = vsel %vm3620_vm7, %v3231_v61, 0.0 }
 0x287   : > { %v3881_v24 = vadd.f32 %v3880_v50, %v3879_v26  ;;  %v3605_v13 = vrot.slane %v3205_v41, 4  ;;  %v3779_v19 = vmul.f32 %v6920_v12, %v3205_v41  ;;  %v3882_v29 = vsel %vm3620_vm7, %v3205_v41, 0.0  ;;  %3566 = vmatpush.bf16.msrb.mxu3 %v3113_v15 }
 0x288   : > { %v3811_v27 = vsel %vm3620_vm7, %v3778_v2, 0.0  ;;  %v3623_v1 = vsel %vm3620_vm7, %v3218_v37, %v3606_v62  ;;  %v3815_v5 = vsel %vm3620_vm7, %v3780_v55, 0.0  ;;  %v3781_v12 = vmul.f32 %v6927_v9, %v3231_v61  ;;  %v3716_v9 = vld.sshfl [vmem:[#allocation1 + $0x20] sm:$0xff pattern:$0x75316420] }
 0x289   : > { %v3812_v43 = vadd.f32 %v3811_v27, %v3810_v54  ;;  %v3883_v4 = vadd.f32 %v3882_v29, %v3881_v24  ;;  %4515 = vmatmul.msk.bf16.vlgmr.msrb.gmra.mxu2 %vm3152_vm11, %v6721_v59  ;;  %v3622_v26 = vsel %vm3620_vm7, %v3192_v0, %v3605_v13  ;;  %v3813_v11 = vsel %vm3620_vm7, %v3779_v19, 0.0  ;;  %3655 = vst [vmem:[%s6946_s15 + $0x10] sm:$0xff] %v3623_v1  ;;  %v7020_v1 = vld.sshfl [vmem:[#allocation1 + $0x30] sm:$0xff pattern:$0x75316420] }
 0x28a   : > { %v3219_v52 = vpop.f32.mrf.mxu0  ;;  %3654 = vst [vmem:[%s6946_s15 + $0x8] sm:$0xff] %v3622_v26  ;;  %4516 = vmatmul.msk.bf16.vlgmr.msrb.gmra.mxu3 %vm3152_vm11, %v6721_v59  ;;  %v3817_v37 = vsel %vm3620_vm7, %v3781_v12, 0.0  ;;  %v7023_v12 = vld.sshfl [vmem:[#allocation1 + $0x38] sm:$0xff pattern:$0x75316420] }
 0x28b   : > { %v3814_v25 = vadd.f32 %v3813_v11, %v3812_v43  ;;  %v3885_v54 = vadd.f32 %v3884_v8, %v3883_v4  ;;  %v3193_v34 = vpop.f32.mrf.mxu2  ;;  %v3232_v10 = vpop.f32.mrf.mxu1  ;;  %3722 = vst [vmem:[#allocation1 + $0x20] ss:$2 sm:$0xff] %v6230_v20 }
 0x28c   : > { %v3206_v18 = vpop.f32.mrf.mxu3  ;;  %3723 = vst [vmem:[#allocation1 + $0x30] ss:$2 sm:$0xff] %v6273_v49 }
 0x28d   : > { %v3816_v23 = vadd.f32 %v3815_v5, %v3814_v25  ;;  %v3887_v42 = vadd.f32 %v3886_v14, %v3885_v54  ;;  %v7027_v14 = vld.sshfl [vmem:[#allocation1] sm:$0xff pattern:$0x75316420] }
 0x28f   : > { %v3818_v32 = vadd.f32 %v3817_v37, %v3816_v23  ;;  %v7029_v23 = vld.sshfl [vmem:[#allocation1 + $0x8] sm:$0xff pattern:$0x75316420] }
 0x290   : > { %3732 = vst [vmem:[#allocation1] ss:$2 sm:$0xff] %v6286_v63 }
 0x292   : > { %v3269_v59 = vpop.f32.mrf.mxu0 }
 0x293   : > { %v3270_v6 = vadd.f32 %v3269_v59, %v6932_v7  ;;  %v3243_v58 = vpop.f32.mrf.mxu2  ;;  %v3282_v40 = vpop.f32.mrf.mxu1 }
 0x294   : > { %v3244_v31 = vadd.f32 %v3243_v58, %v6932_v7  ;;  %v3283_v39 = vadd.f32 %v3282_v40, %v6932_v7  ;;  %v3256_v0 = vpop.f32.mrf.mxu3 }
 0x295   : > { %v3784_v61 = vmul.f32 %v6961_v33, %v3270_v6  ;;  %v3257_v55 = vadd.f32 %v3256_v0, %v6932_v7  ;;  %v3892_v41 = vsel %vm3620_vm7, %v3270_v6, 0.0 }
 0x296   : > { %v3782_v15 = vmul.f32 %v6952_v44, %v3244_v31  ;;  %v3888_v36 = vsel %vm3620_vm7, %v3244_v31, 0.0  ;;  %v3608_v2 = vrot.slane %v3283_v39, 4  ;;  %v3785_v4 = vmul.f32 %v6963_v47, %v3283_v39 }
 0x297   : > { %v3889_v50 = vadd.f32 %v3888_v36, %v3887_v42  ;;  %v3607_v24 = vrot.slane %v3257_v55, 4  ;;  %v3783_v8 = vmul.f32 %v6954_v38, %v3257_v55  ;;  %v3890_v27 = vsel %vm3620_vm7, %v3257_v55, 0.0 }
 0x298   : > { %v3819_v62 = vsel %vm3620_vm7, %v3782_v15, 0.0  ;;  %v3625_v19 = vsel %vm3620_vm7, %v3270_v6, %v3608_v2  ;;  %v3823_v43 = vsel %vm3620_vm7, %v3784_v61, 0.0  ;;  %v3894_v25 = vsel %vm3620_vm7, %v3283_v39, 0.0 }
 0x299   : > { %v3820_v13 = vadd.f32 %v3819_v62, %v3818_v32  ;;  %v3891_v44 = vadd.f32 %v3890_v27, %v3889_v50  ;;  %v3624_v29 = vsel %vm3620_vm7, %v3244_v31, %v3607_v24  ;;  %v3821_v52 = vsel %vm3620_vm7, %v3783_v8, 0.0  ;;  %3657 = vst [vmem:[%s6946_s15 + $0x20] sm:$0xff] %v3625_v19  ;;  %v3726_v19 = vld.sshfl [vmem:[#allocation1 + $0x10] sm:$0xff pattern:$0x75316420] }
 0x29a   : > { %v3271_v33 = vpop.f32.mrf.mxu0  ;;  %3656 = vst [vmem:[%s6946_s15 + $0x18] sm:$0xff] %v3624_v29  ;;  %v3825_v47 = vsel %vm3620_vm7, %v3785_v4, 0.0  ;;  %v7050_v4 = vld.sshfl [vmem:[#allocation1 + $0x18] sm:$0xff pattern:$0x75316420] }
 0x29b   : > { %v3822_v38 = vadd.f32 %v3821_v52, %v3820_v13  ;;  %v3893_v26 = vadd.f32 %v3892_v41, %v3891_v44  ;;  %v3245_v11 = vpop.f32.mrf.mxu2  ;;  %v3284_v5 = vpop.f32.mrf.mxu1  ;;  %3733 = vst [vmem:[#allocation1 + $0x10] ss:$2 sm:$0xff] %v6309_v51 }
 0x29c   : > { %v3258_v10 = vpop.f32.mrf.mxu3 }
 0x29d   : > { %v3824_v54 = vadd.f32 %v3823_v43, %v3822_v38  ;;  %v3895_v34 = vadd.f32 %v3894_v25, %v3893_v26  ;;  %v3728_v25 = vld.sshfl [vmem:[#allocation1 + $0x20] sm:$0xff pattern:$0x75316420] }
 0x29f   : > { %v3826_v42 = vadd.f32 %v3825_v47, %v3824_v54  ;;  %v7056_v54 = vld.sshfl [vmem:[#allocation1 + $0x28] sm:$0xff pattern:$0x75316420] }
 0x2a0   : > { %3734 = vst [vmem:[#allocation1 + $0x20] ss:$2 sm:$0xff] %v6332_v35 }
 0x2a2   : > { %v3321_v18 = vpop.f32.mrf.mxu0 }
 0x2a3   : > { %v3322_v37 = vadd.f32 %v3321_v18, %v6932_v7  ;;  %v3295_v32 = vpop.f32.mrf.mxu2  ;;  %v3334_v59 = vpop.f32.mrf.mxu1 }
 0x2a4   : > { %v3296_v6 = vadd.f32 %v3295_v32, %v6932_v7  ;;  %v3335_v58 = vadd.f32 %v3334_v59, %v6932_v7  ;;  %v3308_v40 = vpop.f32.mrf.mxu3 }
 0x2a5   : > { %v3788_v31 = vmul.f32 %v3716_v9, %v3322_v37  ;;  %v3309_v61 = vadd.f32 %v3308_v40, %v6932_v7  ;;  %v3900_v55 = vsel %vm3620_vm7, %v3322_v37, 0.0 }
 0x2a6   : > { %v3786_v39 = vmul.f32 %v6990_v46, %v3296_v6  ;;  %v3896_v0 = vsel %vm3620_vm7, %v3296_v6, 0.0  ;;  %v3610_v15 = vrot.slane %v3335_v58, 4  ;;  %v3789_v44 = vmul.f32 %v6999_v3, %v3335_v58 }
 0x2a7   : > { %v3897_v36 = vadd.f32 %v3896_v0, %v3895_v34  ;;  %v3609_v50 = vrot.slane %v3309_v61, 4  ;;  %v3787_v41 = vmul.f32 %v6995_v45, %v3309_v61  ;;  %v3898_v62 = vsel %vm3620_vm7, %v3309_v61, 0.0  ;;  %v3730_v61 = vld.sshfl [vmem:[#allocation1 + $0x30] sm:$0xff pattern:$0x75316420] }
 0x2a8   : > { %v3827_v2 = vsel %vm3620_vm7, %v3786_v39, 0.0  ;;  %v3627_v8 = vsel %vm3620_vm7, %v3322_v37, %v3610_v15  ;;  %v3831_v13 = vsel %vm3620_vm7, %v3788_v31, 0.0  ;;  %v3902_v38 = vsel %vm3620_vm7, %v3335_v58, 0.0 }
 0x2a9   : > { %v3828_v24 = vadd.f32 %v3827_v2, %v3826_v42  ;;  %v3899_v46 = vadd.f32 %v3898_v62, %v3897_v36  ;;  %v3626_v27 = vsel %vm3620_vm7, %v3296_v6, %v3609_v50  ;;  %v3829_v33 = vsel %vm3620_vm7, %v3787_v41, 0.0  ;;  %3659 = vst [vmem:[%s6946_s15 + $0x30] sm:$0xff] %v3627_v8  ;;  %v3731_v2 = vld.sshfl [vmem:[#allocation1 + $0x38] sm:$0xff pattern:$0x75316420] }
 0x2aa   : > { %v3323_v9 = vpop.f32.mrf.mxu0  ;;  %3658 = vst [vmem:[%s6946_s15 + $0x28] sm:$0xff] %v3626_v27  ;;  %v3833_v3 = vsel %vm3620_vm7, %v3789_v44, 0.0  ;;  %v3736_v41 = vld.sshfl [vmem:[#allocation1] sm:$0xff pattern:$0x75316420] }
 0x2ab   : > { %v3830_v29 = vadd.f32 %v3829_v33, %v3828_v24  ;;  %v3901_v45 = vadd.f32 %v3900_v55, %v3899_v46  ;;  %v3297_v52 = vpop.f32.mrf.mxu2  ;;  %v3336_v43 = vpop.f32.mrf.mxu1  ;;  %3735 = vst [vmem:[#allocation1 + $0x30] ss:$2 sm:$0xff] %v6425_v22  ;;  %v3737_v24 = vld.sshfl [vmem:[#allocation1 + $0x8] sm:$0xff pattern:$0x75316420] }
 0x2ac   : > { %v3310_v5 = vpop.f32.mrf.mxu3  ;;  %3946 = vst [vmem:[#allocation1] ss:$2 sm:$0xff] %v5394_v60 }
 0x2ad   : > { %v3832_v26 = vadd.f32 %v3831_v13, %v3830_v29  ;;  %v7054_v11 = vadd.f32 %v3902_v38, %v3901_v45 }
 0x2af   : > { %v3834_v34 = vadd.f32 %v3833_v3, %v3832_v26 }
 0x2b2   : > { %v3373_v10 = vpop.f32.mrf.mxu0 }
 0x2b3   : > { %v3347_v47 = vpop.f32.mrf.mxu2  ;;  %v3386_v42 = vpop.f32.mrf.mxu1  ;;  %v7073_v40 = vadd.f32 %v3373_v10, %v6932_v7 }
 0x2b4   : > { %v7061_v18 = vadd.f32 %v3347_v47, %v6932_v7  ;;  %v7064_v37 = vadd.f32 %v3386_v42, %v6932_v7  ;;  %v3360_v32 = vpop.f32.mrf.mxu3 }
 0x2b5   : > { %v7069_v6 = vadd.f32 %v3360_v32, %v6932_v7  ;;  %v3792_v46 = vmul.f32 %v7027_v14, %v7073_v40 }
 0x2b6   : > { %v3790_v59 = vmul.f32 %v7020_v1, %v7061_v18  ;;  %v3612_v58 = vrot.slane %v7064_v37, 4 }
 0x2b7   : > { %v3611_v31 = vrot.slane %v7069_v6, 4  ;;  %v3791_v50 = vmul.f32 %v7023_v12, %v7069_v6  ;;  %v3839_v13 = vsel %vm3620_vm7, %v3792_v46, 0.0  ;;  %v3793_v12 = vmul.f32 %v7029_v23, %v7064_v37 }
 0x2b8   : > { %v3629_v0 = vsel %vm3620_vm7, %v7073_v40, %v3612_v58  ;;  %v3835_v15 = vsel %vm3620_vm7, %v3790_v59, 0.0 }
 0x2b9   : > { %v3628_v1 = vsel %vm3620_vm7, %v7061_v18, %v3611_v31  ;;  %3661 = vst [vmem:[%s6946_s15 + $0x40] sm:$0xff] %v3629_v0  ;;  %v3836_v62 = vadd.f32 %v3835_v15, %v3834_v34  ;;  %v3837_v8 = vsel %vm3620_vm7, %v3791_v50, 0.0  ;;  %v3841_v23 = vsel %vm3620_vm7, %v3793_v12, 0.0  ;;  %v7123_v50 = vld.sshfl [vmem:[#allocation1 + $0x10] sm:$0xff pattern:$0x75316420] }
 0x2ba   : > { %v3375_v39 = vpop.f32.mrf.mxu0  ;;  %3660 = vst [vmem:[%s6946_s15 + $0x38] sm:$0xff] %v3628_v1 }
 0x2bb   : > { %v3349_v36 = vpop.f32.mrf.mxu2  ;;  %v3388_v55 = vpop.f32.mrf.mxu1  ;;  %v3838_v33 = vadd.f32 %v3837_v8, %v3836_v62 }
 0x2bc   : > { %v3362_v9 = vpop.f32.mrf.mxu3 }
 0x2bd   : > { %v3840_v14 = vadd.f32 %v3839_v13, %v3838_v33 }
 0x2bf   : > { %v3842_v47 = vadd.f32 %v3841_v23, %v3840_v14 }
 0x2c2   : > { %v3425_v27 = vpop.f32.mrf.mxu0 }
 0x2c3   : > { %v3399_v44 = vpop.f32.mrf.mxu2  ;;  %v3438_v29 = vpop.f32.mrf.mxu1  ;;  %v7105_v5 = vadd.f32 %v3425_v27, %v6932_v7 }
 0x2c4   : > { %v7094_v45 = vadd.f32 %v3399_v44, %v6932_v7  ;;  %v7097_v52 = vadd.f32 %v3438_v29, %v6932_v7  ;;  %v3412_v60 = vpop.f32.mrf.mxu3 }
 0x2c5   : > { %v7101_v38 = vadd.f32 %v3412_v60, %v6932_v7  ;;  %v3796_v39 = vmul.f32 %v3728_v25, %v7105_v5  ;;  %v7131_v25 = vld.sshfl [vmem:[#allocation1 + $0x18] sm:$0xff pattern:$0x75316420] }
 0x2c6   : > { %v3794_v43 = vmul.f32 %v3726_v19, %v7094_v45  ;;  %v3614_v26 = vrot.slane %v7097_v52, 4  ;;  %v3797_v55 = vmul.f32 %v7056_v54, %v7097_v52  ;;  %3948 = vst [vmem:[#allocation1 + $0x10] ss:$2 sm:$0xff] %v5406_v21 }
 0x2c7   : > { %v3613_v34 = vrot.slane %v7101_v38, 4  ;;  %v3795_v32 = vmul.f32 %v7050_v4, %v7101_v38  ;;  %v3847_v36 = vsel %vm3620_vm7, %v3796_v39, 0.0 }
 0x2c8   : > { %v3843_v3 = vsel %vm3620_vm7, %v3794_v43, 0.0  ;;  %v3631_v42 = vsel %vm3620_vm7, %v7105_v5, %v3614_v26  ;;  %v3849_v33 = vsel %vm3620_vm7, %v3797_v55, 0.0  ;;  %v3954_v55 = vld.sshfl [vmem:[#allocation1 + $0x8] sm:$0xff pattern:$0x75316420] }
 0x2c9   : > { %v3630_v19 = vsel %vm3620_vm7, %v7094_v45, %v3613_v34  ;;  %3663 = vst [vmem:[%s6946_s15 + $0x50] sm:$0xff] %v3631_v42  ;;  %v3844_v59 = vadd.f32 %v3843_v3, %v3842_v47  ;;  %v3845_v15 = vsel %vm3620_vm7, %v3795_v32, 0.0  ;;  %v7154_v47 = vld.sshfl [vmem:[#allocation1 + $0x20] sm:$0xff pattern:$0x75316420] }
 0x2ca   : > { %v3427_v10 = vpop.f32.mrf.mxu0  ;;  %3662 = vst [vmem:[%s6946_s15 + $0x48] sm:$0xff] %v3630_v19 }
 0x2cb   : > { %v3401_v58 = vpop.f32.mrf.mxu2  ;;  %v3440_v31 = vpop.f32.mrf.mxu1  ;;  %v3846_v1 = vadd.f32 %v3845_v15, %v3844_v59  ;;  %v7161_v59 = vld.sshfl [vmem:[#allocation1 + $0x28] sm:$0xff pattern:$0x75316420] }
 0x2cc   : > { %v3414_v0 = vpop.f32.mrf.mxu3  ;;  %3950 = vst [vmem:[#allocation1 + $0x20] ss:$2 sm:$0xff] %v5424_v53  ;;  %v4030_v53 = vsel %vm3620_vm7, %v3954_v55, 0.0 }
 0x2cd   : > { %v3848_v62 = vadd.f32 %v3847_v36, %v3846_v1  ;;  %v3906_v0 = vsel %vm3620_vm7, %v7069_v6, 0.0  ;;  %v3908_v36 = vsel %vm3620_vm7, %v7073_v40, 0.0  ;;  %v3910_v40 = vsel %vm3620_vm7, %v7064_v37, 0.0 }
 0x2cf   : > { %v3850_v12 = vadd.f32 %v3849_v33, %v3848_v62  ;;  %v3955_v33 = vld.sshfl [vmem:[#allocation1 + $0x10] sm:$0xff pattern:$0x75316420] }
 0x2d3   : > { %v3451_v4 = vpop.f32.mrf.mxu2 }
 0x2d4   : > { %v7126_v46 = vadd.f32 %v3451_v4, %v6932_v7  ;;  %v3464_v27 = vpop.f32.mrf.mxu3 }
 0x2d5   : > { %v3477_v9 = vpop.f32.mrf.mxu0  ;;  %v7137_v13 = vadd.f32 %v3464_v27, %v6932_v7  ;;  %v7176_v27 = vld.sshfl [vmem:[#allocation1 + $0x38] sm:$0xff pattern:$0x75316420] }
 0x2d6   : > { %v7129_v8 = vadd.f32 %v3477_v9, %v6932_v7  ;;  %v3798_v54 = vmul.f32 %v3730_v61, %v7126_v46  ;;  %v3490_v29 = vpop.f32.mrf.mxu1  ;;  %v3904_v61 = vsel %vm3620_vm7, %v7061_v18, 0.0  ;;  %v7174_v9 = vld.sshfl [vmem:[#allocation1 + $0x30] sm:$0xff pattern:$0x75316420] }
 0x2d7   : > { %v7141_v14 = vadd.f32 %v3490_v29, %v6932_v7  ;;  %v3615_v43 = vrot.slane %v7137_v13, 4  ;;  %v3799_v21 = vmul.f32 %v3731_v2, %v7137_v13  ;;  %v3905_v32 = vadd.f32 %v3904_v61, %v7054_v11  ;;  %v3953_v11 = vld.sshfl [vmem:[#allocation1] sm:$0xff pattern:$0x75316420]  ;;  %3952 = vst [vmem:[#allocation1 + $0x30] ss:$2 sm:$0xff] %v5447_v16 }
 0x2d8   : > { %v3800_v44 = vmul.f32 %v3736_v41, %v7129_v8  ;;  %v3851_v60 = vsel %vm3620_vm7, %v3798_v54, 0.0  ;;  %3961 = vst [vmem:[#allocation1] ss:$2 sm:$0xff] %v5486_v56  ;;  %v4029_v4 = vsel %vm3620_vm7, %v3953_v11, 0.0  ;;  %v3912_v54 = vsel %vm3620_vm7, %v7094_v45, 0.0 }
 0x2d9   : > { %v3852_v26 = vadd.f32 %v3851_v60, %v3850_v12  ;;  %v3616_v23 = vrot.slane %v7141_v14, 4  ;;  %v3632_v41 = vsel %vm3620_vm7, %v7126_v46, %v3615_v43  ;;  %v3853_v3 = vsel %vm3620_vm7, %v3799_v21, 0.0  ;;  %v3957_v43 = vld.sshfl [vmem:[#allocation1 + $0x20] sm:$0xff pattern:$0x75316420] }
 0x2da   : > { %v3855_v34 = vsel %vm3620_vm7, %v3800_v44, 0.0  ;;  %v3801_v10 = vmul.f32 %v3737_v24, %v7141_v14  ;;  %3664 = vst [vmem:[%s6946_s15 + $0x58] sm:$0xff] %v3632_v41  ;;  %v3907_v1 = vadd.f32 %v3906_v0, %v3905_v32  ;;  %v4031_v6 = vadd.f32 %v4030_v53, %v4029_v4  ;;  %v3956_v44 = vld.sshfl [vmem:[#allocation1 + $0x18] sm:$0xff pattern:$0x75316420] }
 0x2db   : > { %v3854_v42 = vadd.f32 %v3853_v3, %v3852_v26  ;;  %v3633_v2 = vsel %vm3620_vm7, %v7129_v8, %v3616_v23  ;;  %v3453_v18 = vpop.f32.mrf.mxu2  ;;  %v4032_v56 = vsel %vm3620_vm7, %v3955_v33, 0.0  ;;  %3962 = vst [vmem:[#allocation1 + $0x10] ss:$2 sm:$0xff] %v5696_v30  ;;  %v4034_v60 = vsel %vm3620_vm7, %v3956_v44, 0.0 }
 0x2dc   : > { %3665 = vst [vmem:[%s6946_s15 + $0x60] sm:$0xff] %v3633_v2  ;;  %v3466_v31 = vpop.f32.mrf.mxu3  ;;  %v3857_v24 = vsel %vm3620_vm7, %v3801_v10, 0.0  ;;  %v3909_v62 = vadd.f32 %v3908_v36, %v3907_v1  ;;  %v4033_v12 = vadd.f32 %v4032_v56, %v4031_v6  ;;  %v4036_v16 = vsel %vm3620_vm7, %v3957_v43, 0.0  ;;  %v3958_v26 = vld.sshfl [vmem:[#allocation1 + $0x28] sm:$0xff pattern:$0x75316420] }
 0x2dd   : > { %v3479_v19 = vpop.f32.mrf.mxu0  ;;  %v3856_v58 = vadd.f32 %v3855_v34, %v3854_v42  ;;  %3963 = vst [vmem:[#allocation1 + $0x20] ss:$2 sm:$0xff] %v5957_v57  ;;  %v4038_v45 = vsel %vm3620_vm7, %v3958_v26, 0.0  ;;  %v3914_v41 = vsel %vm3620_vm7, %v7101_v38, 0.0  ;;  %v3916_v2 = vsel %vm3620_vm7, %v7105_v5, 0.0 }
 0x2de   : > { %v3492_v39 = vpop.f32.mrf.mxu1  ;;  %v3911_v29 = vadd.f32 %v3910_v40, %v3909_v62  ;;  %v4035_v61 = vadd.f32 %v4034_v60, %v4033_v12  ;;  %v3959_v3 = vld.sshfl [vmem:[#allocation1 + $0x30] sm:$0xff pattern:$0x75316420]  ;;  %v3960_v57 = vld.sshfl [vmem:[#allocation1 + $0x38] sm:$0xff pattern:$0x75316420] }
 0x2df   : > { %v7167_v15 = vadd.f32 %v3857_v24, %v3856_v58  ;;  %v4040_v42 = vsel %vm3620_vm7, %v3959_v3, 0.0  ;;  %3964 = vst [vmem:[#allocation1 + $0x30] ss:$2 sm:$0xff] %v6011_v28  ;;  %v4042_v32 = vsel %vm3620_vm7, %v3960_v57, 0.0  ;;  %v3918_v11 = vsel %vm3620_vm7, %v7097_v52, 0.0 }
 0x2e0   : > { %v3913_v21 = vadd.f32 %v3912_v54, %v3911_v29  ;;  %v4037_v37 = vadd.f32 %v4036_v16, %v4035_v61  ;;  %v3965_v31 = vld.sshfl [vmem:[#allocation1] sm:$0xff pattern:$0x75316420]  ;;  %v3966_v36 = vld.sshfl [vmem:[#allocation1 + $0x8] sm:$0xff pattern:$0x75316420] }
 0x2e1   : > { %v4044_v0 = vsel %vm3620_vm7, %v3965_v31, 0.0  ;;  %v4046_v62 = vsel %vm3620_vm7, %v3966_v36, 0.0  ;;  %v3920_v4 = vsel %vm3620_vm7, %v7126_v46, 0.0  ;;  %3973 = vst [vmem:[#allocation1] ss:$2 sm:$0xff] %v6052_v17 }
 0x2e2   : > { %v3915_v30 = vadd.f32 %v3914_v41, %v3913_v21  ;;  %v4039_v10 = vadd.f32 %v4038_v45, %v4037_v37  ;;  %v3967_v53 = vld.sshfl [vmem:[#allocation1 + $0x10] sm:$0xff pattern:$0x75316420]  ;;  %v3968_v54 = vld.sshfl [vmem:[#allocation1 + $0x18] sm:$0xff pattern:$0x75316420] }
 0x2e3   : > { %v4048_v56 = vsel %vm3620_vm7, %v3967_v53, 0.0  ;;  %3974 = vst [vmem:[#allocation1 + $0x10] ss:$2 sm:$0xff] %v6097_v48  ;;  %v4050_v16 = vsel %vm3620_vm7, %v3968_v54, 0.0  ;;  %v3924_v37 = vsel %vm3620_vm7, %v7129_v8, 0.0 }
 0x2e4   : > { %v4041_v19 = vadd.f32 %v4040_v42, %v4039_v10  ;;  %v3917_v24 = vadd.f32 %v3916_v2, %v3915_v30  ;;  %v3969_v29 = vld.sshfl [vmem:[#allocation1 + $0x20] sm:$0xff pattern:$0x75316420]  ;;  %v3970_v12 = vld.sshfl [vmem:[#allocation1 + $0x28] sm:$0xff pattern:$0x75316420] }
 0x2e5   : > { %3975 = vst [vmem:[#allocation1 + $0x20] ss:$2 sm:$0xff] %v6230_v20  ;;  %v4052_v26 = vsel %vm3620_vm7, %v3969_v29, 0.0  ;;  %v4054_v20 = vsel %vm3620_vm7, %v3970_v12, 0.0 }
 0x2e6   : > { %v4043_v39 = vadd.f32 %v4042_v32, %v4041_v19  ;;  %v3919_v6 = vadd.f32 %v3918_v11, %v3917_v24  ;;  %v3971_v43 = vld.sshfl [vmem:[#allocation1 + $0x30] sm:$0xff pattern:$0x75316420]  ;;  %v3972_v61 = vld.sshfl [vmem:[#allocation1 + $0x38] sm:$0xff pattern:$0x75316420] }
 0x2e7   : > { %3976 = vst [vmem:[#allocation1 + $0x30] ss:$2 sm:$0xff] %v6273_v49  ;;  %v4056_v8 = vsel %vm3620_vm7, %v3971_v43, 0.0  ;;  %v3926_v49 = vsel %vm3620_vm7, %v7141_v14, 0.0 }
 0x2e8   : > { %v4045_v55 = vadd.f32 %v4044_v0, %v4043_v39  ;;  %v3921_v60 = vadd.f32 %v3920_v4, %v3919_v6  ;;  %v3978_v10 = vld.sshfl [vmem:[#allocation1 + $0x8] sm:$0xff pattern:$0x75316420] }
 0x2ea   : > { %v4047_v44 = vadd.f32 %v4046_v62, %v4045_v55  ;;  %v3979_v57 = vld.sshfl [vmem:[#allocation1 + $0x10] sm:$0xff pattern:$0x75316420]  ;;  %v3980_v19 = vld.sshfl [vmem:[#allocation1 + $0x18] sm:$0xff pattern:$0x75316420] }
 0x2eb   : > { %3986 = vst [vmem:[#allocation1 + $0x10] ss:$2 sm:$0xff] %v6309_v51  ;;  %v4064_v4 = vsel %vm3620_vm7, %v3979_v57, 0.0 }
 0x2ec   : > { %v3503_v23 = vpop.f32.mrf.mxu2  ;;  %v4049_v46 = vadd.f32 %v4048_v56, %v4047_v44  ;;  %v3981_v24 = vld.sshfl [vmem:[#allocation1 + $0x20] sm:$0xff pattern:$0x75316420] }
 0x2ed   : > { %v3516_v34 = vpop.f32.mrf.mxu3  ;;  %v3504_v38 = vadd.f32 %v3503_v23, %v6932_v7  ;;  %v3922_v23 = vsel %vm3620_vm7, %v7137_v13, 0.0  ;;  %v4068_v56 = vsel %vm3620_vm7, %v3981_v24, 0.0 }
 0x2ee   : > { %v7195_v18 = vadd.f32 %v3516_v34, %v6932_v7  ;;  %v4051_v41 = vadd.f32 %v4050_v16, %v4049_v46  ;;  %v3923_v3 = vadd.f32 %v3922_v23, %v3921_v60  ;;  %v3977_v34 = vld.sshfl [vmem:[#allocation1] sm:$0xff pattern:$0x75316420]  ;;  %v3984_v36 = vld.sshfl [vmem:[#allocation1 + $0x38] sm:$0xff pattern:$0x75316420] }
 0x2ef   : > { %v3802_v30 = vmul.f32 %v7123_v50, %v3504_v38  ;;  %3985 = vst [vmem:[#allocation1] ss:$2 sm:$0xff] %v6286_v63  ;;  %v3928_v31 = vsel %vm3620_vm7, %v3504_v38, 0.0  ;;  %v4060_v63 = vsel %vm3620_vm7, %v3977_v34, 0.0 }
 0x2f0   : > { %v3617_v58 = vrot.slane %v7195_v18, 4  ;;  %v4053_v42 = vadd.f32 %v4052_v26, %v4051_v41  ;;  %v3925_v2 = vadd.f32 %v3924_v37, %v3923_v3  ;;  %v3803_v51 = vmul.f32 %v7131_v25, %v7195_v18 }
 0x2f1   : > { %v3859_v50 = vsel %vm3620_vm7, %v3802_v30, 0.0 }
 0x2f2   : > { %v3634_v5 = vsel %vm3620_vm7, %v3504_v38, %v3617_v58  ;;  %v4055_v32 = vadd.f32 %v4054_v20, %v4053_v42  ;;  %v4058_v58 = vsel %vm3620_vm7, %v3972_v61, 0.0  ;;  %v3927_v0 = vadd.f32 %v3926_v49, %v3925_v2  ;;  %v3992_v24 = vld.sshfl [vmem:[#allocation1 + $0x18] sm:$0xff pattern:$0x75316420] }
 0x2f3   : > { %3666 = vst [vmem:[%s6946_s15 + $0x68] sm:$0xff] %v3634_v5  ;;  %v3982_v5 = vld.sshfl [vmem:[#allocation1 + $0x28] sm:$0xff pattern:$0x75316420]  ;;  %v4062_v38 = vsel %vm3620_vm7, %v3978_v10, 0.0  ;;  %v4074_v20 = vsel %vm3620_vm7, %v3984_v36, 0.0 }
 0x2f4   : > { %v3505_v28 = vpop.f32.mrf.mxu2  ;;  %v4057_v39 = vadd.f32 %v4056_v8, %v4055_v32  ;;  %3987 = vst [vmem:[#allocation1 + $0x20] ss:$2 sm:$0xff] %v6332_v35  ;;  %v3929_v11 = vadd.f32 %v3928_v31, %v3927_v0  ;;  %v3930_v35 = vsel %vm3620_vm7, %v7195_v18, 0.0  ;;  %v4070_v60 = vsel %vm3620_vm7, %v3982_v5, 0.0 }
 0x2f5   : > { %v3529_v1 = vpop.f32.mrf.mxu0  ;;  %v3518_v40 = vpop.f32.mrf.mxu3  ;;  %v3860_v28 = vadd.f32 %v3859_v50, %v7167_v15 }
 0x2f6   : > { %v3542_v33 = vpop.f32.mrf.mxu1  ;;  %v3530_v17 = vadd.f32 %v3529_v1, %v6932_v7  ;;  %v3983_v1 = vld.sshfl [vmem:[#allocation1 + $0x30] sm:$0xff pattern:$0x75316420]  ;;  %v4059_v14 = vadd.f32 %v4058_v58, %v4057_v39  ;;  %v3931_v25 = vadd.f32 %v3930_v35, %v3929_v11  ;;  %v3989_v3 = vld.sshfl [vmem:[#allocation1] sm:$0xff pattern:$0x75316420] }
 0x2f7   : > { %v7212_v52 = vadd.f32 %v3542_v33, %v6932_v7  ;;  %3988 = vst [vmem:[#allocation1 + $0x30] ss:$2 sm:$0xff] %v6425_v22  ;;  %v3861_v33 = vsel %vm3620_vm7, %v3803_v51, 0.0  ;;  %v4066_v22 = vsel %vm3620_vm7, %v3980_v19, 0.0  ;;  %v4072_v26 = vsel %vm3620_vm7, %v3983_v1, 0.0 }
 0x2f8   : > { %v3804_v55 = vmul.f32 %v7154_v47, %v3530_v17  ;;  %v4061_v62 = vadd.f32 %v4060_v63, %v4059_v14  ;;  %v3932_v53 = vsel %vm3620_vm7, %v3530_v17, 0.0  ;;  %v3862_v40 = vadd.f32 %v3861_v33, %v3860_v28  ;;  %v3991_v58 = vld.sshfl [vmem:[#allocation1 + $0x10] sm:$0xff pattern:$0x75316420] }
 0x2f9   : > { %v3618_v21 = vrot.slane %v7212_v52, 4  ;;  %v3933_v47 = vadd.f32 %v3932_v53, %v3931_v25  ;;  %v3805_v44 = vmul.f32 %v7161_v59, %v7212_v52  ;;  %v3934_v43 = vsel %vm3620_vm7, %v7212_v52, 0.0 }
 0x2fa   : > { %v4063_v6 = vadd.f32 %v4062_v38, %v4061_v62  ;;  %v3863_v15 = vsel %vm3620_vm7, %v3804_v55, 0.0  ;;  %v4076_v19 = vsel %vm3620_vm7, %v3989_v3, 0.0  ;;  %v4080_v63 = vsel %vm3620_vm7, %v3991_v58, 0.0 }
 0x2fb   : > { %v3635_v48 = vsel %vm3620_vm7, %v3530_v17, %v3618_v21  ;;  %v3864_v12 = vadd.f32 %v3863_v15, %v3862_v40  ;;  %v4992_v21 = vmov 0.0   ;;  %v3935_v61 = vadd.f32 %v3934_v43, %v3933_v47  ;;  %v3993_v0 = vld.sshfl [vmem:[#allocation1 + $0x20] sm:$0xff pattern:$0x75316420] }
 0x2fc   : > { %3667 = vst [vmem:[%s6946_s15 + $0x70] sm:$0xff] %v3635_v48  ;;  %v4065_v54 = vadd.f32 %v4064_v4, %v4063_v6  ;;  %v3865_v16 = vsel %vm3620_vm7, %v3805_v44, 0.0  ;;  %v4082_v1 = vsel %vm3620_vm7, %v3992_v24, 0.0  ;;  %v3994_v36 = vld.sshfl [vmem:[#allocation1 + $0x28] sm:$0xff pattern:$0x75316420] }
 0x2fd   : > { %v3531_v45 = vpop.f32.mrf.mxu0  ;;  %3674 = vst [vmem:[%s7260_s16 + $0x4] sm:$0xf] %v4992_v21  ;;  %v3866_v41 = vadd.f32 %v3865_v16, %v3864_v12  ;;  %v4084_v11 = vsel %vm3620_vm7, %v3993_v0, 0.0  ;;  %v4086_v28 = vsel %vm3620_vm7, %v3994_v36, 0.0 }
 0x2fe   : > { %v3544_v13 = vpop.f32.mrf.mxu1  ;;  %v4067_v18 = vadd.f32 %v4066_v22, %v4065_v54  ;;  %3673 = vst [vmem:[%s7260_s16] sm:$0xf] %v4992_v21  ;;  %v3995_v51 = vld.sshfl [vmem:[#allocation1 + $0x30] sm:$0xff pattern:$0x75316420] }
 0x2ff   : > { %3675 = vst [vmem:[%s7260_s16 + $0x8] sm:$0xf] %v4992_v21  ;;  %v3996_v55 = vld.sshfl [vmem:[#allocation1 + $0x38] sm:$0xff pattern:$0x75316420]  ;;  %v4088_v4 = vsel %vm3620_vm7, %v3995_v51, 0.0 }
 0x300   : > { %v4069_v17 = vadd.f32 %v4068_v56, %v4067_v18 }
 0x302   : > { %v4071_v48 = vadd.f32 %v4070_v60, %v4069_v17 }
 0x304   : > { %v4073_v13 = vadd.f32 %v4072_v26, %v4071_v48 }
 0x306   : > { %v4075_v50 = vadd.f32 %v4074_v20, %v4073_v13 }
 0x308   : > { %v4077_v39 = vadd.f32 %v4076_v19, %v4075_v50 }
 0x30c   : > { %v3555_v29 = vpop.f32.mrf.mxu2 }
 0x30d   : > { %v3556_v46 = vadd.f32 %v3555_v29, %v6932_v7  ;;  %v3568_v59 = vpop.f32.mrf.mxu3 }
 0x30e   : > { %v3569_v52 = vadd.f32 %v3568_v59, %v6932_v7  ;;  %v3990_v7 = vld.sshfl [vmem:[#allocation1 + $0x8] sm:$0xff pattern:$0x75316420] }
 0x30f   : > { %v3806_v23 = vmul.f32 %v7174_v9, %v3556_v46  ;;  %v3936_v37 = vsel %vm3620_vm7, %v3556_v46, 0.0 }
 0x310   : > { %v3937_v45 = vadd.f32 %v3936_v37, %v3935_v61  ;;  %v3619_v30 = vrot.slane %v3569_v52, 4  ;;  %v3938_v34 = vsel %vm3620_vm7, %v3569_v52, 0.0  ;;  %v3807_v10 = vmul.f32 %v7176_v27, %v3569_v52 }
 0x311   : > { %v3867_v42 = vsel %vm3620_vm7, %v3806_v23, 0.0  ;;  %v4078_v27 = vsel %vm3620_vm7, %v3990_v7, 0.0 }
 0x312   : > { %v3939_v9 = vadd.f32 %v3938_v34, %v3937_v45  ;;  %v3868_v2 = vadd.f32 %v3867_v42, %v3866_v41  ;;  %v3636_v8 = vsel %vm3620_vm7, %v3556_v46, %v3619_v30  ;;  %v3869_v57 = vsel %vm3620_vm7, %v3807_v10, 0.0 }
 0x313   : > { %3668 = vst [vmem:[%s6946_s15 + $0x78] sm:$0xff] %v3636_v8  ;;  %v4079_v5 = vadd.f32 %v4078_v27, %v4077_v39 }
 0x314   : > { %3940 = vadd.xlane.f32.xlu1 %v3939_v9  ;;  %v3870_v32 = vadd.f32 %v3869_v57, %v3868_v2  ;;  %v3557_v49 = vpop.f32.mrf.mxu2 }
 0x315   : > { %v3570_v31 = vpop.f32.mrf.mxu3  ;;  %v4081_v14 = vadd.f32 %v4080_v63, %v4079_v5 }
 0x316   : > { %3871 = vadd.xlane.f32.xlu0 %v3870_v32 }
 0x317   : > { %v4083_v38 = vadd.f32 %v4082_v1, %v4081_v14 }
 0x319   : > { %v4085_v62 = vadd.f32 %v4084_v11, %v4083_v38 }
 0x31b   : > { %v4087_v35 = vadd.f32 %v4086_v28, %v4085_v62 }
 0x31c   : > { %4893 = shalt.err (!%p4890_p13)
}
 0x31d   : > { %4545 = dma.vmem_to_hbm [thread:$0]  (%p5143_p0), %s4119_s29, 2048, %s4121_s30, %s4097_s24   ;;  %v4090_v53 = vsel %vm3620_vm7, %v3996_v55, 0.0  ;;  %v4089_v6 = vadd.f32 %v4088_v4, %v4087_v35  ;;  %v4517_v25 = vld [vmem:[%s7260_s16 + $0x4] sm:$0xf]  ;;  %v3676_v40 = vld [vmem:[%s7260_s16] sm:$0xf] }
 0x31e   : > { %s4534_s15 = smul.u32 12, %s4980_s20  ;;  %s7459_s11 = sld [smem:[#allocation30_spill]]  ;;  %v4519_v44 = vld [vmem:[%s7260_s16 + $0x8] sm:$0xf] }
 0x31f   : > { %v4091_v33 = vadd.f32 %v4090_v53, %v4089_v6  ;;  %s4134_s22 = sshll.u32 %s7260_s16, 4  ;;  %s4102_s29 = scalar_lea.sflag [#allocation13], %s5187_s0  ;;  %s4135_s22 = int_to_ptr.vmem [resolvable:$true] %s4134_s22 }
 0x321   : > { %4092 = vadd.xlane.f32.xlu2 %v4091_v33 }
 0x324   : > { %s4133_s17 = scalar_lea.hbm %s7459_s11, %s4534_s15  ;;  %s4914_s7 = scalar_lea.hbm %s7459_s11, 24 }
 0x325   : > { %s4136_s28 = sshll.u32 %s4133_s17, 4  ;;  %s4137_s28 = int_to_ptr.hbm [resolvable:$true] %s4136_s28 }
 0x326   : > { %s4908_s30 = sshra.s32 %s4137_s28, 4  ;;  %s4909_s30 = int_to_ptr.hbm [resolvable:$true] %s4908_s30 }
 0x327   : > { %s4910_s24 = scalar_lea.hbm %s4909_s30, 12  ;;  %p4915_p6 = scmp.lt.s32.totalorder %s4909_s30, %s7459_s11 }
 0x328   : > { %p4911_p4 = scmp.ne.s32.totalorder %s4909_s30, %s4910_s24  ;;  %p4916_p7 = scmp.lt.s32.totalorder %s4914_s7, %s4910_s24 }
 0x32a   : > { %p4912_p5 = pnand %p4911_p4, %p5143_p0  ;;  %p4917_p8 = por %p4916_p7, %p4915_p6 }
 0x32c   : > { %p4913_p1 = pneg %p4912_p5 }
 0x32e   : > { %p4918_p9 = pnand %p4917_p8, %p4913_p1 }
 0x387   : > { %v3941_v22 = vpop.xlane.xlu1 %3940 }
 0x388   : > { %v3942_v15 = vadd.f32 %v4517_v25, %v3941_v22 }
 0x389   : > { %v3872_v54 = vpop.xlane.xlu0 %3871 }
 0x38a   : > { %4518 = vst [vmem:[%s7260_s16 + $0x4] sm:$0xf] %v3942_v15  ;;  %v3873_v47 = vadd.f32 %v3872_v54, %v3676_v40 }
 0x38c   : > { %3874 = vst [vmem:[%s7260_s16] sm:$0xf] %v3873_v47 }
 0x394   : > { %v4093_v56 = vpop.xlane.xlu2 %4092 }
 0x395   : > { %v4094_v18 = vadd.f32 %v4519_v44, %v4093_v56 }
 0x397   : > { %4520 = vst [vmem:[%s7260_s16 + $0x8] sm:$0xf] %v4094_v18 }
 0x398   : > { %4921 = shalt.err (!%p4918_p9)
}
 0x399   : > { %s4993_s0 = smov 64   ;;  %s4994_s16 = smov 4  }
 0x39a   : > { %4546 = dma.vmem_to_hbm [thread:$0]  (%p5143_p0), %s4135_s22, 192, %s4137_s28, %s4102_s29, %s4993_s0, %s4993_s0, %s4994_s16  }
 0x39b PF: > { %s7460_s14 = sld [smem:[#allocation19_spill]]  ;;  %p4564_p10 = pnand %p4332_p3, %p5147_p2 }
 0x39c   : > { %s7462_s13 = sld [smem:[#allocation21_spill]] }
 0x39d   : > { %p4565_p11 = pneg %p4564_p10 }
 0x3a1   : > { %s4151_s15 = sand.u32 1, %s7460_s14  }
 0x3a2   : > { %s4152_s10 = scalar_lea.sflag [#allocation5], %s4151_s15 }
 0x3a3   : > { %4959 = dma.done.wait (%p4565_p11), %s4152_s10, 2048  }
 0x3a4   : > { %4961 = vsyncadd (%p4565_p11), %s4152_s10, 4294965248  ;;  %s4162_s8 = scalar_lea.sflag [#allocation13], %s4151_s15 }
 0x3a5   : > { %4963 = dma.done.wait (%p4565_p11), %s4162_s8, 192  }
 0x3a6   : > { %4965 = vsyncadd (%p4565_p11), %s4162_s8, 4294967104  ;;  %s35_s22 = sadd.s32 1, %s7462_s13   ;;  %s7463_s21 = sld [smem:[#allocation23_spill]] }
 0x3a7   : > { %p32_p12 = scmp.ge.s32.totalorder %s35_s22, 4   ;;  %s7464_s20 = sld [smem:[#allocation20_spill]] }
 0x3a8   : > { %s7465_s28 = sld [smem:[#allocation22_spill]]  ;;  %s7466_s17 = smov %s4972_s18 }
 0x3a9   : > { %s7467_s18 = smov %s4976_s19 }
 0x3aa   :  { %34 = sbr.rel (!%p32_p12) target bundleno = 17 (0x11), region = 173 }
 0x3ac   : > { %s7468_s19 = smov %s7463_s21 }
 0x3ae   : > { %s7469_s21 = smov %s7465_s28 }
 0x3af   :  { %4168 = vsyncpa [#allocation4], 1 }
 0x3b0   :  { %4170 = vsyncpa [#allocation4 + $0x1], 1 }
 0x3b1   :  { %4171 = vsyncpa [#allocation9], 1 }
 0x3b2   :  { %4173 = vsyncpa [#allocation9 + $0x1], 1 }
 0x3b3   :  { %4174 = vsyncpa [#allocation5], 1 }
 0x3b4   :  { %4176 = vsyncpa [#allocation5 + $0x1], 1 }
 0x3b5   :  { %4177 = vsyncpa [#allocation13], 1 }
 0x3b6   :  { %4179 = vsyncpa [#allocation13 + $0x1], 1 }
 0x3b7   :  { %4180 = vsyncpa [#allocation6], 1 }
 0x3b8   :  { %4182 = vsyncpa [#allocation6 + $0x1], 1 }

</bundles_post_ra>
